<compile_context>
chip_gen: v6e
topology: v6e:2x2x1
jax: 0.10.0
libtpu: 0.0.40
codegen_flags: <defaults>
</compile_context>

<pallas_src>
import math

import jax
import jax.numpy as jnp
from jax.experimental import pallas as pl
from jax.experimental.pallas import tpu as pltpu


# ----------------------------------------------------------------------------
# Fused Pallas kernel
# ----------------------------------------------------------------------------
def _lstm_cell(gates, c, H):
    """PyTorch gate order (i, f, g, o). Returns (h_new, c_new)."""
    i = jax.nn.sigmoid(gates[:, 0 * H:1 * H])
    f = jax.nn.sigmoid(gates[:, 1 * H:2 * H])
    g = jnp.tanh(gates[:, 2 * H:3 * H])
    o = jax.nn.sigmoid(gates[:, 3 * H:4 * H])
    c_new = f * c + i * g
    h_new = o * jnp.tanh(c_new)
    return h_new, c_new


def seq2seq_lstm_kernel(x_ref, gamma_ref, beta_ref, wih_t_ref, whh_t_ref,
                        b_ref, h0_ref, c0_ref, dwih_t_ref, dwhh_t_ref,
                        db_ref, out_ref, hn_ref, cn_ref):
    S, B, D = x_ref.shape
    L, H, _ = whh_t_ref.shape

    time_output = x_ref[...]                                # (S, B, D)
    layer_flat = []                                         # per-layer (S*B, H)

    for l in range(L):                                      # static: L is tiny
        # ---- LayerNorm hoisted over the whole block (vectorized) ----------
        mu = jnp.mean(time_output, axis=-1, keepdims=True)
        var = jnp.mean(jnp.square(time_output - mu), axis=-1, keepdims=True)
        xn = ((time_output - mu) * jax.lax.rsqrt(var + 1e-5)
              * gamma_ref[l] + beta_ref[l])                 # (S, B, D)

        # ---- Input projection hoisted: ONE batched matmul, bias folded ----
        gates_x = (jnp.dot(xn.reshape(S * B, D), wih_t_ref[l],
                           preferred_element_type=jnp.float32)
                   + b_ref[l])                              # (S*B, 4H)
        gates_x = gates_x.reshape(S, B, 4 * H)

        # ---- Recurrence: only h @ whh_t stays on the serial chain ---------
        whh_t = whh_t_ref[l]                                # (H, 4H)
        h = h0_ref[l]
        c = c0_ref[l]
        hs = []
        for t in range(S):                                  # static unroll
            gates = gates_x[t] + jnp.dot(
                h, whh_t, preferred_element_type=jnp.float32)
            h, c = _lstm_cell(gates, c, H)
            hs.append(h)

        hn_ref[L - 1 - l] = h                               # module reverses
        cn_ref[L - 1 - l] = c
        time_output = jnp.stack(hs)                         # (S, B, H)
        layer_flat.append(time_output.reshape(S * B, H))

    # ---- Depth LSTM over the layer stack: only the final cell is used -----
    dwih_t = dwih_t_ref[...]
    dwhh_t = dwhh_t_ref[...]
    db = db_ref[...]
    dh = jnp.zeros((S * B, H), jnp.float32)
    dc = jnp.zeros((S * B, H), jnp.float32)
    for l in range(L):                                      # static unroll
        gates = jnp.dot(layer_flat[l], dwih_t,
                        preferred_element_type=jnp.float32) + db
        if l > 0:                                           # dh == 0 at l == 0
            gates = gates + jnp.dot(dh, dwhh_t,
                                    preferred_element_type=jnp.float32)
        dh, dc = _lstm_cell(gates, dc, H)

    out_ref[...] = dc.reshape(S, B, H) + time_output


# ----------------------------------------------------------------------------
# pallas_call wrapper (whole problem fits VMEM at these sizes)
# ----------------------------------------------------------------------------
def _vmem_spec():
    return pl.BlockSpec(memory_space=pltpu.MemorySpace.VMEM)


def seq2seq_lstm_forward(params, x, hidden=None):
    """x: (batch, seq, input_size). Returns (output (batch, seq, H), (h_n, c_n))."""
    H = params["hidden_size"]
    L = params["num_layers"]
    x = jnp.transpose(x, (1, 0, 2)).astype(jnp.float32)     # (seq, batch, feat)
    S, B, _ = x.shape

    if hidden is None:
        h0 = jnp.zeros((L, B, H), jnp.float32)
        c0 = jnp.zeros((L, B, H), jnp.float32)
    else:
        h0, c0 = hidden

    out_shape = (jax.ShapeDtypeStruct((S, B, H), jnp.float32),
                 jax.ShapeDtypeStruct((L, B, H), jnp.float32),
                 jax.ShapeDtypeStruct((L, B, H), jnp.float32))

    # TODO(synk): for large S/B add a sequence-chunk grid with the (h, c)
    # carry in VMEM scratch ("arbitrary" axis) to stay inside v7x's 64 MiB
    # VMEM; at these sizes a single fully-resident call is fastest.
    out, hn, cn = pl.pallas_call(
        seq2seq_lstm_kernel,
        out_shape=out_shape,
        in_specs=[_vmem_spec()] * 11,
        out_specs=(_vmem_spec(),) * 3,
    )(x, params["gamma"], params["beta"], params["wih_t"], params["whh_t"],
      params["bias"], h0, c0, params["dwih_t"], params["dwhh_t"],
      params["dbias"])

    return jnp.transpose(out, (1, 0, 2)), (hn, cn)


# ----------------------------------------------------------------------------
# Parameter init (deterministic, mimics PyTorch LSTM/LayerNorm defaults)
# ----------------------------------------------------------------------------
def init_params(key, input_size, hidden_size, num_layers):
    assert input_size == hidden_size, \
        "module applies LayerNorm(hidden_size) to the raw input"
    H = hidden_size
    bound = 1.0 / math.sqrt(H)
    keys = jax.random.split(key, num_layers + 1)

    def lstm_params(k, in_dim):
        k0, k1, k2, k3 = jax.random.split(k, 4)
        wih = jax.random.uniform(k0, (4 * H, in_dim), jnp.float32, -bound, bound)
        whh = jax.random.uniform(k1, (4 * H, H), jnp.float32, -bound, bound)
        bih = jax.random.uniform(k2, (4 * H,), jnp.float32, -bound, bound)
        bhh = jax.random.uniform(k3, (4 * H,), jnp.float32, -bound, bound)
        return wih.T, whh.T, (bih + bhh).reshape(1, 4 * H)

    per_layer = [lstm_params(keys[l], H) for l in range(num_layers)]
    wih_t, whh_t, bias = zip(*per_layer)
    dwih_t, dwhh_t, dbias = lstm_params(keys[-1], H)

    return dict(
        hidden_size=H,
        num_layers=num_layers,
        gamma=jnp.ones((num_layers, 1, H), jnp.float32),   # LayerNorm defaults
        beta=jnp.zeros((num_layers, 1, H), jnp.float32),
        wih_t=jnp.stack(wih_t),                            # (L, H, 4H)
        whh_t=jnp.stack(whh_t),                            # (L, H, 4H)
        bias=jnp.stack(bias),                              # (L, 1, 4H)
        dwih_t=dwih_t,                                     # (H, 4H)
        dwhh_t=dwhh_t,                                     # (H, 4H)
        dbias=dbias,                                       # (1, 4H)
    )


# ----------------------------------------------------------------------------
# Pure-JAX reference (for correctness check only)
# ----------------------------------------------------------------------------
def _ref_lstm(x, wih_t, whh_t, bias, h0, c0):
    H = h0.shape[-1]
    h, c = h0, c0
    ys = []
    for t in range(x.shape[0]):
        gates = x[t] @ wih_t + h @ whh_t + bias
        i = jax.nn.sigmoid(gates[:, :H])
        f = jax.nn.sigmoid(gates[:, H:2 * H])
        g = jnp.tanh(gates[:, 2 * H:3 * H])
        o = jax.nn.sigmoid(gates[:, 3 * H:])
        c = f * c + i * g
        h = o * jnp.tanh(c)
        ys.append(h)
    return jnp.stack(ys), h, c


def _ref_forward(params, x):
    H = params["hidden_size"]
    L = params["num_layers"]
    x = jnp.transpose(x, (1, 0, 2))
    S, B, _ = x.shape
    time_output = x
    results, nh, nc = [], [], []
    for l in range(L):
        mu = jnp.mean(time_output, axis=-1, keepdims=True)
        var = jnp.mean(jnp.square(time_output - mu), axis=-1, keepdims=True)
        xn = ((time_output - mu) * jax.lax.rsqrt(var + 1e-5)
              * params["gamma"][l] + params["beta"][l])
        y, h, c = _ref_lstm(xn, params["wih_t"][l], params["whh_t"][l],
                            params["bias"][l],
                            jnp.zeros((B, H)), jnp.zeros((B, H)))
        time_output = y
        results.append(y)
        nh.append(h)
        nc.append(c)
    depth_in = jnp.stack(results).reshape(L, S * B, H)
    _, _, dc = _ref_lstm(depth_in, params["dwih_t"], params["dwhh_t"],
                         params["dbias"], jnp.zeros((S * B, H)),
                         jnp.zeros((S * B, H)))
    out = dc.reshape(S, B, H) + time_output
    return (jnp.transpose(out, (1, 0, 2)),
            (jnp.stack(nh[::-1]), jnp.stack(nc[::-1])))


# ----------------------------------------------------------------------------
if __name__ == "__main__":
    INPUT_SIZE = 32     # must equal HIDDEN (module LayerNorms the raw input)
    HIDDEN = 32
    NUM_LAYERS = 2
    SEQ = 8
    BATCH = 2

    key = jax.random.PRNGKey(0)
    pkey, xkey = jax.random.split(key)
    params = init_params(pkey, INPUT_SIZE, HIDDEN, NUM_LAYERS)
    x = jax.random.normal(xkey, (BATCH, SEQ, INPUT_SIZE), jnp.float32)

    out, (nh, nc) = seq2seq_lstm_forward(params, x, hidden=None)
    jax.block_until_ready((out, nh, nc))

    ref_out, (ref_nh, ref_nc) = _ref_forward(params, x)
    assert out.shape == (BATCH, SEQ, HIDDEN)
    assert nh.shape == (NUM_LAYERS, BATCH, HIDDEN)
    assert nc.shape == (NUM_LAYERS, BATCH, HIDDEN)
    assert jnp.allclose(out, ref_out, atol=1e-3, rtol=1e-3)
    assert jnp.allclose(nh, ref_nh, atol=1e-3, rtol=1e-3)
    assert jnp.allclose(nc, ref_nc, atol=1e-3, rtol=1e-3)

    print("KERNEL_OK")
</pallas_src>

<mosaic_0001>
module attributes {stable_mosaic.version = 11 : i64} {
  func.func @seq2seq_lstm_kernel(%arg0: memref<8x2x32xf32, #tpu.memory_space<vmem>>, %arg1: memref<2x1x32xf32, #tpu.memory_space<vmem>>, %arg2: memref<2x1x32xf32, #tpu.memory_space<vmem>>, %arg3: memref<2x32x128xf32, #tpu.memory_space<vmem>>, %arg4: memref<2x32x128xf32, #tpu.memory_space<vmem>>, %arg5: memref<2x1x128xf32, #tpu.memory_space<vmem>>, %arg6: memref<2x2x32xf32, #tpu.memory_space<vmem>>, %arg7: memref<2x2x32xf32, #tpu.memory_space<vmem>>, %arg8: memref<32x128xf32, #tpu.memory_space<vmem>>, %arg9: memref<32x128xf32, #tpu.memory_space<vmem>>, %arg10: memref<1x128xf32, #tpu.memory_space<vmem>>, %arg11: memref<8x2x32xf32, #tpu.memory_space<vmem>>, %arg12: memref<2x2x32xf32, #tpu.memory_space<vmem>>, %arg13: memref<2x2x32xf32, #tpu.memory_space<vmem>>) attributes {dimension_semantics = [], scalar_prefetch = 0 : i64, scratch_operands = 0 : i64, tpu.core_type = #tpu.core_type<tc>} {
    %c0 = arith.constant 0 : index
    %c0_0 = arith.constant 0 : index
    %c0_1 = arith.constant 0 : index
    %0 = vector.load %arg0[%c0, %c0_0, %c0_1] : memref<8x2x32xf32, #tpu.memory_space<vmem>>, vector<8x2x32xf32>
    %cst = arith.constant dense<0.000000e+00> : vector<8x2xf32>
    %1 = vector.multi_reduction <add>, %0, %cst [2] : vector<8x2x32xf32> to vector<8x2xf32>
    %2 = vector.shape_cast %1 : vector<8x2xf32> to vector<8x2x1xf32>
    %cst_2 = arith.constant 3.200000e+01 : f32
    %3 = vector.broadcast %cst_2 : f32 to vector<8x2x1xf32>
    %4 = arith.divf %2, %3 : vector<8x2x1xf32>
    %5 = vector.broadcast %4 : vector<8x2x1xf32> to vector<8x2x32xf32>
    %6 = arith.subf %0, %5 : vector<8x2x32xf32>
    %7 = arith.mulf %6, %6 : vector<8x2x32xf32>
    %cst_3 = arith.constant dense<0.000000e+00> : vector<8x2xf32>
    %8 = vector.multi_reduction <add>, %7, %cst_3 [2] : vector<8x2x32xf32> to vector<8x2xf32>
    %9 = vector.shape_cast %8 : vector<8x2xf32> to vector<8x2x1xf32>
    %cst_4 = arith.constant 3.200000e+01 : f32
    %10 = vector.broadcast %cst_4 : f32 to vector<8x2x1xf32>
    %11 = arith.divf %9, %10 : vector<8x2x1xf32>
    %12 = vector.broadcast %4 : vector<8x2x1xf32> to vector<8x2x32xf32>
    %13 = arith.subf %0, %12 : vector<8x2x32xf32>
    %cst_5 = arith.constant 9.99999974E-6 : f32
    %14 = vector.broadcast %cst_5 : f32 to vector<8x2x1xf32>
    %15 = arith.addf %11, %14 : vector<8x2x1xf32>
    %16 = math.rsqrt %15 : vector<8x2x1xf32>
    %17 = vector.broadcast %16 : vector<8x2x1xf32> to vector<8x2x32xf32>
    %18 = arith.mulf %13, %17 : vector<8x2x32xf32>
    %c0_6 = arith.constant 0 : index
    %c0_7 = arith.constant 0 : index
    %c0_8 = arith.constant 0 : index
    %19 = vector.load %arg1[%c0_6, %c0_7, %c0_8] : memref<2x1x32xf32, #tpu.memory_space<vmem>>, vector<1x1x32xf32>
    %20 = vector.shape_cast %19 : vector<1x1x32xf32> to vector<1x32xf32>
    %21 = vector.shape_cast %20 : vector<1x32xf32> to vector<1x1x32xf32>
    %22 = vector.broadcast %21 : vector<1x1x32xf32> to vector<8x2x32xf32>
    %23 = arith.mulf %18, %22 : vector<8x2x32xf32>
    %c0_9 = arith.constant 0 : index
    %c0_10 = arith.constant 0 : index
    %c0_11 = arith.constant 0 : index
    %24 = vector.load %arg2[%c0_9, %c0_10, %c0_11] : memref<2x1x32xf32, #tpu.memory_space<vmem>>, vector<1x1x32xf32>
    %25 = vector.shape_cast %24 : vector<1x1x32xf32> to vector<1x32xf32>
    %26 = vector.shape_cast %25 : vector<1x32xf32> to vector<1x1x32xf32>
    %27 = vector.broadcast %26 : vector<1x1x32xf32> to vector<8x2x32xf32>
    %28 = arith.addf %23, %27 : vector<8x2x32xf32>
    %29 = vector.shape_cast %28 : vector<8x2x32xf32> to vector<16x32xf32>
    %c0_12 = arith.constant 0 : index
    %c0_13 = arith.constant 0 : index
    %c0_14 = arith.constant 0 : index
    %30 = vector.load %arg3[%c0_12, %c0_13, %c0_14] : memref<2x32x128xf32, #tpu.memory_space<vmem>>, vector<1x32x128xf32>
    %31 = vector.shape_cast %30 : vector<1x32x128xf32> to vector<32x128xf32>
    %cst_15 = arith.constant dense<0.000000e+00> : vector<16x128xf32>
    %32 = tpu.matmul %29, %31, %cst_15 {dimension_numbers = #tpu.dot_dimension_numbers<[1], [0], [0], [1], [0, 0, 1, 1], [], []>} : vector<16x32xf32>, vector<32x128xf32>, vector<16x128xf32> -> vector<16x128xf32>
    %c0_16 = arith.constant 0 : index
    %c0_17 = arith.constant 0 : index
    %c0_18 = arith.constant 0 : index
    %33 = vector.load %arg5[%c0_16, %c0_17, %c0_18] : memref<2x1x128xf32, #tpu.memory_space<vmem>>, vector<1x1x128xf32>
    %34 = vector.shape_cast %33 : vector<1x1x128xf32> to vector<1x128xf32>
    %35 = vector.broadcast %34 : vector<1x128xf32> to vector<16x128xf32>
    %36 = arith.addf %32, %35 : vector<16x128xf32>
    %37 = vector.shape_cast %36 : vector<16x128xf32> to vector<8x2x128xf32>
    %c0_19 = arith.constant 0 : index
    %c0_20 = arith.constant 0 : index
    %c0_21 = arith.constant 0 : index
    %38 = vector.load %arg4[%c0_19, %c0_20, %c0_21] : memref<2x32x128xf32, #tpu.memory_space<vmem>>, vector<1x32x128xf32>
    %39 = vector.shape_cast %38 : vector<1x32x128xf32> to vector<32x128xf32>
    %c0_22 = arith.constant 0 : index
    %c0_23 = arith.constant 0 : index
    %c0_24 = arith.constant 0 : index
    %40 = vector.load %arg6[%c0_22, %c0_23, %c0_24] : memref<2x2x32xf32, #tpu.memory_space<vmem>>, vector<1x2x32xf32>
    %41 = vector.shape_cast %40 : vector<1x2x32xf32> to vector<2x32xf32>
    %c0_25 = arith.constant 0 : index
    %c0_26 = arith.constant 0 : index
    %c0_27 = arith.constant 0 : index
    %42 = vector.load %arg7[%c0_25, %c0_26, %c0_27] : memref<2x2x32xf32, #tpu.memory_space<vmem>>, vector<1x2x32xf32>
    %43 = vector.shape_cast %42 : vector<1x2x32xf32> to vector<2x32xf32>
    %44 = vector.extract_strided_slice %37 {offsets = [0, 0, 0], sizes = [1, 2, 128], strides = [1, 1, 1]} : vector<8x2x128xf32> to vector<1x2x128xf32>
    %45 = vector.shape_cast %44 : vector<1x2x128xf32> to vector<2x128xf32>
    %cst_28 = arith.constant dense<0.000000e+00> : vector<2x128xf32>
    %46 = tpu.matmul %41, %39, %cst_28 {dimension_numbers = #tpu.dot_dimension_numbers<[1], [0], [0], [1], [0, 0, 1, 1], [], []>} : vector<2x32xf32>, vector<32x128xf32>, vector<2x128xf32> -> vector<2x128xf32>
    %47 = arith.addf %45, %46 : vector<2x128xf32>
    %48 = vector.extract_strided_slice %47 {offsets = [0, 0], sizes = [2, 32], strides = [1, 1]} : vector<2x128xf32> to vector<2x32xf32>
    %49 = arith.negf %48 : vector<2x32xf32>
    %50 = math.exp %49 : vector<2x32xf32>
    %cst_29 = arith.constant 1.000000e+00 : f32
    %51 = vector.broadcast %cst_29 : f32 to vector<2x32xf32>
    %52 = arith.addf %51, %50 : vector<2x32xf32>
    %53 = arith.divf %51, %52 : vector<2x32xf32>
    %54 = vector.extract_strided_slice %47 {offsets = [0, 32], sizes = [2, 32], strides = [1, 1]} : vector<2x128xf32> to vector<2x32xf32>
    %55 = arith.negf %54 : vector<2x32xf32>
    %56 = math.exp %55 : vector<2x32xf32>
    %cst_30 = arith.constant 1.000000e+00 : f32
    %57 = vector.broadcast %cst_30 : f32 to vector<2x32xf32>
    %58 = arith.addf %57, %56 : vector<2x32xf32>
    %59 = arith.divf %57, %58 : vector<2x32xf32>
    %60 = vector.extract_strided_slice %47 {offsets = [0, 64], sizes = [2, 32], strides = [1, 1]} : vector<2x128xf32> to vector<2x32xf32>
    %61 = math.tanh %60 : vector<2x32xf32>
    %62 = vector.extract_strided_slice %47 {offsets = [0, 96], sizes = [2, 32], strides = [1, 1]} : vector<2x128xf32> to vector<2x32xf32>
    %63 = arith.negf %62 : vector<2x32xf32>
    %64 = math.exp %63 : vector<2x32xf32>
    %cst_31 = arith.constant 1.000000e+00 : f32
    %65 = vector.broadcast %cst_31 : f32 to vector<2x32xf32>
    %66 = arith.addf %65, %64 : vector<2x32xf32>
    %67 = arith.divf %65, %66 : vector<2x32xf32>
    %68 = arith.mulf %59, %43 : vector<2x32xf32>
    %69 = arith.mulf %53, %61 : vector<2x32xf32>
    %70 = arith.addf %68, %69 : vector<2x32xf32>
    %71 = math.tanh %70 : vector<2x32xf32>
    %72 = arith.mulf %67, %71 : vector<2x32xf32>
    %73 = vector.extract_strided_slice %37 {offsets = [1, 0, 0], sizes = [1, 2, 128], strides = [1, 1, 1]} : vector<8x2x128xf32> to vector<1x2x128xf32>
    %74 = vector.shape_cast %73 : vector<1x2x128xf32> to vector<2x128xf32>
    %cst_32 = arith.constant dense<0.000000e+00> : vector<2x128xf32>
    %75 = tpu.matmul %72, %39, %cst_32 {dimension_numbers = #tpu.dot_dimension_numbers<[1], [0], [0], [1], [0, 0, 1, 1], [], []>} : vector<2x32xf32>, vector<32x128xf32>, vector<2x128xf32> -> vector<2x128xf32>
    %76 = arith.addf %74, %75 : vector<2x128xf32>
    %77 = vector.extract_strided_slice %76 {offsets = [0, 0], sizes = [2, 32], strides = [1, 1]} : vector<2x128xf32> to vector<2x32xf32>
    %78 = arith.negf %77 : vector<2x32xf32>
    %79 = math.exp %78 : vector<2x32xf32>
    %cst_33 = arith.constant 1.000000e+00 : f32
    %80 = vector.broadcast %cst_33 : f32 to vector<2x32xf32>
    %81 = arith.addf %80, %79 : vector<2x32xf32>
    %82 = arith.divf %80, %81 : vector<2x32xf32>
    %83 = vector.extract_strided_slice %76 {offsets = [0, 32], sizes = [2, 32], strides = [1, 1]} : vector<2x128xf32> to vector<2x32xf32>
    %84 = arith.negf %83 : vector<2x32xf32>
    %85 = math.exp %84 : vector<2x32xf32>
    %cst_34 = arith.constant 1.000000e+00 : f32
    %86 = vector.broadcast %cst_34 : f32 to vector<2x32xf32>
    %87 = arith.addf %86, %85 : vector<2x32xf32>
    %88 = arith.divf %86, %87 : vector<2x32xf32>
    %89 = vector.extract_strided_slice %76 {offsets = [0, 64], sizes = [2, 32], strides = [1, 1]} : vector<2x128xf32> to vector<2x32xf32>
    %90 = math.tanh %89 : vector<2x32xf32>
    %91 = vector.extract_strided_slice %76 {offsets = [0, 96], sizes = [2, 32], strides = [1, 1]} : vector<2x128xf32> to vector<2x32xf32>
    %92 = arith.negf %91 : vector<2x32xf32>
    %93 = math.exp %92 : vector<2x32xf32>
    %cst_35 = arith.constant 1.000000e+00 : f32
    %94 = vector.broadcast %cst_35 : f32 to vector<2x32xf32>
    %95 = arith.addf %94, %93 : vector<2x32xf32>
    %96 = arith.divf %94, %95 : vector<2x32xf32>
    %97 = arith.mulf %88, %70 : vector<2x32xf32>
    %98 = arith.mulf %82, %90 : vector<2x32xf32>
    %99 = arith.addf %97, %98 : vector<2x32xf32>
    %100 = math.tanh %99 : vector<2x32xf32>
    %101 = arith.mulf %96, %100 : vector<2x32xf32>
    %102 = vector.extract_strided_slice %37 {offsets = [2, 0, 0], sizes = [1, 2, 128], strides = [1, 1, 1]} : vector<8x2x128xf32> to vector<1x2x128xf32>
    %103 = vector.shape_cast %102 : vector<1x2x128xf32> to vector<2x128xf32>
    %cst_36 = arith.constant dense<0.000000e+00> : vector<2x128xf32>
    %104 = tpu.matmul %101, %39, %cst_36 {dimension_numbers = #tpu.dot_dimension_numbers<[1], [0], [0], [1], [0, 0, 1, 1], [], []>} : vector<2x32xf32>, vector<32x128xf32>, vector<2x128xf32> -> vector<2x128xf32>
    %105 = arith.addf %103, %104 : vector<2x128xf32>
    %106 = vector.extract_strided_slice %105 {offsets = [0, 0], sizes = [2, 32], strides = [1, 1]} : vector<2x128xf32> to vector<2x32xf32>
    %107 = arith.negf %106 : vector<2x32xf32>
    %108 = math.exp %107 : vector<2x32xf32>
    %cst_37 = arith.constant 1.000000e+00 : f32
    %109 = vector.broadcast %cst_37 : f32 to vector<2x32xf32>
    %110 = arith.addf %109, %108 : vector<2x32xf32>
    %111 = arith.divf %109, %110 : vector<2x32xf32>
    %112 = vector.extract_strided_slice %105 {offsets = [0, 32], sizes = [2, 32], strides = [1, 1]} : vector<2x128xf32> to vector<2x32xf32>
    %113 = arith.negf %112 : vector<2x32xf32>
    %114 = math.exp %113 : vector<2x32xf32>
    %cst_38 = arith.constant 1.000000e+00 : f32
    %115 = vector.broadcast %cst_38 : f32 to vector<2x32xf32>
    %116 = arith.addf %115, %114 : vector<2x32xf32>
    %117 = arith.divf %115, %116 : vector<2x32xf32>
    %118 = vector.extract_strided_slice %105 {offsets = [0, 64], sizes = [2, 32], strides = [1, 1]} : vector<2x128xf32> to vector<2x32xf32>
    %119 = math.tanh %118 : vector<2x32xf32>
    %120 = vector.extract_strided_slice %105 {offsets = [0, 96], sizes = [2, 32], strides = [1, 1]} : vector<2x128xf32> to vector<2x32xf32>
    %121 = arith.negf %120 : vector<2x32xf32>
    %122 = math.exp %121 : vector<2x32xf32>
    %cst_39 = arith.constant 1.000000e+00 : f32
    %123 = vector.broadcast %cst_39 : f32 to vector<2x32xf32>
    %124 = arith.addf %123, %122 : vector<2x32xf32>
    %125 = arith.divf %123, %124 : vector<2x32xf32>
    %126 = arith.mulf %117, %99 : vector<2x32xf32>
    %127 = arith.mulf %111, %119 : vector<2x32xf32>
    %128 = arith.addf %126, %127 : vector<2x32xf32>
    %129 = math.tanh %128 : vector<2x32xf32>
    %130 = arith.mulf %125, %129 : vector<2x32xf32>
    %131 = vector.extract_strided_slice %37 {offsets = [3, 0, 0], sizes = [1, 2, 128], strides = [1, 1, 1]} : vector<8x2x128xf32> to vector<1x2x128xf32>
    %132 = vector.shape_cast %131 : vector<1x2x128xf32> to vector<2x128xf32>
    %cst_40 = arith.constant dense<0.000000e+00> : vector<2x128xf32>
    %133 = tpu.matmul %130, %39, %cst_40 {dimension_numbers = #tpu.dot_dimension_numbers<[1], [0], [0], [1], [0, 0, 1, 1], [], []>} : vector<2x32xf32>, vector<32x128xf32>, vector<2x128xf32> -> vector<2x128xf32>
    %134 = arith.addf %132, %133 : vector<2x128xf32>
    %135 = vector.extract_strided_slice %134 {offsets = [0, 0], sizes = [2, 32], strides = [1, 1]} : vector<2x128xf32> to vector<2x32xf32>
    %136 = arith.negf %135 : vector<2x32xf32>
    %137 = math.exp %136 : vector<2x32xf32>
    %cst_41 = arith.constant 1.000000e+00 : f32
    %138 = vector.broadcast %cst_41 : f32 to vector<2x32xf32>
    %139 = arith.addf %138, %137 : vector<2x32xf32>
    %140 = arith.divf %138, %139 : vector<2x32xf32>
    %141 = vector.extract_strided_slice %134 {offsets = [0, 32], sizes = [2, 32], strides = [1, 1]} : vector<2x128xf32> to vector<2x32xf32>
    %142 = arith.negf %141 : vector<2x32xf32>
    %143 = math.exp %142 : vector<2x32xf32>
    %cst_42 = arith.constant 1.000000e+00 : f32
    %144 = vector.broadcast %cst_42 : f32 to vector<2x32xf32>
    %145 = arith.addf %144, %143 : vector<2x32xf32>
    %146 = arith.divf %144, %145 : vector<2x32xf32>
    %147 = vector.extract_strided_slice %134 {offsets = [0, 64], sizes = [2, 32], strides = [1, 1]} : vector<2x128xf32> to vector<2x32xf32>
    %148 = math.tanh %147 : vector<2x32xf32>
    %149 = vector.extract_strided_slice %134 {offsets = [0, 96], sizes = [2, 32], strides = [1, 1]} : vector<2x128xf32> to vector<2x32xf32>
    %150 = arith.negf %149 : vector<2x32xf32>
    %151 = math.exp %150 : vector<2x32xf32>
    %cst_43 = arith.constant 1.000000e+00 : f32
    %152 = vector.broadcast %cst_43 : f32 to vector<2x32xf32>
    %153 = arith.addf %152, %151 : vector<2x32xf32>
    %154 = arith.divf %152, %153 : vector<2x32xf32>
    %155 = arith.mulf %146, %128 : vector<2x32xf32>
    %156 = arith.mulf %140, %148 : vector<2x32xf32>
    %157 = arith.addf %155, %156 : vector<2x32xf32>
    %158 = math.tanh %157 : vector<2x32xf32>
    %159 = arith.mulf %154, %158 : vector<2x32xf32>
    %160 = vector.extract_strided_slice %37 {offsets = [4, 0, 0], sizes = [1, 2, 128], strides = [1, 1, 1]} : vector<8x2x128xf32> to vector<1x2x128xf32>
    %161 = vector.shape_cast %160 : vector<1x2x128xf32> to vector<2x128xf32>
    %cst_44 = arith.constant dense<0.000000e+00> : vector<2x128xf32>
    %162 = tpu.matmul %159, %39, %cst_44 {dimension_numbers = #tpu.dot_dimension_numbers<[1], [0], [0], [1], [0, 0, 1, 1], [], []>} : vector<2x32xf32>, vector<32x128xf32>, vector<2x128xf32> -> vector<2x128xf32>
    %163 = arith.addf %161, %162 : vector<2x128xf32>
    %164 = vector.extract_strided_slice %163 {offsets = [0, 0], sizes = [2, 32], strides = [1, 1]} : vector<2x128xf32> to vector<2x32xf32>
    %165 = arith.negf %164 : vector<2x32xf32>
    %166 = math.exp %165 : vector<2x32xf32>
    %cst_45 = arith.constant 1.000000e+00 : f32
    %167 = vector.broadcast %cst_45 : f32 to vector<2x32xf32>
    %168 = arith.addf %167, %166 : vector<2x32xf32>
    %169 = arith.divf %167, %168 : vector<2x32xf32>
    %170 = vector.extract_strided_slice %163 {offsets = [0, 32], sizes = [2, 32], strides = [1, 1]} : vector<2x128xf32> to vector<2x32xf32>
    %171 = arith.negf %170 : vector<2x32xf32>
    %172 = math.exp %171 : vector<2x32xf32>
    %cst_46 = arith.constant 1.000000e+00 : f32
    %173 = vector.broadcast %cst_46 : f32 to vector<2x32xf32>
    %174 = arith.addf %173, %172 : vector<2x32xf32>
    %175 = arith.divf %173, %174 : vector<2x32xf32>
    %176 = vector.extract_strided_slice %163 {offsets = [0, 64], sizes = [2, 32], strides = [1, 1]} : vector<2x128xf32> to vector<2x32xf32>
    %177 = math.tanh %176 : vector<2x32xf32>
    %178 = vector.extract_strided_slice %163 {offsets = [0, 96], sizes = [2, 32], strides = [1, 1]} : vector<2x128xf32> to vector<2x32xf32>
    %179 = arith.negf %178 : vector<2x32xf32>
    %180 = math.exp %179 : vector<2x32xf32>
    %cst_47 = arith.constant 1.000000e+00 : f32
    %181 = vector.broadcast %cst_47 : f32 to vector<2x32xf32>
    %182 = arith.addf %181, %180 : vector<2x32xf32>
    %183 = arith.divf %181, %182 : vector<2x32xf32>
    %184 = arith.mulf %175, %157 : vector<2x32xf32>
    %185 = arith.mulf %169, %177 : vector<2x32xf32>
    %186 = arith.addf %184, %185 : vector<2x32xf32>
    %187 = math.tanh %186 : vector<2x32xf32>
    %188 = arith.mulf %183, %187 : vector<2x32xf32>
    %189 = vector.extract_strided_slice %37 {offsets = [5, 0, 0], sizes = [1, 2, 128], strides = [1, 1, 1]} : vector<8x2x128xf32> to vector<1x2x128xf32>
    %190 = vector.shape_cast %189 : vector<1x2x128xf32> to vector<2x128xf32>
    %cst_48 = arith.constant dense<0.000000e+00> : vector<2x128xf32>
    %191 = tpu.matmul %188, %39, %cst_48 {dimension_numbers = #tpu.dot_dimension_numbers<[1], [0], [0], [1], [0, 0, 1, 1], [], []>} : vector<2x32xf32>, vector<32x128xf32>, vector<2x128xf32> -> vector<2x128xf32>
    %192 = arith.addf %190, %191 : vector<2x128xf32>
    %193 = vector.extract_strided_slice %192 {offsets = [0, 0], sizes = [2, 32], strides = [1, 1]} : vector<2x128xf32> to vector<2x32xf32>
    %194 = arith.negf %193 : vector<2x32xf32>
    %195 = math.exp %194 : vector<2x32xf32>
    %cst_49 = arith.constant 1.000000e+00 : f32
    %196 = vector.broadcast %cst_49 : f32 to vector<2x32xf32>
    %197 = arith.addf %196, %195 : vector<2x32xf32>
    %198 = arith.divf %196, %197 : vector<2x32xf32>
    %199 = vector.extract_strided_slice %192 {offsets = [0, 32], sizes = [2, 32], strides = [1, 1]} : vector<2x128xf32> to vector<2x32xf32>
    %200 = arith.negf %199 : vector<2x32xf32>
    %201 = math.exp %200 : vector<2x32xf32>
    %cst_50 = arith.constant 1.000000e+00 : f32
    %202 = vector.broadcast %cst_50 : f32 to vector<2x32xf32>
    %203 = arith.addf %202, %201 : vector<2x32xf32>
    %204 = arith.divf %202, %203 : vector<2x32xf32>
    %205 = vector.extract_strided_slice %192 {offsets = [0, 64], sizes = [2, 32], strides = [1, 1]} : vector<2x128xf32> to vector<2x32xf32>
    %206 = math.tanh %205 : vector<2x32xf32>
    %207 = vector.extract_strided_slice %192 {offsets = [0, 96], sizes = [2, 32], strides = [1, 1]} : vector<2x128xf32> to vector<2x32xf32>
    %208 = arith.negf %207 : vector<2x32xf32>
    %209 = math.exp %208 : vector<2x32xf32>
    %cst_51 = arith.constant 1.000000e+00 : f32
    %210 = vector.broadcast %cst_51 : f32 to vector<2x32xf32>
    %211 = arith.addf %210, %209 : vector<2x32xf32>
    %212 = arith.divf %210, %211 : vector<2x32xf32>
    %213 = arith.mulf %204, %186 : vector<2x32xf32>
    %214 = arith.mulf %198, %206 : vector<2x32xf32>
    %215 = arith.addf %213, %214 : vector<2x32xf32>
    %216 = math.tanh %215 : vector<2x32xf32>
    %217 = arith.mulf %212, %216 : vector<2x32xf32>
    %218 = vector.extract_strided_slice %37 {offsets = [6, 0, 0], sizes = [1, 2, 128], strides = [1, 1, 1]} : vector<8x2x128xf32> to vector<1x2x128xf32>
    %219 = vector.shape_cast %218 : vector<1x2x128xf32> to vector<2x128xf32>
    %cst_52 = arith.constant dense<0.000000e+00> : vector<2x128xf32>
    %220 = tpu.matmul %217, %39, %cst_52 {dimension_numbers = #tpu.dot_dimension_numbers<[1], [0], [0], [1], [0, 0, 1, 1], [], []>} : vector<2x32xf32>, vector<32x128xf32>, vector<2x128xf32> -> vector<2x128xf32>
    %221 = arith.addf %219, %220 : vector<2x128xf32>
    %222 = vector.extract_strided_slice %221 {offsets = [0, 0], sizes = [2, 32], strides = [1, 1]} : vector<2x128xf32> to vector<2x32xf32>
    %223 = arith.negf %222 : vector<2x32xf32>
    %224 = math.exp %223 : vector<2x32xf32>
    %cst_53 = arith.constant 1.000000e+00 : f32
    %225 = vector.broadcast %cst_53 : f32 to vector<2x32xf32>
    %226 = arith.addf %225, %224 : vector<2x32xf32>
    %227 = arith.divf %225, %226 : vector<2x32xf32>
    %228 = vector.extract_strided_slice %221 {offsets = [0, 32], sizes = [2, 32], strides = [1, 1]} : vector<2x128xf32> to vector<2x32xf32>
    %229 = arith.negf %228 : vector<2x32xf32>
    %230 = math.exp %229 : vector<2x32xf32>
    %cst_54 = arith.constant 1.000000e+00 : f32
    %231 = vector.broadcast %cst_54 : f32 to vector<2x32xf32>
    %232 = arith.addf %231, %230 : vector<2x32xf32>
    %233 = arith.divf %231, %232 : vector<2x32xf32>
    %234 = vector.extract_strided_slice %221 {offsets = [0, 64], sizes = [2, 32], strides = [1, 1]} : vector<2x128xf32> to vector<2x32xf32>
    %235 = math.tanh %234 : vector<2x32xf32>
    %236 = vector.extract_strided_slice %221 {offsets = [0, 96], sizes = [2, 32], strides = [1, 1]} : vector<2x128xf32> to vector<2x32xf32>
    %237 = arith.negf %236 : vector<2x32xf32>
    %238 = math.exp %237 : vector<2x32xf32>
    %cst_55 = arith.constant 1.000000e+00 : f32
    %239 = vector.broadcast %cst_55 : f32 to vector<2x32xf32>
    %240 = arith.addf %239, %238 : vector<2x32xf32>
    %241 = arith.divf %239, %240 : vector<2x32xf32>
    %242 = arith.mulf %233, %215 : vector<2x32xf32>
    %243 = arith.mulf %227, %235 : vector<2x32xf32>
    %244 = arith.addf %242, %243 : vector<2x32xf32>
    %245 = math.tanh %244 : vector<2x32xf32>
    %246 = arith.mulf %241, %245 : vector<2x32xf32>
    %247 = vector.extract_strided_slice %37 {offsets = [7, 0, 0], sizes = [1, 2, 128], strides = [1, 1, 1]} : vector<8x2x128xf32> to vector<1x2x128xf32>
    %248 = vector.shape_cast %247 : vector<1x2x128xf32> to vector<2x128xf32>
    %cst_56 = arith.constant dense<0.000000e+00> : vector<2x128xf32>
    %249 = tpu.matmul %246, %39, %cst_56 {dimension_numbers = #tpu.dot_dimension_numbers<[1], [0], [0], [1], [0, 0, 1, 1], [], []>} : vector<2x32xf32>, vector<32x128xf32>, vector<2x128xf32> -> vector<2x128xf32>
    %250 = arith.addf %248, %249 : vector<2x128xf32>
    %251 = vector.extract_strided_slice %250 {offsets = [0, 0], sizes = [2, 32], strides = [1, 1]} : vector<2x128xf32> to vector<2x32xf32>
    %252 = arith.negf %251 : vector<2x32xf32>
    %253 = math.exp %252 : vector<2x32xf32>
    %cst_57 = arith.constant 1.000000e+00 : f32
    %254 = vector.broadcast %cst_57 : f32 to vector<2x32xf32>
    %255 = arith.addf %254, %253 : vector<2x32xf32>
    %256 = arith.divf %254, %255 : vector<2x32xf32>
    %257 = vector.extract_strided_slice %250 {offsets = [0, 32], sizes = [2, 32], strides = [1, 1]} : vector<2x128xf32> to vector<2x32xf32>
    %258 = arith.negf %257 : vector<2x32xf32>
    %259 = math.exp %258 : vector<2x32xf32>
    %cst_58 = arith.constant 1.000000e+00 : f32
    %260 = vector.broadcast %cst_58 : f32 to vector<2x32xf32>
    %261 = arith.addf %260, %259 : vector<2x32xf32>
    %262 = arith.divf %260, %261 : vector<2x32xf32>
    %263 = vector.extract_strided_slice %250 {offsets = [0, 64], sizes = [2, 32], strides = [1, 1]} : vector<2x128xf32> to vector<2x32xf32>
    %264 = math.tanh %263 : vector<2x32xf32>
    %265 = vector.extract_strided_slice %250 {offsets = [0, 96], sizes = [2, 32], strides = [1, 1]} : vector<2x128xf32> to vector<2x32xf32>
    %266 = arith.negf %265 : vector<2x32xf32>
    %267 = math.exp %266 : vector<2x32xf32>
    %cst_59 = arith.constant 1.000000e+00 : f32
    %268 = vector.broadcast %cst_59 : f32 to vector<2x32xf32>
    %269 = arith.addf %268, %267 : vector<2x32xf32>
    %270 = arith.divf %268, %269 : vector<2x32xf32>
    %271 = arith.mulf %262, %244 : vector<2x32xf32>
    %272 = arith.mulf %256, %264 : vector<2x32xf32>
    %273 = arith.addf %271, %272 : vector<2x32xf32>
    %274 = math.tanh %273 : vector<2x32xf32>
    %275 = arith.mulf %270, %274 : vector<2x32xf32>
    %c1 = arith.constant 1 : index
    %c0_60 = arith.constant 0 : index
    %c0_61 = arith.constant 0 : index
    %276 = vector.load %arg12[%c1, %c0_60, %c0_61] : memref<2x2x32xf32, #tpu.memory_space<vmem>>, vector<1x2x32xf32>
    %277 = vector.shape_cast %276 : vector<1x2x32xf32> to vector<2x32xf32>
    %278 = vector.shape_cast %275 : vector<2x32xf32> to vector<1x2x32xf32>
    tpu.vector_store %arg12[%c1, %c0_60, %c0_61], %278 {strides = array<i32>} : memref<2x2x32xf32, #tpu.memory_space<vmem>>, vector<1x2x32xf32>,
    %c1_62 = arith.constant 1 : index
    %c0_63 = arith.constant 0 : index
    %c0_64 = arith.constant 0 : index
    %279 = vector.load %arg13[%c1_62, %c0_63, %c0_64] : memref<2x2x32xf32, #tpu.memory_space<vmem>>, vector<1x2x32xf32>
    %280 = vector.shape_cast %279 : vector<1x2x32xf32> to vector<2x32xf32>
    %281 = vector.shape_cast %273 : vector<2x32xf32> to vector<1x2x32xf32>
    tpu.vector_store %arg13[%c1_62, %c0_63, %c0_64], %281 {strides = array<i32>} : memref<2x2x32xf32, #tpu.memory_space<vmem>>, vector<1x2x32xf32>,
    %282 = vector.shape_cast %72 : vector<2x32xf32> to vector<1x2x32xf32>
    %283 = vector.shape_cast %101 : vector<2x32xf32> to vector<1x2x32xf32>
    %284 = vector.shape_cast %130 : vector<2x32xf32> to vector<1x2x32xf32>
    %285 = vector.shape_cast %159 : vector<2x32xf32> to vector<1x2x32xf32>
    %286 = vector.shape_cast %188 : vector<2x32xf32> to vector<1x2x32xf32>
    %287 = vector.shape_cast %217 : vector<2x32xf32> to vector<1x2x32xf32>
    %288 = vector.shape_cast %246 : vector<2x32xf32> to vector<1x2x32xf32>
    %289 = vector.shape_cast %275 : vector<2x32xf32> to vector<1x2x32xf32>
    %290 = tpu.concatenate %282, %283, %284, %285, %286, %287, %288, %289 in 0 : vector<1x2x32xf32>, vector<1x2x32xf32>, vector<1x2x32xf32>, vector<1x2x32xf32>, vector<1x2x32xf32>, vector<1x2x32xf32>, vector<1x2x32xf32>, vector<1x2x32xf32> -> vector<8x2x32xf32>
    %291 = vector.shape_cast %290 : vector<8x2x32xf32> to vector<16x32xf32>
    %cst_65 = arith.constant dense<0.000000e+00> : vector<8x2xf32>
    %292 = vector.multi_reduction <add>, %290, %cst_65 [2] : vector<8x2x32xf32> to vector<8x2xf32>
    %293 = vector.shape_cast %292 : vector<8x2xf32> to vector<8x2x1xf32>
    %cst_66 = arith.constant 3.200000e+01 : f32
    %294 = vector.broadcast %cst_66 : f32 to vector<8x2x1xf32>
    %295 = arith.divf %293, %294 : vector<8x2x1xf32>
    %296 = vector.broadcast %295 : vector<8x2x1xf32> to vector<8x2x32xf32>
    %297 = arith.subf %290, %296 : vector<8x2x32xf32>
    %298 = arith.mulf %297, %297 : vector<8x2x32xf32>
    %cst_67 = arith.constant dense<0.000000e+00> : vector<8x2xf32>
    %299 = vector.multi_reduction <add>, %298, %cst_67 [2] : vector<8x2x32xf32> to vector<8x2xf32>
    %300 = vector.shape_cast %299 : vector<8x2xf32> to vector<8x2x1xf32>
    %cst_68 = arith.constant 3.200000e+01 : f32
    %301 = vector.broadcast %cst_68 : f32 to vector<8x2x1xf32>
    %302 = arith.divf %300, %301 : vector<8x2x1xf32>
    %303 = vector.broadcast %295 : vector<8x2x1xf32> to vector<8x2x32xf32>
    %304 = arith.subf %290, %303 : vector<8x2x32xf32>
    %cst_69 = arith.constant 9.99999974E-6 : f32
    %305 = vector.broadcast %cst_69 : f32 to vector<8x2x1xf32>
    %306 = arith.addf %302, %305 : vector<8x2x1xf32>
    %307 = math.rsqrt %306 : vector<8x2x1xf32>
    %308 = vector.broadcast %307 : vector<8x2x1xf32> to vector<8x2x32xf32>
    %309 = arith.mulf %304, %308 : vector<8x2x32xf32>
    %c1_70 = arith.constant 1 : index
    %c0_71 = arith.constant 0 : index
    %c0_72 = arith.constant 0 : index
    %310 = vector.load %arg1[%c1_70, %c0_71, %c0_72] : memref<2x1x32xf32, #tpu.memory_space<vmem>>, vector<1x1x32xf32>
    %311 = vector.shape_cast %310 : vector<1x1x32xf32> to vector<1x32xf32>
    %312 = vector.shape_cast %311 : vector<1x32xf32> to vector<1x1x32xf32>
    %313 = vector.broadcast %312 : vector<1x1x32xf32> to vector<8x2x32xf32>
    %314 = arith.mulf %309, %313 : vector<8x2x32xf32>
    %c1_73 = arith.constant 1 : index
    %c0_74 = arith.constant 0 : index
    %c0_75 = arith.constant 0 : index
    %315 = vector.load %arg2[%c1_73, %c0_74, %c0_75] : memref<2x1x32xf32, #tpu.memory_space<vmem>>, vector<1x1x32xf32>
    %316 = vector.shape_cast %315 : vector<1x1x32xf32> to vector<1x32xf32>
    %317 = vector.shape_cast %316 : vector<1x32xf32> to vector<1x1x32xf32>
    %318 = vector.broadcast %317 : vector<1x1x32xf32> to vector<8x2x32xf32>
    %319 = arith.addf %314, %318 : vector<8x2x32xf32>
    %320 = vector.shape_cast %319 : vector<8x2x32xf32> to vector<16x32xf32>
    %c1_76 = arith.constant 1 : index
    %c0_77 = arith.constant 0 : index
    %c0_78 = arith.constant 0 : index
    %321 = vector.load %arg3[%c1_76, %c0_77, %c0_78] : memref<2x32x128xf32, #tpu.memory_space<vmem>>, vector<1x32x128xf32>
    %322 = vector.shape_cast %321 : vector<1x32x128xf32> to vector<32x128xf32>
    %cst_79 = arith.constant dense<0.000000e+00> : vector<16x128xf32>
    %323 = tpu.matmul %320, %322, %cst_79 {dimension_numbers = #tpu.dot_dimension_numbers<[1], [0], [0], [1], [0, 0, 1, 1], [], []>} : vector<16x32xf32>, vector<32x128xf32>, vector<16x128xf32> -> vector<16x128xf32>
    %c1_80 = arith.constant 1 : index
    %c0_81 = arith.constant 0 : index
    %c0_82 = arith.constant 0 : index
    %324 = vector.load %arg5[%c1_80, %c0_81, %c0_82] : memref<2x1x128xf32, #tpu.memory_space<vmem>>, vector<1x1x128xf32>
    %325 = vector.shape_cast %324 : vector<1x1x128xf32> to vector<1x128xf32>
    %326 = vector.broadcast %325 : vector<1x128xf32> to vector<16x128xf32>
    %327 = arith.addf %323, %326 : vector<16x128xf32>
    %328 = vector.shape_cast %327 : vector<16x128xf32> to vector<8x2x128xf32>
    %c1_83 = arith.constant 1 : index
    %c0_84 = arith.constant 0 : index
    %c0_85 = arith.constant 0 : index
    %329 = vector.load %arg4[%c1_83, %c0_84, %c0_85] : memref<2x32x128xf32, #tpu.memory_space<vmem>>, vector<1x32x128xf32>
    %330 = vector.shape_cast %329 : vector<1x32x128xf32> to vector<32x128xf32>
    %c1_86 = arith.constant 1 : index
    %c0_87 = arith.constant 0 : index
    %c0_88 = arith.constant 0 : index
    %331 = vector.load %arg6[%c1_86, %c0_87, %c0_88] : memref<2x2x32xf32, #tpu.memory_space<vmem>>, vector<1x2x32xf32>
    %332 = vector.shape_cast %331 : vector<1x2x32xf32> to vector<2x32xf32>
    %c1_89 = arith.constant 1 : index
    %c0_90 = arith.constant 0 : index
    %c0_91 = arith.constant 0 : index
    %333 = vector.load %arg7[%c1_89, %c0_90, %c0_91] : memref<2x2x32xf32, #tpu.memory_space<vmem>>, vector<1x2x32xf32>
    %334 = vector.shape_cast %333 : vector<1x2x32xf32> to vector<2x32xf32>
    %335 = vector.extract_strided_slice %328 {offsets = [0, 0, 0], sizes = [1, 2, 128], strides = [1, 1, 1]} : vector<8x2x128xf32> to vector<1x2x128xf32>
    %336 = vector.shape_cast %335 : vector<1x2x128xf32> to vector<2x128xf32>
    %cst_92 = arith.constant dense<0.000000e+00> : vector<2x128xf32>
    %337 = tpu.matmul %332, %330, %cst_92 {dimension_numbers = #tpu.dot_dimension_numbers<[1], [0], [0], [1], [0, 0, 1, 1], [], []>} : vector<2x32xf32>, vector<32x128xf32>, vector<2x128xf32> -> vector<2x128xf32>
    %338 = arith.addf %336, %337 : vector<2x128xf32>
    %339 = vector.extract_strided_slice %338 {offsets = [0, 0], sizes = [2, 32], strides = [1, 1]} : vector<2x128xf32> to vector<2x32xf32>
    %340 = arith.negf %339 : vector<2x32xf32>
    %341 = math.exp %340 : vector<2x32xf32>
    %cst_93 = arith.constant 1.000000e+00 : f32
    %342 = vector.broadcast %cst_93 : f32 to vector<2x32xf32>
    %343 = arith.addf %342, %341 : vector<2x32xf32>
    %344 = arith.divf %342, %343 : vector<2x32xf32>
    %345 = vector.extract_strided_slice %338 {offsets = [0, 32], sizes = [2, 32], strides = [1, 1]} : vector<2x128xf32> to vector<2x32xf32>
    %346 = arith.negf %345 : vector<2x32xf32>
    %347 = math.exp %346 : vector<2x32xf32>
    %cst_94 = arith.constant 1.000000e+00 : f32
    %348 = vector.broadcast %cst_94 : f32 to vector<2x32xf32>
    %349 = arith.addf %348, %347 : vector<2x32xf32>
    %350 = arith.divf %348, %349 : vector<2x32xf32>
    %351 = vector.extract_strided_slice %338 {offsets = [0, 64], sizes = [2, 32], strides = [1, 1]} : vector<2x128xf32> to vector<2x32xf32>
    %352 = math.tanh %351 : vector<2x32xf32>
    %353 = vector.extract_strided_slice %338 {offsets = [0, 96], sizes = [2, 32], strides = [1, 1]} : vector<2x128xf32> to vector<2x32xf32>
    %354 = arith.negf %353 : vector<2x32xf32>
    %355 = math.exp %354 : vector<2x32xf32>
    %cst_95 = arith.constant 1.000000e+00 : f32
    %356 = vector.broadcast %cst_95 : f32 to vector<2x32xf32>
    %357 = arith.addf %356, %355 : vector<2x32xf32>
    %358 = arith.divf %356, %357 : vector<2x32xf32>
    %359 = arith.mulf %350, %334 : vector<2x32xf32>
    %360 = arith.mulf %344, %352 : vector<2x32xf32>
    %361 = arith.addf %359, %360 : vector<2x32xf32>
    %362 = math.tanh %361 : vector<2x32xf32>
    %363 = arith.mulf %358, %362 : vector<2x32xf32>
    %364 = vector.extract_strided_slice %328 {offsets = [1, 0, 0], sizes = [1, 2, 128], strides = [1, 1, 1]} : vector<8x2x128xf32> to vector<1x2x128xf32>
    %365 = vector.shape_cast %364 : vector<1x2x128xf32> to vector<2x128xf32>
    %cst_96 = arith.constant dense<0.000000e+00> : vector<2x128xf32>
    %366 = tpu.matmul %363, %330, %cst_96 {dimension_numbers = #tpu.dot_dimension_numbers<[1], [0], [0], [1], [0, 0, 1, 1], [], []>} : vector<2x32xf32>, vector<32x128xf32>, vector<2x128xf32> -> vector<2x128xf32>
    %367 = arith.addf %365, %366 : vector<2x128xf32>
    %368 = vector.extract_strided_slice %367 {offsets = [0, 0], sizes = [2, 32], strides = [1, 1]} : vector<2x128xf32> to vector<2x32xf32>
    %369 = arith.negf %368 : vector<2x32xf32>
    %370 = math.exp %369 : vector<2x32xf32>
    %cst_97 = arith.constant 1.000000e+00 : f32
    %371 = vector.broadcast %cst_97 : f32 to vector<2x32xf32>
    %372 = arith.addf %371, %370 : vector<2x32xf32>
    %373 = arith.divf %371, %372 : vector<2x32xf32>
    %374 = vector.extract_strided_slice %367 {offsets = [0, 32], sizes = [2, 32], strides = [1, 1]} : vector<2x128xf32> to vector<2x32xf32>
    %375 = arith.negf %374 : vector<2x32xf32>
    %376 = math.exp %375 : vector<2x32xf32>
    %cst_98 = arith.constant 1.000000e+00 : f32
    %377 = vector.broadcast %cst_98 : f32 to vector<2x32xf32>
    %378 = arith.addf %377, %376 : vector<2x32xf32>
    %379 = arith.divf %377, %378 : vector<2x32xf32>
    %380 = vector.extract_strided_slice %367 {offsets = [0, 64], sizes = [2, 32], strides = [1, 1]} : vector<2x128xf32> to vector<2x32xf32>
    %381 = math.tanh %380 : vector<2x32xf32>
    %382 = vector.extract_strided_slice %367 {offsets = [0, 96], sizes = [2, 32], strides = [1, 1]} : vector<2x128xf32> to vector<2x32xf32>
    %383 = arith.negf %382 : vector<2x32xf32>
    %384 = math.exp %383 : vector<2x32xf32>
    %cst_99 = arith.constant 1.000000e+00 : f32
    %385 = vector.broadcast %cst_99 : f32 to vector<2x32xf32>
    %386 = arith.addf %385, %384 : vector<2x32xf32>
    %387 = arith.divf %385, %386 : vector<2x32xf32>
    %388 = arith.mulf %379, %361 : vector<2x32xf32>
    %389 = arith.mulf %373, %381 : vector<2x32xf32>
    %390 = arith.addf %388, %389 : vector<2x32xf32>
    %391 = math.tanh %390 : vector<2x32xf32>
    %392 = arith.mulf %387, %391 : vector<2x32xf32>
    %393 = vector.extract_strided_slice %328 {offsets = [2, 0, 0], sizes = [1, 2, 128], strides = [1, 1, 1]} : vector<8x2x128xf32> to vector<1x2x128xf32>
    %394 = vector.shape_cast %393 : vector<1x2x128xf32> to vector<2x128xf32>
    %cst_100 = arith.constant dense<0.000000e+00> : vector<2x128xf32>
    %395 = tpu.matmul %392, %330, %cst_100 {dimension_numbers = #tpu.dot_dimension_numbers<[1], [0], [0], [1], [0, 0, 1, 1], [], []>} : vector<2x32xf32>, vector<32x128xf32>, vector<2x128xf32> -> vector<2x128xf32>
    %396 = arith.addf %394, %395 : vector<2x128xf32>
    %397 = vector.extract_strided_slice %396 {offsets = [0, 0], sizes = [2, 32], strides = [1, 1]} : vector<2x128xf32> to vector<2x32xf32>
    %398 = arith.negf %397 : vector<2x32xf32>
    %399 = math.exp %398 : vector<2x32xf32>
    %cst_101 = arith.constant 1.000000e+00 : f32
    %400 = vector.broadcast %cst_101 : f32 to vector<2x32xf32>
    %401 = arith.addf %400, %399 : vector<2x32xf32>
    %402 = arith.divf %400, %401 : vector<2x32xf32>
    %403 = vector.extract_strided_slice %396 {offsets = [0, 32], sizes = [2, 32], strides = [1, 1]} : vector<2x128xf32> to vector<2x32xf32>
    %404 = arith.negf %403 : vector<2x32xf32>
    %405 = math.exp %404 : vector<2x32xf32>
    %cst_102 = arith.constant 1.000000e+00 : f32
    %406 = vector.broadcast %cst_102 : f32 to vector<2x32xf32>
    %407 = arith.addf %406, %405 : vector<2x32xf32>
    %408 = arith.divf %406, %407 : vector<2x32xf32>
    %409 = vector.extract_strided_slice %396 {offsets = [0, 64], sizes = [2, 32], strides = [1, 1]} : vector<2x128xf32> to vector<2x32xf32>
    %410 = math.tanh %409 : vector<2x32xf32>
    %411 = vector.extract_strided_slice %396 {offsets = [0, 96], sizes = [2, 32], strides = [1, 1]} : vector<2x128xf32> to vector<2x32xf32>
    %412 = arith.negf %411 : vector<2x32xf32>
    %413 = math.exp %412 : vector<2x32xf32>
    %cst_103 = arith.constant 1.000000e+00 : f32
    %414 = vector.broadcast %cst_103 : f32 to vector<2x32xf32>
    %415 = arith.addf %414, %413 : vector<2x32xf32>
    %416 = arith.divf %414, %415 : vector<2x32xf32>
    %417 = arith.mulf %408, %390 : vector<2x32xf32>
    %418 = arith.mulf %402, %410 : vector<2x32xf32>
    %419 = arith.addf %417, %418 : vector<2x32xf32>
    %420 = math.tanh %419 : vector<2x32xf32>
    %421 = arith.mulf %416, %420 : vector<2x32xf32>
    %422 = vector.extract_strided_slice %328 {offsets = [3, 0, 0], sizes = [1, 2, 128], strides = [1, 1, 1]} : vector<8x2x128xf32> to vector<1x2x128xf32>
    %423 = vector.shape_cast %422 : vector<1x2x128xf32> to vector<2x128xf32>
    %cst_104 = arith.constant dense<0.000000e+00> : vector<2x128xf32>
    %424 = tpu.matmul %421, %330, %cst_104 {dimension_numbers = #tpu.dot_dimension_numbers<[1], [0], [0], [1], [0, 0, 1, 1], [], []>} : vector<2x32xf32>, vector<32x128xf32>, vector<2x128xf32> -> vector<2x128xf32>
    %425 = arith.addf %423, %424 : vector<2x128xf32>
    %426 = vector.extract_strided_slice %425 {offsets = [0, 0], sizes = [2, 32], strides = [1, 1]} : vector<2x128xf32> to vector<2x32xf32>
    %427 = arith.negf %426 : vector<2x32xf32>
    %428 = math.exp %427 : vector<2x32xf32>
    %cst_105 = arith.constant 1.000000e+00 : f32
    %429 = vector.broadcast %cst_105 : f32 to vector<2x32xf32>
    %430 = arith.addf %429, %428 : vector<2x32xf32>
    %431 = arith.divf %429, %430 : vector<2x32xf32>
    %432 = vector.extract_strided_slice %425 {offsets = [0, 32], sizes = [2, 32], strides = [1, 1]} : vector<2x128xf32> to vector<2x32xf32>
    %433 = arith.negf %432 : vector<2x32xf32>
    %434 = math.exp %433 : vector<2x32xf32>
    %cst_106 = arith.constant 1.000000e+00 : f32
    %435 = vector.broadcast %cst_106 : f32 to vector<2x32xf32>
    %436 = arith.addf %435, %434 : vector<2x32xf32>
    %437 = arith.divf %435, %436 : vector<2x32xf32>
    %438 = vector.extract_strided_slice %425 {offsets = [0, 64], sizes = [2, 32], strides = [1, 1]} : vector<2x128xf32> to vector<2x32xf32>
    %439 = math.tanh %438 : vector<2x32xf32>
    %440 = vector.extract_strided_slice %425 {offsets = [0, 96], sizes = [2, 32], strides = [1, 1]} : vector<2x128xf32> to vector<2x32xf32>
    %441 = arith.negf %440 : vector<2x32xf32>
    %442 = math.exp %441 : vector<2x32xf32>
    %cst_107 = arith.constant 1.000000e+00 : f32
    %443 = vector.broadcast %cst_107 : f32 to vector<2x32xf32>
    %444 = arith.addf %443, %442 : vector<2x32xf32>
    %445 = arith.divf %443, %444 : vector<2x32xf32>
    %446 = arith.mulf %437, %419 : vector<2x32xf32>
    %447 = arith.mulf %431, %439 : vector<2x32xf32>
    %448 = arith.addf %446, %447 : vector<2x32xf32>
    %449 = math.tanh %448 : vector<2x32xf32>
    %450 = arith.mulf %445, %449 : vector<2x32xf32>
    %451 = vector.extract_strided_slice %328 {offsets = [4, 0, 0], sizes = [1, 2, 128], strides = [1, 1, 1]} : vector<8x2x128xf32> to vector<1x2x128xf32>
    %452 = vector.shape_cast %451 : vector<1x2x128xf32> to vector<2x128xf32>
    %cst_108 = arith.constant dense<0.000000e+00> : vector<2x128xf32>
    %453 = tpu.matmul %450, %330, %cst_108 {dimension_numbers = #tpu.dot_dimension_numbers<[1], [0], [0], [1], [0, 0, 1, 1], [], []>} : vector<2x32xf32>, vector<32x128xf32>, vector<2x128xf32> -> vector<2x128xf32>
    %454 = arith.addf %452, %453 : vector<2x128xf32>
    %455 = vector.extract_strided_slice %454 {offsets = [0, 0], sizes = [2, 32], strides = [1, 1]} : vector<2x128xf32> to vector<2x32xf32>
    %456 = arith.negf %455 : vector<2x32xf32>
    %457 = math.exp %456 : vector<2x32xf32>
    %cst_109 = arith.constant 1.000000e+00 : f32
    %458 = vector.broadcast %cst_109 : f32 to vector<2x32xf32>
    %459 = arith.addf %458, %457 : vector<2x32xf32>
    %460 = arith.divf %458, %459 : vector<2x32xf32>
    %461 = vector.extract_strided_slice %454 {offsets = [0, 32], sizes = [2, 32], strides = [1, 1]} : vector<2x128xf32> to vector<2x32xf32>
    %462 = arith.negf %461 : vector<2x32xf32>
    %463 = math.exp %462 : vector<2x32xf32>
    %cst_110 = arith.constant 1.000000e+00 : f32
    %464 = vector.broadcast %cst_110 : f32 to vector<2x32xf32>
    %465 = arith.addf %464, %463 : vector<2x32xf32>
    %466 = arith.divf %464, %465 : vector<2x32xf32>
    %467 = vector.extract_strided_slice %454 {offsets = [0, 64], sizes = [2, 32], strides = [1, 1]} : vector<2x128xf32> to vector<2x32xf32>
    %468 = math.tanh %467 : vector<2x32xf32>
    %469 = vector.extract_strided_slice %454 {offsets = [0, 96], sizes = [2, 32], strides = [1, 1]} : vector<2x128xf32> to vector<2x32xf32>
    %470 = arith.negf %469 : vector<2x32xf32>
    %471 = math.exp %470 : vector<2x32xf32>
    %cst_111 = arith.constant 1.000000e+00 : f32
    %472 = vector.broadcast %cst_111 : f32 to vector<2x32xf32>
    %473 = arith.addf %472, %471 : vector<2x32xf32>
    %474 = arith.divf %472, %473 : vector<2x32xf32>
    %475 = arith.mulf %466, %448 : vector<2x32xf32>
    %476 = arith.mulf %460, %468 : vector<2x32xf32>
    %477 = arith.addf %475, %476 : vector<2x32xf32>
    %478 = math.tanh %477 : vector<2x32xf32>
    %479 = arith.mulf %474, %478 : vector<2x32xf32>
    %480 = vector.extract_strided_slice %328 {offsets = [5, 0, 0], sizes = [1, 2, 128], strides = [1, 1, 1]} : vector<8x2x128xf32> to vector<1x2x128xf32>
    %481 = vector.shape_cast %480 : vector<1x2x128xf32> to vector<2x128xf32>
    %cst_112 = arith.constant dense<0.000000e+00> : vector<2x128xf32>
    %482 = tpu.matmul %479, %330, %cst_112 {dimension_numbers = #tpu.dot_dimension_numbers<[1], [0], [0], [1], [0, 0, 1, 1], [], []>} : vector<2x32xf32>, vector<32x128xf32>, vector<2x128xf32> -> vector<2x128xf32>
    %483 = arith.addf %481, %482 : vector<2x128xf32>
    %484 = vector.extract_strided_slice %483 {offsets = [0, 0], sizes = [2, 32], strides = [1, 1]} : vector<2x128xf32> to vector<2x32xf32>
    %485 = arith.negf %484 : vector<2x32xf32>
    %486 = math.exp %485 : vector<2x32xf32>
    %cst_113 = arith.constant 1.000000e+00 : f32
    %487 = vector.broadcast %cst_113 : f32 to vector<2x32xf32>
    %488 = arith.addf %487, %486 : vector<2x32xf32>
    %489 = arith.divf %487, %488 : vector<2x32xf32>
    %490 = vector.extract_strided_slice %483 {offsets = [0, 32], sizes = [2, 32], strides = [1, 1]} : vector<2x128xf32> to vector<2x32xf32>
    %491 = arith.negf %490 : vector<2x32xf32>
    %492 = math.exp %491 : vector<2x32xf32>
    %cst_114 = arith.constant 1.000000e+00 : f32
    %493 = vector.broadcast %cst_114 : f32 to vector<2x32xf32>
    %494 = arith.addf %493, %492 : vector<2x32xf32>
    %495 = arith.divf %493, %494 : vector<2x32xf32>
    %496 = vector.extract_strided_slice %483 {offsets = [0, 64], sizes = [2, 32], strides = [1, 1]} : vector<2x128xf32> to vector<2x32xf32>
    %497 = math.tanh %496 : vector<2x32xf32>
    %498 = vector.extract_strided_slice %483 {offsets = [0, 96], sizes = [2, 32], strides = [1, 1]} : vector<2x128xf32> to vector<2x32xf32>
    %499 = arith.negf %498 : vector<2x32xf32>
    %500 = math.exp %499 : vector<2x32xf32>
    %cst_115 = arith.constant 1.000000e+00 : f32
    %501 = vector.broadcast %cst_115 : f32 to vector<2x32xf32>
    %502 = arith.addf %501, %500 : vector<2x32xf32>
    %503 = arith.divf %501, %502 : vector<2x32xf32>
    %504 = arith.mulf %495, %477 : vector<2x32xf32>
    %505 = arith.mulf %489, %497 : vector<2x32xf32>
    %506 = arith.addf %504, %505 : vector<2x32xf32>
    %507 = math.tanh %506 : vector<2x32xf32>
    %508 = arith.mulf %503, %507 : vector<2x32xf32>
    %509 = vector.extract_strided_slice %328 {offsets = [6, 0, 0], sizes = [1, 2, 128], strides = [1, 1, 1]} : vector<8x2x128xf32> to vector<1x2x128xf32>
    %510 = vector.shape_cast %509 : vector<1x2x128xf32> to vector<2x128xf32>
    %cst_116 = arith.constant dense<0.000000e+00> : vector<2x128xf32>
    %511 = tpu.matmul %508, %330, %cst_116 {dimension_numbers = #tpu.dot_dimension_numbers<[1], [0], [0], [1], [0, 0, 1, 1], [], []>} : vector<2x32xf32>, vector<32x128xf32>, vector<2x128xf32> -> vector<2x128xf32>
    %512 = arith.addf %510, %511 : vector<2x128xf32>
    %513 = vector.extract_strided_slice %512 {offsets = [0, 0], sizes = [2, 32], strides = [1, 1]} : vector<2x128xf32> to vector<2x32xf32>
    %514 = arith.negf %513 : vector<2x32xf32>
    %515 = math.exp %514 : vector<2x32xf32>
    %cst_117 = arith.constant 1.000000e+00 : f32
    %516 = vector.broadcast %cst_117 : f32 to vector<2x32xf32>
    %517 = arith.addf %516, %515 : vector<2x32xf32>
    %518 = arith.divf %516, %517 : vector<2x32xf32>
    %519 = vector.extract_strided_slice %512 {offsets = [0, 32], sizes = [2, 32], strides = [1, 1]} : vector<2x128xf32> to vector<2x32xf32>
    %520 = arith.negf %519 : vector<2x32xf32>
    %521 = math.exp %520 : vector<2x32xf32>
    %cst_118 = arith.constant 1.000000e+00 : f32
    %522 = vector.broadcast %cst_118 : f32 to vector<2x32xf32>
    %523 = arith.addf %522, %521 : vector<2x32xf32>
    %524 = arith.divf %522, %523 : vector<2x32xf32>
    %525 = vector.extract_strided_slice %512 {offsets = [0, 64], sizes = [2, 32], strides = [1, 1]} : vector<2x128xf32> to vector<2x32xf32>
    %526 = math.tanh %525 : vector<2x32xf32>
    %527 = vector.extract_strided_slice %512 {offsets = [0, 96], sizes = [2, 32], strides = [1, 1]} : vector<2x128xf32> to vector<2x32xf32>
    %528 = arith.negf %527 : vector<2x32xf32>
    %529 = math.exp %528 : vector<2x32xf32>
    %cst_119 = arith.constant 1.000000e+00 : f32
    %530 = vector.broadcast %cst_119 : f32 to vector<2x32xf32>
    %531 = arith.addf %530, %529 : vector<2x32xf32>
    %532 = arith.divf %530, %531 : vector<2x32xf32>
    %533 = arith.mulf %524, %506 : vector<2x32xf32>
    %534 = arith.mulf %518, %526 : vector<2x32xf32>
    %535 = arith.addf %533, %534 : vector<2x32xf32>
    %536 = math.tanh %535 : vector<2x32xf32>
    %537 = arith.mulf %532, %536 : vector<2x32xf32>
    %538 = vector.extract_strided_slice %328 {offsets = [7, 0, 0], sizes = [1, 2, 128], strides = [1, 1, 1]} : vector<8x2x128xf32> to vector<1x2x128xf32>
    %539 = vector.shape_cast %538 : vector<1x2x128xf32> to vector<2x128xf32>
    %cst_120 = arith.constant dense<0.000000e+00> : vector<2x128xf32>
    %540 = tpu.matmul %537, %330, %cst_120 {dimension_numbers = #tpu.dot_dimension_numbers<[1], [0], [0], [1], [0, 0, 1, 1], [], []>} : vector<2x32xf32>, vector<32x128xf32>, vector<2x128xf32> -> vector<2x128xf32>
    %541 = arith.addf %539, %540 : vector<2x128xf32>
    %542 = vector.extract_strided_slice %541 {offsets = [0, 0], sizes = [2, 32], strides = [1, 1]} : vector<2x128xf32> to vector<2x32xf32>
    %543 = arith.negf %542 : vector<2x32xf32>
    %544 = math.exp %543 : vector<2x32xf32>
    %cst_121 = arith.constant 1.000000e+00 : f32
    %545 = vector.broadcast %cst_121 : f32 to vector<2x32xf32>
    %546 = arith.addf %545, %544 : vector<2x32xf32>
    %547 = arith.divf %545, %546 : vector<2x32xf32>
    %548 = vector.extract_strided_slice %541 {offsets = [0, 32], sizes = [2, 32], strides = [1, 1]} : vector<2x128xf32> to vector<2x32xf32>
    %549 = arith.negf %548 : vector<2x32xf32>
    %550 = math.exp %549 : vector<2x32xf32>
    %cst_122 = arith.constant 1.000000e+00 : f32
    %551 = vector.broadcast %cst_122 : f32 to vector<2x32xf32>
    %552 = arith.addf %551, %550 : vector<2x32xf32>
    %553 = arith.divf %551, %552 : vector<2x32xf32>
    %554 = vector.extract_strided_slice %541 {offsets = [0, 64], sizes = [2, 32], strides = [1, 1]} : vector<2x128xf32> to vector<2x32xf32>
    %555 = math.tanh %554 : vector<2x32xf32>
    %556 = vector.extract_strided_slice %541 {offsets = [0, 96], sizes = [2, 32], strides = [1, 1]} : vector<2x128xf32> to vector<2x32xf32>
    %557 = arith.negf %556 : vector<2x32xf32>
    %558 = math.exp %557 : vector<2x32xf32>
    %cst_123 = arith.constant 1.000000e+00 : f32
    %559 = vector.broadcast %cst_123 : f32 to vector<2x32xf32>
    %560 = arith.addf %559, %558 : vector<2x32xf32>
    %561 = arith.divf %559, %560 : vector<2x32xf32>
    %562 = arith.mulf %553, %535 : vector<2x32xf32>
    %563 = arith.mulf %547, %555 : vector<2x32xf32>
    %564 = arith.addf %562, %563 : vector<2x32xf32>
    %565 = math.tanh %564 : vector<2x32xf32>
    %566 = arith.mulf %561, %565 : vector<2x32xf32>
    %c0_124 = arith.constant 0 : index
    %c0_125 = arith.constant 0 : index
    %c0_126 = arith.constant 0 : index
    %567 = vector.load %arg12[%c0_124, %c0_125, %c0_126] : memref<2x2x32xf32, #tpu.memory_space<vmem>>, vector<1x2x32xf32>
    %568 = vector.shape_cast %567 : vector<1x2x32xf32> to vector<2x32xf32>
    %569 = vector.shape_cast %566 : vector<2x32xf32> to vector<1x2x32xf32>
    tpu.vector_store %arg12[%c0_124, %c0_125, %c0_126], %569 {strides = array<i32>} : memref<2x2x32xf32, #tpu.memory_space<vmem>>, vector<1x2x32xf32>,
    %c0_127 = arith.constant 0 : index
    %c0_128 = arith.constant 0 : index
    %c0_129 = arith.constant 0 : index
    %570 = vector.load %arg13[%c0_127, %c0_128, %c0_129] : memref<2x2x32xf32, #tpu.memory_space<vmem>>, vector<1x2x32xf32>
    %571 = vector.shape_cast %570 : vector<1x2x32xf32> to vector<2x32xf32>
    %572 = vector.shape_cast %564 : vector<2x32xf32> to vector<1x2x32xf32>
    tpu.vector_store %arg13[%c0_127, %c0_128, %c0_129], %572 {strides = array<i32>} : memref<2x2x32xf32, #tpu.memory_space<vmem>>, vector<1x2x32xf32>,
    %573 = vector.shape_cast %363 : vector<2x32xf32> to vector<1x2x32xf32>
    %574 = vector.shape_cast %392 : vector<2x32xf32> to vector<1x2x32xf32>
    %575 = vector.shape_cast %421 : vector<2x32xf32> to vector<1x2x32xf32>
    %576 = vector.shape_cast %450 : vector<2x32xf32> to vector<1x2x32xf32>
    %577 = vector.shape_cast %479 : vector<2x32xf32> to vector<1x2x32xf32>
    %578 = vector.shape_cast %508 : vector<2x32xf32> to vector<1x2x32xf32>
    %579 = vector.shape_cast %537 : vector<2x32xf32> to vector<1x2x32xf32>
    %580 = vector.shape_cast %566 : vector<2x32xf32> to vector<1x2x32xf32>
    %581 = tpu.concatenate %573, %574, %575, %576, %577, %578, %579, %580 in 0 : vector<1x2x32xf32>, vector<1x2x32xf32>, vector<1x2x32xf32>, vector<1x2x32xf32>, vector<1x2x32xf32>, vector<1x2x32xf32>, vector<1x2x32xf32>, vector<1x2x32xf32> -> vector<8x2x32xf32>
    %582 = vector.shape_cast %581 : vector<8x2x32xf32> to vector<16x32xf32>
    %c0_130 = arith.constant 0 : index
    %c0_131 = arith.constant 0 : index
    %583 = vector.load %arg8[%c0_130, %c0_131] : memref<32x128xf32, #tpu.memory_space<vmem>>, vector<32x128xf32>
    %c0_132 = arith.constant 0 : index
    %c0_133 = arith.constant 0 : index
    %584 = vector.load %arg9[%c0_132, %c0_133] : memref<32x128xf32, #tpu.memory_space<vmem>>, vector<32x128xf32>
    %c0_134 = arith.constant 0 : index
    %c0_135 = arith.constant 0 : index
    %585 = vector.load %arg10[%c0_134, %c0_135] : memref<1x128xf32, #tpu.memory_space<vmem>>, vector<1x128xf32>
    %cst_136 = arith.constant 0.000000e+00 : f32
    %586 = vector.broadcast %cst_136 : f32 to vector<16x32xf32>
    %cst_137 = arith.constant dense<0.000000e+00> : vector<16x128xf32>
    %587 = tpu.matmul %291, %583, %cst_137 {dimension_numbers = #tpu.dot_dimension_numbers<[1], [0], [0], [1], [0, 0, 1, 1], [], []>} : vector<16x32xf32>, vector<32x128xf32>, vector<16x128xf32> -> vector<16x128xf32>
    %588 = vector.broadcast %585 : vector<1x128xf32> to vector<16x128xf32>
    %589 = arith.addf %587, %588 : vector<16x128xf32>
    %590 = vector.extract_strided_slice %589 {offsets = [0, 0], sizes = [16, 32], strides = [1, 1]} : vector<16x128xf32> to vector<16x32xf32>
    %591 = arith.negf %590 : vector<16x32xf32>
    %592 = math.exp %591 : vector<16x32xf32>
    %cst_138 = arith.constant 1.000000e+00 : f32
    %593 = vector.broadcast %cst_138 : f32 to vector<16x32xf32>
    %594 = arith.addf %593, %592 : vector<16x32xf32>
    %595 = arith.divf %593, %594 : vector<16x32xf32>
    %596 = vector.extract_strided_slice %589 {offsets = [0, 32], sizes = [16, 32], strides = [1, 1]} : vector<16x128xf32> to vector<16x32xf32>
    %597 = arith.negf %596 : vector<16x32xf32>
    %598 = math.exp %597 : vector<16x32xf32>
    %cst_139 = arith.constant 1.000000e+00 : f32
    %599 = vector.broadcast %cst_139 : f32 to vector<16x32xf32>
    %600 = arith.addf %599, %598 : vector<16x32xf32>
    %601 = arith.divf %599, %600 : vector<16x32xf32>
    %602 = vector.extract_strided_slice %589 {offsets = [0, 64], sizes = [16, 32], strides = [1, 1]} : vector<16x128xf32> to vector<16x32xf32>
    %603 = math.tanh %602 : vector<16x32xf32>
    %604 = vector.extract_strided_slice %589 {offsets = [0, 96], sizes = [16, 32], strides = [1, 1]} : vector<16x128xf32> to vector<16x32xf32>
    %605 = arith.negf %604 : vector<16x32xf32>
    %606 = math.exp %605 : vector<16x32xf32>
    %cst_140 = arith.constant 1.000000e+00 : f32
    %607 = vector.broadcast %cst_140 : f32 to vector<16x32xf32>
    %608 = arith.addf %607, %606 : vector<16x32xf32>
    %609 = arith.divf %607, %608 : vector<16x32xf32>
    %610 = arith.mulf %601, %586 : vector<16x32xf32>
    %611 = arith.mulf %595, %603 : vector<16x32xf32>
    %612 = arith.addf %610, %611 : vector<16x32xf32>
    %613 = math.tanh %612 : vector<16x32xf32>
    %614 = arith.mulf %609, %613 : vector<16x32xf32>
    %cst_141 = arith.constant dense<0.000000e+00> : vector<16x128xf32>
    %615 = tpu.matmul %582, %583, %cst_141 {dimension_numbers = #tpu.dot_dimension_numbers<[1], [0], [0], [1], [0, 0, 1, 1], [], []>} : vector<16x32xf32>, vector<32x128xf32>, vector<16x128xf32> -> vector<16x128xf32>
    %616 = vector.broadcast %585 : vector<1x128xf32> to vector<16x128xf32>
    %617 = arith.addf %615, %616 : vector<16x128xf32>
    %cst_142 = arith.constant dense<0.000000e+00> : vector<16x128xf32>
    %618 = tpu.matmul %614, %584, %cst_142 {dimension_numbers = #tpu.dot_dimension_numbers<[1], [0], [0], [1], [0, 0, 1, 1], [], []>} : vector<16x32xf32>, vector<32x128xf32>, vector<16x128xf32> -> vector<16x128xf32>
    %619 = arith.addf %617, %618 : vector<16x128xf32>
    %620 = vector.extract_strided_slice %619 {offsets = [0, 0], sizes = [16, 32], strides = [1, 1]} : vector<16x128xf32> to vector<16x32xf32>
    %621 = arith.negf %620 : vector<16x32xf32>
    %622 = math.exp %621 : vector<16x32xf32>
    %cst_143 = arith.constant 1.000000e+00 : f32
    %623 = vector.broadcast %cst_143 : f32 to vector<16x32xf32>
    %624 = arith.addf %623, %622 : vector<16x32xf32>
    %625 = arith.divf %623, %624 : vector<16x32xf32>
    %626 = vector.extract_strided_slice %619 {offsets = [0, 32], sizes = [16, 32], strides = [1, 1]} : vector<16x128xf32> to vector<16x32xf32>
    %627 = arith.negf %626 : vector<16x32xf32>
    %628 = math.exp %627 : vector<16x32xf32>
    %cst_144 = arith.constant 1.000000e+00 : f32
    %629 = vector.broadcast %cst_144 : f32 to vector<16x32xf32>
    %630 = arith.addf %629, %628 : vector<16x32xf32>
    %631 = arith.divf %629, %630 : vector<16x32xf32>
    %632 = vector.extract_strided_slice %619 {offsets = [0, 64], sizes = [16, 32], strides = [1, 1]} : vector<16x128xf32> to vector<16x32xf32>
    %633 = math.tanh %632 : vector<16x32xf32>
    %634 = arith.mulf %631, %612 : vector<16x32xf32>
    %635 = arith.mulf %625, %633 : vector<16x32xf32>
    %636 = arith.addf %634, %635 : vector<16x32xf32>
    %637 = vector.shape_cast %636 : vector<16x32xf32> to vector<8x2x32xf32>
    %638 = arith.addf %637, %581 : vector<8x2x32xf32>
    %c0_145 = arith.constant 0 : index
    %c0_146 = arith.constant 0 : index
    %c0_147 = arith.constant 0 : index
    %639 = vector.load %arg11[%c0_145, %c0_146, %c0_147] : memref<8x2x32xf32, #tpu.memory_space<vmem>>, vector<8x2x32xf32>
    tpu.vector_store %arg11[%c0_145, %c0_146, %c0_147], %638 {strides = array<i32>} : memref<8x2x32xf32, #tpu.memory_space<vmem>>, vector<8x2x32xf32>,
    return
  }
}

</mosaic_0001>

<bundles_post_ra>
// kernel: tpu_custom_call.1
= control target key start
LH: loop header
LB: loop body
LE: loop exit
PB: predicated region body
PF: predicated region fallthrough
CT: control target
= control target key end

     0   :  { %19 = vsyncpa [#allocation3], 0  ;;  %s5003_s0 = inlined_call_operand.hbm [shape: f32[8,2,32], index: 0, kind: input, shape index: {}]   ;;  %s5004_s1 = inlined_call_operand.hbm [shape: f32[2,1,32], index: 1, kind: input, shape index: {}]   ;;  %s5005_s2 = inlined_call_operand.hbm [shape: f32[2,1,32], index: 2, kind: input, shape index: {}]   ;;  %s5006_s3 = inlined_call_operand.hbm [shape: f32[2,32,128], index: 3, kind: input, shape index: {}]   ;;  %s5007_s4 = inlined_call_operand.hbm [shape: f32[2,32,128], index: 4, kind: input, shape index: {}]   ;;  %s5008_s5 = inlined_call_operand.hbm [shape: f32[2,1,128], index: 5, kind: input, shape index: {}]   ;;  %s5009_s6 = inlined_call_operand.vmem [shape: f32[2,2,32], index: 6, kind: input, shape index: {}]   ;;  %s5010_s7 = inlined_call_operand.vmem [shape: f32[2,2,32], index: 7, kind: input, shape index: {}]   ;;  %s5011_s8 = inlined_call_operand.hbm [shape: f32[32,128], index: 8, kind: input, shape index: {}]   ;;  %s5012_s9 = inlined_call_operand.hbm [shape: f32[32,128], index: 9, kind: input, shape index: {}]   ;;  %s5013_s10 = inlined_call_operand.vmem [shape: f32[1,128], index: 10, kind: input, shape index: {}]   ;;  %s5014_s11 = inlined_call_operand.hbm [shape: f32[8,2,32], index: 11, kind: output, shape index: {0}]   ;;  %s5015_s12 = inlined_call_operand.hbm [shape: f32[2,2,32], index: 12, kind: output, shape index: {1}]   ;;  %s5016_s13 = inlined_call_operand.hbm [shape: f32[2,2,32], index: 13, kind: output, shape index: {2}]  }
   0x1   :  { %20 = vsyncpa [#allocation6], 0 }
   0x2   :  { %21 = vsyncpa [#allocation9], 0 }
   0x3   :  { %22 = vsyncpa [#allocation12], 0 }
   0x4   :  { %23 = vsyncpa [#allocation15], 0 }
   0x5   :  { %24 = vsyncpa [#allocation4], 0 }
   0x6   :  { %25 = vsyncpa [#allocation18], 0  ;;  %s4171_s25 = smov [#allocation5]  }
   0x7   :  { %s43_s26 = sshll.u32 %s4171_s25, 4  ;;  %s44_s26 = int_to_ptr.vmem [resolvable:$true] %s43_s26 }
   0x8   :  { %s3945_s27 = scalar_lea.vmem %s44_s26, 32  ;;  %p3950_p1 = scmp.lt.s32.totalorder %s44_s26, %s44_s26 }
   0x9   :  { %p3946_p0 = scmp.ne.s32.totalorder %s44_s26, %s3945_s27  ;;  %p3951_p2 = scmp.lt.s32.totalorder %s3945_s27, %s3945_s27 }
   0xb   :  { %p3952_p3 = por %p3951_p2, %p3950_p1 }
   0xd   :  { %p3953_p4 = pnand %p3952_p3, %p3946_p0 }
   0xf   :  { %3956 = shalt.err (!%p3953_p4)
}
  0x10   :  { %s4172_s28 = smov 16   ;;  %s4173_s29 = smov 1  }
  0x11   :  { %49 = dma.hbm_to_vmem [thread:$0]  %s5004_s1, 32, %s44_s26, [#allocation6], %s4172_s28, %s4172_s28, %s4173_s29  }
  0x12   :  { %s4174_s15 = smov [#allocation8]  }
  0x13   :  { %s67_s16 = sshll.u32 %s4174_s15, 4  ;;  %s68_s16 = int_to_ptr.vmem [resolvable:$true] %s67_s16 }
  0x14   :  { %s3965_s17 = scalar_lea.vmem %s68_s16, 1024  ;;  %p3970_p6 = scmp.lt.s32.totalorder %s68_s16, %s68_s16 }
  0x15   :  { %p3966_p5 = scmp.ne.s32.totalorder %s68_s16, %s3965_s17  ;;  %p3971_p7 = scmp.lt.s32.totalorder %s3965_s17, %s3965_s17 }
  0x17   :  { %p3972_p8 = por %p3971_p7, %p3970_p6 }
  0x19   :  { %p3973_p9 = pnand %p3972_p8, %p3966_p5 }
  0x1b   :  { %3976 = shalt.err (!%p3973_p9)
}
  0x1c   :  { %s4175_s18 = smov 128   ;;  %s4176_s19 = smov 8  }
  0x1d   :  { %73 = dma.hbm_to_vmem [thread:$0]  %s5006_s3, 1024, %s68_s16, [#allocation9], %s4175_s18, %s4175_s18, %s4176_s19  }
  0x1e   :  { %s4177_s1 = smov [#allocation11]   ;;  %s4178_s23 = smov [#allocation2]  }
  0x1f   :  { %s91_s22 = sshll.u32 %s4177_s1, 4  ;;  %s31_s24 = sshll.u32 %s4178_s23, 4  ;;  %s92_s22 = int_to_ptr.vmem [resolvable:$true] %s91_s22  ;;  %s32_s24 = int_to_ptr.vmem [resolvable:$true] %s31_s24 }
  0x20   :  { %s3985_s25 = scalar_lea.vmem %s92_s22, 32  ;;  %p3990_p11 = scmp.lt.s32.totalorder %s92_s22, %s92_s22 }
  0x21   :  { %p3986_p10 = scmp.ne.s32.totalorder %s92_s22, %s3985_s25  ;;  %p3991_p12 = scmp.lt.s32.totalorder %s3985_s25, %s3985_s25 }
  0x23   :  { %p3992_p13 = por %p3991_p12, %p3990_p11 }
  0x25   :  { %p3993_p0 = pnand %p3992_p13, %p3986_p10 }
  0x27   :  { %3996 = shalt.err (!%p3993_p0)
}
  0x28   :  { %97 = dma.hbm_to_vmem [thread:$0]  %s5008_s5, 32, %s92_s22, [#allocation12], %s4172_s28, %s4172_s28, %s4173_s29  }
  0x29   :  { %s4005_s3 = scalar_lea.vmem %s32_s24, 256  ;;  %p4010_p2 = scmp.lt.s32.totalorder %s32_s24, %s32_s24 }
  0x2a   :  { %p4006_p1 = scmp.ne.s32.totalorder %s32_s24, %s4005_s3  ;;  %p4011_p3 = scmp.lt.s32.totalorder %s4005_s3, %s4005_s3 }
  0x2c   :  { %p4012_p4 = por %p4011_p3, %p4010_p2 }
  0x2e   :  { %p4013_p5 = pnand %p4012_p4, %p4006_p1 }
  0x30   :  { %4016 = shalt.err (!%p4013_p5)
}
  0x31   :  { %s4179_s30 = smov 32   ;;  %s4180_s14 = smov 2  }
  0x32   :  { %37 = dma.hbm_to_vmem [thread:$0]  %s5003_s0, 256, %s32_s24, [#allocation3], %s4179_s30, %s4179_s30, %s4180_s14  }
  0x33   :  { %s4181_s17 = smov [#allocation7]   ;;  %s4182_s21 = smov [#allocation10]  }
  0x34   :  { %s55_s20 = sshll.u32 %s4181_s17, 4  ;;  %s79_s5 = sshll.u32 %s4182_s21, 4  ;;  %s56_s20 = int_to_ptr.vmem [resolvable:$true] %s55_s20  ;;  %s80_s5 = int_to_ptr.vmem [resolvable:$true] %s79_s5 }
  0x35   :  { %s4025_s1 = scalar_lea.vmem %s56_s20, 32  ;;  %p4030_p7 = scmp.lt.s32.totalorder %s56_s20, %s56_s20 }
  0x36   :  { %p4026_p6 = scmp.ne.s32.totalorder %s56_s20, %s4025_s1  ;;  %p4031_p8 = scmp.lt.s32.totalorder %s4025_s1, %s4025_s1 }
  0x38   :  { %p4032_p9 = por %p4031_p8, %p4030_p7 }
  0x3a   :  { %p4033_p10 = pnand %p4032_p9, %p4026_p6 }
  0x3c   :  { %4036 = shalt.err (!%p4033_p10)
}
  0x3d   :  { %61 = dma.hbm_to_vmem [thread:$0]  %s5005_s2, 32, %s56_s20, [#allocation6], %s4172_s28, %s4172_s28, %s4173_s29  }
  0x3e   :  { %s4045_s0 = scalar_lea.vmem %s80_s5, 1024  ;;  %p4050_p12 = scmp.lt.s32.totalorder %s80_s5, %s80_s5 }
  0x3f   :  { %p4046_p11 = scmp.ne.s32.totalorder %s80_s5, %s4045_s0  ;;  %p4051_p13 = scmp.lt.s32.totalorder %s4045_s0, %s4045_s0 }
  0x41   :  { %p4052_p0 = por %p4051_p13, %p4050_p12 }
  0x43   :  { %p4053_p1 = pnand %p4052_p0, %p4046_p11 }
  0x45   :  { %4056 = shalt.err (!%p4053_p1)
}
  0x46   :  { %85 = dma.hbm_to_vmem [thread:$0]  %s5007_s4, 1024, %s80_s5, [#allocation9], %s4175_s18, %s4175_s18, %s4176_s19  }
  0x47   :  { %s4183_s26 = smov [#allocation13]   ;;  %s4184_s3 = smov [#allocation14]  }
  0x48   :  { %s107_s27 = sshll.u32 %s4183_s26, 4  ;;  %s119_s15 = sshll.u32 %s4184_s3, 4  ;;  %s108_s27 = int_to_ptr.vmem [resolvable:$true] %s107_s27  ;;  %s120_s15 = int_to_ptr.vmem [resolvable:$true] %s119_s15 }
  0x49   :  { %s4065_s2 = scalar_lea.vmem %s108_s27, 512  ;;  %p4070_p3 = scmp.lt.s32.totalorder %s108_s27, %s108_s27 }
  0x4a   :  { %p4066_p2 = scmp.ne.s32.totalorder %s108_s27, %s4065_s2  ;;  %p4071_p4 = scmp.lt.s32.totalorder %s4065_s2, %s4065_s2 }
  0x4c   :  { %p4072_p5 = por %p4071_p4, %p4070_p3 }
  0x4e   :  { %p4073_p6 = pnand %p4072_p5, %p4066_p2 }
  0x50   :  { %4076 = shalt.err (!%p4073_p6)
}
  0x51   :  { %113 = dma.hbm_to_vmem [thread:$0]  %s5011_s8, 512, %s108_s27, [#allocation12], %s4175_s18, %s4175_s18, %s4176_s19  }
  0x52   :  { %s4085_s4 = scalar_lea.vmem %s120_s15, 512  ;;  %p4090_p8 = scmp.lt.s32.totalorder %s120_s15, %s120_s15 }
  0x53   :  { %p4086_p7 = scmp.ne.s32.totalorder %s120_s15, %s4085_s4  ;;  %p4091_p9 = scmp.lt.s32.totalorder %s4085_s4, %s4085_s4 }
  0x55   :  { %p4092_p10 = por %p4091_p9, %p4090_p8 }
  0x57   :  { %p4093_p11 = pnand %p4092_p10, %p4086_p7 }
  0x59   :  { %4096 = shalt.err (!%p4093_p11)
}
  0x5a   :  { %125 = dma.hbm_to_vmem [thread:$0]  %s5012_s9, 512, %s120_s15, [#allocation15], %s4175_s18, %s4175_s18, %s4176_s19  }
  0x5b   :  { %4157 = dma.done.wait [#allocation3], 256  }
  0x5c   :  { %4158 = vsyncadd [#allocation3], 4294967040 }
  0x5d   :  { %4159 = dma.done.wait [#allocation6], 64  }
  0x5e   :  { %4160 = vsyncadd [#allocation6], 4294967232 }
  0x5f   :  { %4161 = dma.done.wait [#allocation9], 2048  }
  0x60   :  { %4162 = vsyncadd [#allocation9], 4294965248 }
  0x61   :  { %4163 = dma.done.wait [#allocation12], 544  }
  0x62   :  { %4164 = vsyncadd [#allocation12], 4294966752 }
  0x63   :  { %4165 = dma.done.wait [#allocation15], 512  }
  0x64   :  { %4166 = vsyncadd [#allocation15], 4294966784  ;;  %vm160_vm0 = vcmask 254976   ;;  %v152_v0 = vld [vmem:[#allocation2] sm:$0x3]  ;;  %v299_v56 = vld [vmem:[#allocation8 + $0x18] sm:$0xff] }
  0x65   :  { %v154_v1 = vld [vmem:[#allocation2 + $0x4] sm:$0x3]  ;;  %v153_v2 = vld [vmem:[#allocation2 + $0x2] sm:$0x3]  ;;  %v161_v3 = vsel %vm160_vm0, %v152_v0, 0.0  ;;  %3496 = vmatprep.subr.mxu0 %v299_v56  ;;  %v4359_v59 = vld [vmem:[#allocation10 + $0x18] sm:$0xff] }
  0x66   :  { %v167_v4 = vsel %vm160_vm0, %v154_v1, 0.0  ;;  %v155_v5 = vld [vmem:[#allocation2 + $0x6] sm:$0x3]  ;;  %162 = vadd.xlane.f32.xlu0 %v161_v3  ;;  %v164_v6 = vsel %vm160_vm0, %v153_v2, 0.0  ;;  %v156_v8 = vld [vmem:[#allocation2 + $0x8] sm:$0x3]  ;;  %3497 = vmatpush3.msra.mxu0 %v299_v56 }
  0x67   :  { %168 = vadd.xlane.f32.xlu1 %v167_v4  ;;  %v170_v7 = vsel %vm160_vm0, %v155_v5, 0.0  ;;  %v157_v9 = vld [vmem:[#allocation2 + $0xa] sm:$0x3]  ;;  %v173_v10 = vsel %vm160_vm0, %v156_v8, 0.0  ;;  %v158_v12 = vld [vmem:[#allocation2 + $0xc] sm:$0x3] }
  0x68   :  { %v176_v11 = vsel %vm160_vm0, %v157_v9, 0.0  ;;  %v159_v13 = vld [vmem:[#allocation2 + $0xe] sm:$0x3]  ;;  %v179_v14 = vsel %vm160_vm0, %v158_v12, 0.0  ;;  %v298_v57 = vld [vmem:[#allocation8 + $0x10] sm:$0xff]  ;;  %v297_v58 = vld [vmem:[#allocation8 + $0x8] sm:$0xff] }
  0x69   :  { %v182_v15 = vsel %vm160_vm0, %v159_v13, 0.0  ;;  %3498 = vmatprep.subr.mxu0 %v298_v57  ;;  %v4185_v60 = vmov 0.0   ;;  %v4362_v61 = vld [vmem:[#allocation10 + $0x10] sm:$0xff]  ;;  %v296_v62 = vld [vmem:[#allocation8] sm:$0xff]  ;;  %v4369_v63 = vld [vmem:[#allocation10 + $0x8] sm:$0xff]  ;;  %vm4186_vm1 = vmmov 0  }
  0x6a   :  { %165 = vadd.xlane.f32.xlu0 %v164_v6  ;;  %3507 = vmatprep.subr.mxu1 %v4185_v60  ;;  %vm349_vm2 = vcmask 261120   ;;  %s4188_s20 = smov 64   ;;  %s4189_s21 = smov 96  }
  0x6b   :  { %171 = vadd.xlane.f32.xlu1 %v170_v7  ;;  %3499 = vmatpush3.msra.mxu0 %v298_v57  ;;  %s4191_s24 = smov [#allocation19]  }
  0x6c   :  { %3508 = vmatpush3.msra.mxu1 %v4359_v59  ;;  %3500 = vmatprep.subr.mxu0 %v297_v58  ;;  %s3306_s25 = sshll.u32 %s4191_s24, 4  ;;  %s3307_s25 = int_to_ptr.vmem [resolvable:$true] %s3306_s25 }
  0x6d   :  { %3509 = vmatprep.subr.mxu1 %v4185_v60  ;;  %3501 = vmatpush3.msra.mxu0 %v297_v58 }
  0x6e   :  { %174 = vadd.xlane.f32.xlu0 %v173_v10  ;;  %3510 = vmatpush3.msra.mxu1 %v4362_v61 }
  0x6f   :  { %177 = vadd.xlane.f32.xlu1 %v176_v11  ;;  %3502 = vmatprep.subr.mxu0 %v296_v62 }
  0x70   :  { %3511 = vmatprep.subr.mxu1 %v4185_v60  ;;  %3503 = vmatpush3.msra.mxu0 %v296_v62 }
  0x71   :  { %3518 = vmatprep.subr.mxu0 %v4185_v60  ;;  %3512 = vmatpush3.msra.mxu1 %v4369_v63 }
  0x72   :  { %180 = vadd.xlane.f32.xlu0 %v179_v14  ;;  %3515 = vmatprep.mubr.msk.f32.mxu1 %vm4186_vm1, %v4185_v60 }
  0x73   :  { %183 = vadd.xlane.f32.xlu1 %v182_v15  ;;  %3513 = vmatprep.subr.mxu1 %v4185_v60 }
  0xef   :  { %v163_v16 = vpop.xlane.xlu0 %162 }
  0xf0   :  { %v169_v17 = vpop.xlane.xlu1 %168  ;;  %v186_v18 = vmul.f32 0.03125, %v163_v16 }
  0xf1   :  { %v188_v19 = vmul.f32 0.03125, %v169_v17 }
  0xf2   :  { %v4319_v20 = vsub.f32 %v152_v0, %v186_v18  ;;  %v4371_v0 = vld [vmem:[#allocation10] sm:$0xff] }
  0xf3   :  { %v4321_v21 = vsub.f32 %v154_v1, %v188_v19  ;;  %v166_v22 = vpop.xlane.xlu0 %165  ;;  %v477_v1 = vld [vmem:[%s5009_s6] sm:$0x3]  ;;  %3514 = vmatpush3.msra.mxu1 %v4371_v0 }
  0xf4   :  { %v172_v23 = vpop.xlane.xlu1 %171  ;;  %v187_v24 = vmul.f32 0.03125, %v166_v22  ;;  %v202_v26 = vmul.f32 %v4319_v20, %v4319_v20  ;;  %3516 = vmatmul.mubr.msk.f32.vlgmr.msra.gmra.mxu1 %vm349_vm2, %v477_v1  ;;  %3529 = vmatprep.subr.mxu1 %v4185_v60 }
  0xf5   :  { %v189_v25 = vmul.f32 0.03125, %v172_v23  ;;  %v204_v27 = vmul.f32 %v4321_v21, %v4321_v21  ;;  %3530 = vmatpush3.msra.mxu1 %v4359_v59  ;;  %3537 = vmatprep.mubr.msk.f32.mxu1 %vm4186_vm1, %v4185_v60 }
  0xf6   :  { %v4327_v28 = vsub.f32 %v153_v2, %v187_v24  ;;  %v210_v30 = vsel %vm160_vm0, %v202_v26, 0.0  ;;  %v3336_v2 = vld.sshfl [vmem:[%s5010_s7] sm:$0x3 pattern:$0x76325410]  ;;  %3531 = vmatprep.subr.mxu1 %v4185_v60 }
  0xf7   :  { %v4329_v29 = vsub.f32 %v155_v5, %v189_v25  ;;  %211 = vadd.xlane.f32.xlu0 %v210_v30  ;;  %v175_v31 = vpop.xlane.xlu0 %174  ;;  %v216_v33 = vsel %vm160_vm0, %v204_v27, 0.0  ;;  %3532 = vmatpush3.msra.mxu1 %v4362_v61 }
  0xf8   :  { %v178_v32 = vpop.xlane.xlu1 %177  ;;  %v190_v34 = vmul.f32 0.03125, %v175_v31  ;;  %v203_v36 = vmul.f32 %v4327_v28, %v4327_v28  ;;  %3533 = vmatprep.subr.mxu1 %v4185_v60 }
  0xf9   :  { %v191_v35 = vmul.f32 0.03125, %v178_v32  ;;  %v205_v37 = vmul.f32 %v4329_v29, %v4329_v29  ;;  %3534 = vmatpush3.msra.mxu1 %v4369_v63 }
  0xfa   :  { %v4337_v38 = vsub.f32 %v156_v8, %v190_v34  ;;  %v213_v40 = vsel %vm160_vm0, %v203_v36, 0.0  ;;  %3535 = vmatprep.subr.mxu1 %v4185_v60 }
  0xfb   :  { %v4339_v39 = vsub.f32 %v157_v9, %v191_v35  ;;  %217 = vadd.xlane.f32.xlu0 %v216_v33  ;;  %214 = vadd.xlane.f32.xlu1 %v213_v40  ;;  %v181_v41 = vpop.xlane.xlu0 %180  ;;  %v219_v43 = vsel %vm160_vm0, %v205_v37, 0.0  ;;  %v3329_v33 = vld [vmem:[#allocation5] ss:$0 sm:$0xff]  ;;  %v4187_v35 = vmov 1983009808   ;;  %v320_v37 = vlaneseq }
  0xfc   :  { %v184_v42 = vpop.xlane.xlu1 %183  ;;  %v192_v44 = vmul.f32 0.03125, %v181_v41  ;;  %v206_v46 = vmul.f32 %v4337_v38, %v4337_v38  ;;  %3536 = vmatpush3.msra.mxu1 %v4371_v0  ;;  %v318_v36 = vunpack.c.l.s4 %v4187_v35 }
  0xfd   :  { %v193_v45 = vmul.f32 0.03125, %v184_v42  ;;  %v207_v47 = vmul.f32 %v4339_v39, %v4339_v39  ;;  %3551 = vmatprep.subr.mxu1 %v4185_v60 }
  0xfe   :  { %v4347_v48 = vsub.f32 %v158_v12, %v192_v44  ;;  %v222_v50 = vsel %vm160_vm0, %v206_v46, 0.0 }
  0xff   :  { %v4349_v49 = vsub.f32 %v159_v13, %v193_v45  ;;  %220 = vadd.xlane.f32.xlu1 %v219_v43  ;;  %223 = vadd.xlane.f32.xlu0 %v222_v50  ;;  %v225_v51 = vsel %vm160_vm0, %v207_v47, 0.0  ;;  %v3330_v45 = vld [vmem:[#allocation7] ss:$0 sm:$0xff]  ;;  %v319_v47 = vunpack.c.0.s8 %v318_v36  ;;  %v321_v50 = vshrl.u32 %v320_v37, 7 }
 0x100   :  { %v208_v52 = vmul.f32 %v4347_v48, %v4347_v48 }
 0x101   :  { %v209_v53 = vmul.f32 %v4349_v49, %v4349_v49 }
 0x102   :  { %v228_v54 = vsel %vm160_vm0, %v208_v52, 0.0 }
 0x103   :  { %226 = vadd.xlane.f32.xlu1 %v225_v51  ;;  %229 = vadd.xlane.f32.xlu0 %v228_v54  ;;  %v231_v55 = vsel %vm160_vm0, %v209_v53, 0.0 }
 0x107   :  { %232 = vadd.xlane.f32.xlu1 %v231_v55 }
 0x118   :  { %568 = vrot.lane.b32.xlu1 %v3336_v2, %s4179_s30 }
 0x180   :  { %v212_v3 = vpop.xlane.xlu0 %211 }
 0x181   :  { %v234_v4 = vmul.f32 0.03125, %v212_v3 }
 0x183   :  { %v242_v5 = vadd.f32 1e-05, %v234_v4 }
 0x184   :  { %v215_v6 = vpop.xlane.xlu1 %214  ;;  %v218_v7 = vpop.xlane.xlu0 %217 }
 0x185   :  { %3749 = vrsqrt.f32 %v242_v5  ;;  %v235_v8 = vmul.f32 0.03125, %v215_v6  ;;  %v236_v9 = vmul.f32 0.03125, %v218_v7 }
 0x187   :  { %v243_v10 = vadd.f32 1e-05, %v235_v8  ;;  %v244_v11 = vadd.f32 1e-05, %v236_v9 }
 0x188   :  { %v221_v12 = vpop.xlane.xlu1 %220  ;;  %v224_v13 = vpop.xlane.xlu0 %223 }
 0x189   :  { %3751 = vrsqrt.f32 %v243_v10  ;;  %v237_v14 = vmul.f32 0.03125, %v221_v12  ;;  %v238_v15 = vmul.f32 0.03125, %v224_v13 }
 0x18a   :  { %3753 = vrsqrt.f32 %v244_v11 }
 0x18b   :  { %v245_v16 = vadd.f32 1e-05, %v237_v14  ;;  %v246_v17 = vadd.f32 1e-05, %v238_v15 }
 0x18c   :  { %v227_v18 = vpop.xlane.xlu1 %226  ;;  %v230_v19 = vpop.xlane.xlu0 %229 }
 0x18d   :  { %3755 = vrsqrt.f32 %v245_v16  ;;  %v239_v22 = vmul.f32 0.03125, %v227_v18  ;;  %v240_v23 = vmul.f32 0.03125, %v230_v19 }
 0x18e   :  { %3757 = vrsqrt.f32 %v246_v17 }
 0x18f   :  { %v247_v24 = vadd.f32 1e-05, %v239_v22  ;;  %v248_v25 = vadd.f32 1e-05, %v240_v23  ;;  %v3331_v22 = vld [vmem:[#allocation11] ss:$0 sm:$0xff] }
 0x190   :  { %v233_v26 = vpop.xlane.xlu1 %232 }
 0x191   :  { %3759 = vrsqrt.f32 %v247_v24  ;;  %v241_v27 = vmul.f32 0.03125, %v233_v26 }
 0x192   :  { %v3750_v30 = vpop.eup %3749  ;;  %3761 = vrsqrt.f32 %v248_v25 }
 0x193   :  { %v249_v31 = vadd.f32 1e-05, %v241_v27  ;;  %v258_v32 = vmul.f32 %v3750_v30, %v4319_v20 }
 0x195   :  { %3763 = vrsqrt.f32 %v249_v31  ;;  %v273_v43 = vmul.f32 %v3329_v33, %v258_v32 }
 0x196   :  { %v3752_v34 = vpop.eup %3751 }
 0x197   :  { %v3754_v40 = vpop.eup %3753  ;;  %v259_v41 = vmul.f32 %v3752_v34, %v4327_v28  ;;  %v288_v54 = vadd.f32 %v3330_v45, %v273_v43  ;;  %v4402_v28 = vsub.s32 %v319_v47, %v321_v50 }
 0x198   :  { %v260_v42 = vmul.f32 %v3754_v40, %v4321_v21  ;;  %v569_v40 = vpop.permute.xlu1 %568 }
 0x199   :  { %v274_v44 = vmul.f32 %v3329_v33, %v259_v41 }
 0x19a   :  { %v3756_v46 = vpop.eup %3755  ;;  %v275_v52 = vmul.f32 %v3329_v33, %v260_v42 }
 0x19b   :  { %v3758_v51 = vpop.eup %3757  ;;  %v261_v20 = vmul.f32 %v3756_v46, %v4329_v29  ;;  %v289_v53 = vadd.f32 %v3330_v45, %v274_v44 }
 0x19c   :  { %v262_v55 = vmul.f32 %v3758_v51, %v4337_v38  ;;  %v290_v1 = vadd.f32 %v3330_v45, %v275_v52 }
 0x19d   :  { %v276_v56 = vmul.f32 %v3329_v33, %v261_v20  ;;  %v315_v58 = vcombine.low %v288_v54, %v289_v53 }
 0x19e   :  { %v3760_v57 = vpop.eup %3759  ;;  %v277_v5 = vmul.f32 %v3329_v33, %v262_v55 }
 0x19f   :  { %v3762_v21 = vpop.eup %3761  ;;  %v263_v62 = vmul.f32 %v3760_v57, %v4339_v39  ;;  %v291_v2 = vadd.f32 %v3330_v45, %v276_v56  ;;  %v323_v7 = vrot.slane %v315_v58, %v4402_v28 }
 0x1a0   :  { %v264_v3 = vmul.f32 %v3762_v21, %v4347_v48  ;;  %v292_v13 = vadd.f32 %v3330_v45, %v277_v5 }
 0x1a1   :  { %v316_v4 = vcombine.low %v290_v1, %v291_v2  ;;  %v278_v29 = vmul.f32 %v3329_v33, %v263_v62 }
 0x1a2   :  { %v3764_v6 = vpop.eup %3763  ;;  %v279_v9 = vmul.f32 %v3329_v33, %v264_v3 }
 0x1a3   :  { %v265_v38 = vmul.f32 %v3764_v6, %v4349_v49  ;;  %v330_v8 = vrot.slane %v316_v4, %v4402_v28  ;;  %v293_v10 = vadd.f32 %v3330_v45, %v278_v29 }
 0x1a4   :  { %v294_v39 = vadd.f32 %v3330_v45, %v279_v9 }
 0x1a5   :  { %v331_v11 = vcombine.low %v323_v7, %v330_v8  ;;  %v280_v12 = vmul.f32 %v3329_v33, %v265_v38  ;;  %v332_v48 = vcombine.low %v292_v13, %v293_v10 }
 0x1a7   :  { %3504 = vmatprep.mubr.msk.f32.mxu0 %vm349_vm2, %v331_v11  ;;  %v295_v14 = vadd.f32 %v3330_v45, %v280_v12  ;;  %v340_v16 = vrot.slane %v332_v48, %v4402_v28 }
 0x1a9   :  { %v333_v15 = vcombine.low %v294_v39, %v295_v14 }
 0x1ab   :  { %v347_v17 = vrot.slane %v333_v15, %v4402_v28 }
 0x1ad   :  { %v348_v18 = vcombine.low %v340_v16, %v347_v17 }
 0x1af   :  { %3505 = vmatmul.mubr.msk.f32.vlgmr.msra.gmra.mxu0 %vm349_vm2, %v348_v18 }
 0x1b0   :  { %3519 = vmatpush3.msra.mxu0 %v4359_v59  ;;  %3526 = vmatprep.mubr.msk.f32.mxu0 %vm4186_vm1, %v4185_v60 }
 0x1b1   :  { %3520 = vmatprep.subr.mxu0 %v4185_v60 }
 0x1b2   :  { %3521 = vmatpush3.msra.mxu0 %v4362_v61 }
 0x1b3   :  { %3522 = vmatprep.subr.mxu0 %v4185_v60 }
 0x1b4   :  { %3523 = vmatpush3.msra.mxu0 %v4369_v63  ;;  %v548_v49 = vpop.f32.mrf.mxu1 }
 0x1b5   :  { %3524 = vmatprep.subr.mxu0 %v4185_v60 }
 0x1b6   :  { %3525 = vmatpush3.msra.mxu0 %v4371_v0  ;;  %v3517_v19 = vpop.f32.mrf.mxu1 }
 0x1b7   :  { %3540 = vmatprep.subr.mxu0 %v4185_v60 }
 0x26f   :  { %v3506_v23 = vpop.f32.mrf.mxu0 }
 0x270   :  { %v4423_v24 = vadd.f32 %v3506_v23, %v3331_v22 }
 0x271   :  { %v420_v25 = vpop.f32.mrf.mxu0 }
 0x272   :  { %v4425_v26 = vadd.f32 %v3331_v22, %v420_v25 }
 0x274   :  { %v438_v27 = vrot.slane %v4425_v26, %v4402_v28  ;;  %v431_v38 = vcombine.high %v4425_v26, %v4425_v26 }
 0x276   :  { %v552_v30 = vadd.f32 %v548_v49, %v438_v27  ;;  %v446_v51 = vcombine.high %v438_v27, %v438_v27  ;;  %v445_v8 = vrot.slane %v431_v38, %v4402_v28 }
 0x278   :  { %3765 = vtanh.f32 %v552_v30  ;;  %v3335_v32 = vmul.f32 -1.442695, %v552_v30  ;;  %v447_v27 = vcombine.high %v445_v8, %v445_v8 }
 0x27a   :  { %3767 = vpow2.f32 %v3335_v32 }
 0x285   :  { %v3766_v31 = vpop.eup %3765 }
 0x286   :  { %573 = vrot.lane.b32.xlu0 %v3766_v31, %s4188_s20 }
 0x287   :  { %v3768_v33 = vpop.eup %3767 }
 0x288   :  { %v556_v34 = vadd.f32 1.0, %v3768_v33 }
 0x28a   :  { %3769 = vrcp.f32 %v556_v34 }
 0x297   :  { %v3770_v35 = vpop.eup %3769 }
 0x298   :  { %v571_v41 = vmul.f32 %v3770_v35, %v569_v40 }
 0x2f8   :  { %v574_v36 = vpop.permute.xlu0 %573 }
 0x2f9   :  { %v576_v37 = vmul.f32 %v3770_v35, %v574_v36 }
 0x2fb   :  { %578 = vrot.lane.b32.xlu1 %v576_v37, %s4179_s30 }
 0x36d   :  { %v579_v42 = vpop.permute.xlu1 %578 }
 0x36e   :  { %v581_v43 = vadd.f32 %v579_v42, %v571_v41 }
 0x370   :  { %3771 = vtanh.f32 %v581_v43 }
 0x37d   :  { %v3772_v44 = vpop.eup %3771 }
 0x37e   :  { %584 = vrot.lane.b32.xlu1 %v3772_v44, %s4188_s20 }
 0x3f0   :  { %v585_v45 = vpop.permute.xlu1 %584 }
 0x3f1   :  { %v4432_v46 = vmul.f32 %v3770_v35, %v585_v45 }
 0x3f3   :  { %v595_v47 = vrot.slane %v4432_v46, %v4402_v28 }
 0x3f5   :  { %596 = vrot.lane.b32.xlu0 %v595_v47, %s4179_s30 }
 0x467   :  { %v4437_v50 = vpop.permute.xlu0 %596 }
 0x468   :  { %3527 = vmatmul.mubr.msk.f32.vlgmr.msra.gmra.mxu0 %vm349_vm2, %v4437_v50 }
 0x469   :  { %3541 = vmatpush3.msra.mxu0 %v4359_v59  ;;  %3548 = vmatprep.mubr.msk.f32.mxu0 %vm4186_vm1, %v4185_v60 }
 0x46a   :  { %3542 = vmatprep.subr.mxu0 %v4185_v60 }
 0x46b   :  { %3543 = vmatpush3.msra.mxu0 %v4362_v61 }
 0x46c   :  { %3544 = vmatprep.subr.mxu0 %v4185_v60 }
 0x46d   :  { %3545 = vmatpush3.msra.mxu0 %v4369_v63 }
 0x46e   :  { %3546 = vmatprep.subr.mxu0 %v4185_v60 }
 0x46f   :  { %3547 = vmatpush3.msra.mxu0 %v4371_v0 }
 0x470   :  { %3562 = vmatprep.subr.mxu0 %v4185_v60 }
 0x528   :  { %v666_v20 = vpop.f32.mrf.mxu0 }
 0x529   :  { %v670_v52 = vadd.f32 %v666_v20, %v446_v51 }
 0x52a   :  { %v3528_v53 = vpop.f32.mrf.mxu0 }
 0x52b   :  { %3773 = vtanh.f32 %v670_v52  ;;  %v3338_v55 = vmul.f32 -1.442695, %v670_v52  ;;  %v455_v53 = vrot.slane %v4423_v24, %v4402_v28 }
 0x52d   :  { %3775 = vpow2.f32 %v3338_v55 }
 0x538   :  { %v3774_v54 = vpop.eup %3773 }
 0x539   :  { %680 = vrot.lane.b32.xlu1 %v3774_v54, %s4188_s20 }
 0x53a   :  { %v3776_v56 = vpop.eup %3775 }
 0x53b   :  { %v674_v57 = vadd.f32 1.0, %v3776_v56 }
 0x53d   :  { %3777 = vrcp.f32 %v674_v57 }
 0x54a   :  { %v3778_v58 = vpop.eup %3777 }
 0x54b   :  { %v678_v1 = vmul.f32 %v3778_v58, %v581_v43 }
 0x5ab   :  { %v681_v21 = vpop.permute.xlu1 %680 }
 0x5ac   :  { %v683_v62 = vmul.f32 %v3778_v58, %v681_v21 }
 0x5ae   :  { %685 = vrot.lane.b32.xlu0 %v683_v62, %s4179_s30 }
 0x620   :  { %v686_v2 = vpop.permute.xlu0 %685 }
 0x621   :  { %v688_v3 = vadd.f32 %v686_v2, %v678_v1 }
 0x623   :  { %3779 = vtanh.f32 %v688_v3 }
 0x630   :  { %v3780_v4 = vpop.eup %3779 }
 0x631   :  { %691 = vrot.lane.b32.xlu1 %v3780_v4, %s4188_s20 }
 0x6a3   :  { %v692_v5 = vpop.permute.xlu1 %691 }
 0x6a4   :  { %v4454_v29 = vmul.f32 %v3778_v58, %v692_v5 }
 0x6a6   :  { %v702_v6 = vrot.slane %v4454_v29, %v4402_v28 }
 0x6a8   :  { %703 = vrot.lane.b32.xlu0 %v702_v6, %s4179_s30 }
 0x71a   :  { %v4459_v7 = vpop.permute.xlu0 %703 }
 0x71b   :  { %3538 = vmatmul.mubr.msk.f32.vlgmr.msra.gmra.mxu1 %vm349_vm2, %v4459_v7 }
 0x71c   :  { %3552 = vmatpush3.msra.mxu1 %v4359_v59  ;;  %3559 = vmatprep.mubr.msk.f32.mxu1 %vm4186_vm1, %v4185_v60 }
 0x71d   :  { %3553 = vmatprep.subr.mxu1 %v4185_v60 }
 0x71e   :  { %3554 = vmatpush3.msra.mxu1 %v4362_v61 }
 0x71f   :  { %3555 = vmatprep.subr.mxu1 %v4185_v60 }
 0x720   :  { %3556 = vmatpush3.msra.mxu1 %v4369_v63 }
 0x721   :  { %3557 = vmatprep.subr.mxu1 %v4185_v60 }
 0x722   :  { %3558 = vmatpush3.msra.mxu1 %v4371_v0 }
 0x723   :  { %3573 = vmatprep.subr.mxu1 %v4185_v60 }
 0x7db   :  { %v773_v9 = vpop.f32.mrf.mxu1 }
 0x7dc   :  { %v777_v10 = vadd.f32 %v773_v9, %v445_v8 }
 0x7dd   :  { %v3539_v11 = vpop.f32.mrf.mxu1 }
 0x7de   :  { %3781 = vtanh.f32 %v777_v10  ;;  %v3340_v13 = vmul.f32 -1.442695, %v777_v10 }
 0x7e0   :  { %3783 = vpow2.f32 %v3340_v13 }
 0x7eb   :  { %v3782_v12 = vpop.eup %3781 }
 0x7ec   :  { %787 = vrot.lane.b32.xlu1 %v3782_v12, %s4188_s20  ;;  %v463_v12 = vcombine.high %v455_v53, %v455_v53 }
 0x7ed   :  { %v3784_v39 = vpop.eup %3783 }
 0x7ee   :  { %v781_v14 = vadd.f32 1.0, %v3784_v39 }
 0x7f0   :  { %3785 = vrcp.f32 %v781_v14 }
 0x7fd   :  { %v3786_v48 = vpop.eup %3785 }
 0x7fe   :  { %v785_v17 = vmul.f32 %v3786_v48, %v688_v3 }
 0x85e   :  { %v788_v15 = vpop.permute.xlu1 %787 }
 0x85f   :  { %v790_v16 = vmul.f32 %v3786_v48, %v788_v15 }
 0x861   :  { %792 = vrot.lane.b32.xlu0 %v790_v16, %s4179_s30 }
 0x8d3   :  { %v793_v18 = vpop.permute.xlu0 %792 }
 0x8d4   :  { %v795_v49 = vadd.f32 %v793_v18, %v785_v17 }
 0x8d6   :  { %3787 = vtanh.f32 %v795_v49 }
 0x8e3   :  { %v3788_v19 = vpop.eup %3787 }
 0x8e4   :  { %798 = vrot.lane.b32.xlu1 %v3788_v19, %s4188_s20 }
 0x956   :  { %v799_v22 = vpop.permute.xlu1 %798 }
 0x957   :  { %v4479_v23 = vmul.f32 %v3786_v48, %v799_v22 }
 0x959   :  { %v809_v25 = vrot.slane %v4479_v23, %v4402_v28 }
 0x95b   :  { %810 = vrot.lane.b32.xlu0 %v809_v25, %s4179_s30 }
 0x9cd   :  { %v4484_v26 = vpop.permute.xlu0 %810 }
 0x9ce   :  { %3549 = vmatmul.mubr.msk.f32.vlgmr.msra.gmra.mxu0 %vm349_vm2, %v4484_v26 }
 0x9cf   :  { %3563 = vmatpush3.msra.mxu0 %v4359_v59  ;;  %3570 = vmatprep.mubr.msk.f32.mxu0 %vm4186_vm1, %v4185_v60 }
 0x9d0   :  { %3564 = vmatprep.subr.mxu0 %v4185_v60 }
 0x9d1   :  { %3565 = vmatpush3.msra.mxu0 %v4362_v61 }
 0x9d2   :  { %3566 = vmatprep.subr.mxu0 %v4185_v60 }
 0x9d3   :  { %3567 = vmatpush3.msra.mxu0 %v4369_v63 }
 0x9d4   :  { %3568 = vmatprep.subr.mxu0 %v4185_v60 }
 0x9d5   :  { %3569 = vmatpush3.msra.mxu0 %v4371_v0 }
 0x9d6   :  { %3584 = vmatprep.subr.mxu0 %v4185_v60 }
 0xa8e   :  { %v880_v30 = vpop.f32.mrf.mxu0 }
 0xa8f   :  { %v884_v31 = vadd.f32 %v880_v30, %v447_v27 }
 0xa90   :  { %v3550_v32 = vpop.f32.mrf.mxu0 }
 0xa91   :  { %3789 = vtanh.f32 %v884_v31  ;;  %v3342_v34 = vmul.f32 -1.442695, %v884_v31  ;;  %v448_v31 = vcombine.high %v4423_v24, %v4423_v24 }
 0xa93   :  { %3791 = vpow2.f32 %v3342_v34  ;;  %v462_v32 = vrot.slane %v448_v31, %v4402_v28 }
 0xa9e   :  { %v3790_v33 = vpop.eup %3789 }
 0xa9f   :  { %894 = vrot.lane.b32.xlu1 %v3790_v33, %s4188_s20 }
 0xaa0   :  { %v3792_v35 = vpop.eup %3791 }
 0xaa1   :  { %v888_v36 = vadd.f32 1.0, %v3792_v35 }
 0xaa3   :  { %3793 = vrcp.f32 %v888_v36 }
 0xab0   :  { %v3794_v37 = vpop.eup %3793 }
 0xab1   :  { %v892_v42 = vmul.f32 %v3794_v37, %v795_v49 }
 0xb11   :  { %v895_v40 = vpop.permute.xlu1 %894 }
 0xb12   :  { %v897_v41 = vmul.f32 %v3794_v37, %v895_v40 }
 0xb14   :  { %899 = vrot.lane.b32.xlu0 %v897_v41, %s4179_s30 }
 0xb86   :  { %v900_v43 = vpop.permute.xlu0 %899 }
 0xb87   :  { %v902_v44 = vadd.f32 %v900_v43, %v892_v42 }
 0xb89   :  { %3795 = vtanh.f32 %v902_v44 }
 0xb96   :  { %v3796_v45 = vpop.eup %3795 }
 0xb97   :  { %905 = vrot.lane.b32.xlu1 %v3796_v45, %s4188_s20 }
 0xc09   :  { %v906_v47 = vpop.permute.xlu1 %905 }
 0xc0a   :  { %v4501_v51 = vmul.f32 %v3794_v37, %v906_v47 }
 0xc0c   :  { %v916_v20 = vrot.slane %v4501_v51, %v4402_v28 }
 0xc0e   :  { %917 = vrot.lane.b32.xlu0 %v916_v20, %s4179_s30 }
 0xc80   :  { %v4506_v52 = vpop.permute.xlu0 %917 }
 0xc81   :  { %3560 = vmatmul.mubr.msk.f32.vlgmr.msra.gmra.mxu1 %vm349_vm2, %v4506_v52 }
 0xc82   :  { %3574 = vmatpush3.msra.mxu1 %v4359_v59  ;;  %3581 = vmatprep.mubr.msk.f32.mxu1 %vm4186_vm1, %v4185_v60 }
 0xc83   :  { %3575 = vmatprep.subr.mxu1 %v4185_v60 }
 0xc84   :  { %3576 = vmatpush3.msra.mxu1 %v4362_v61 }
 0xc85   :  { %3577 = vmatprep.subr.mxu1 %v4185_v60 }
 0xc86   :  { %3578 = vmatpush3.msra.mxu1 %v4369_v63 }
 0xc87   :  { %3579 = vmatprep.subr.mxu1 %v4185_v60 }
 0xc88   :  { %3580 = vmatpush3.msra.mxu1 %v4371_v0 }
 0xd41   :  { %v987_v54 = vpop.f32.mrf.mxu1 }
 0xd42   :  { %v991_v55 = vadd.f32 %v987_v54, %v455_v53 }
 0xd43   :  { %v3561_v56 = vpop.f32.mrf.mxu1 }
 0xd44   :  { %3797 = vtanh.f32 %v991_v55  ;;  %v3344_v58 = vmul.f32 -1.442695, %v991_v55 }
 0xd46   :  { %3799 = vpow2.f32 %v3344_v58 }
 0xd51   :  { %v3798_v57 = vpop.eup %3797 }
 0xd52   :  { %1001 = vrot.lane.b32.xlu1 %v3798_v57, %s4188_s20  ;;  %v464_v57 = vcombine.high %v462_v32, %v462_v32 }
 0xd53   :  { %v3800_v21 = vpop.eup %3799 }
 0xd54   :  { %v995_v62 = vadd.f32 1.0, %v3800_v21 }
 0xd56   :  { %3801 = vrcp.f32 %v995_v62 }
 0xd63   :  { %v3802_v1 = vpop.eup %3801 }
 0xd64   :  { %v999_v4 = vmul.f32 %v3802_v1, %v902_v44 }
 0xdc4   :  { %v1002_v2 = vpop.permute.xlu1 %1001 }
 0xdc5   :  { %v1004_v3 = vmul.f32 %v3802_v1, %v1002_v2 }
 0xdc7   :  { %1006 = vrot.lane.b32.xlu0 %v1004_v3, %s4179_s30 }
 0xe39   :  { %v1007_v5 = vpop.permute.xlu0 %1006 }
 0xe3a   :  { %v1009_v6 = vadd.f32 %v1007_v5, %v999_v4 }
 0xe3c   :  { %3803 = vtanh.f32 %v1009_v6 }
 0xe49   :  { %v3804_v38 = vpop.eup %3803 }
 0xe4a   :  { %1012 = vrot.lane.b32.xlu1 %v3804_v38, %s4188_s20 }
 0xebc   :  { %v1013_v8 = vpop.permute.xlu1 %1012 }
 0xebd   :  { %v4524_v9 = vmul.f32 %v3802_v1, %v1013_v8 }
 0xebf   :  { %v1023_v10 = vrot.slane %v4524_v9, %v4402_v28 }
 0xec1   :  { %1024 = vrot.lane.b32.xlu0 %v1023_v10, %s4179_s30 }
 0xf33   :  { %v4529_v11 = vpop.permute.xlu0 %1024 }
 0xf34   :  { %3571 = vmatmul.mubr.msk.f32.vlgmr.msra.gmra.mxu0 %vm349_vm2, %v4529_v11 }
 0xf35   :  { %3585 = vmatpush3.msra.mxu0 %v4359_v59  ;;  %3592 = vmatprep.mubr.msk.f32.mxu0 %vm4186_vm1, %v4185_v60 }
 0xf36   :  { %3586 = vmatprep.subr.mxu0 %v4185_v60 }
 0xf37   :  { %3587 = vmatpush3.msra.mxu0 %v4362_v61 }
 0xf38   :  { %3588 = vmatprep.subr.mxu0 %v4185_v60 }
 0xf39   :  { %3589 = vmatpush3.msra.mxu0 %v4369_v63 }
 0xf3a   :  { %3590 = vmatprep.subr.mxu0 %v4185_v60 }
 0xf3b   :  { %3591 = vmatpush3.msra.mxu0 %v4371_v0 }
 0xf3c   :  { %3606 = vmatprep.subr.mxu0 %v4185_v60 }
 0xff4   :  { %v1094_v13 = vpop.f32.mrf.mxu0 }
 0xff5   :  { %v1098_v59 = vadd.f32 %v1094_v13, %v463_v12 }
 0xff6   :  { %v3572_v39 = vpop.f32.mrf.mxu0 }
 0xff7   :  { %3805 = vtanh.f32 %v1098_v59  ;;  %v3346_v48 = vmul.f32 -1.442695, %v1098_v59  ;;  %v1370_v59 = vsel %vm160_vm0, %v4437_v50, 0.0  ;;  %v1382_v39 = vsel %vm160_vm0, %v4529_v11, 0.0 }
 0xff8   :  { %v1376_v50 = vsel %vm160_vm0, %v4484_v26, 0.0  ;;  %v1379_v11 = vsel %vm160_vm0, %v4506_v52, 0.0 }
 0xff9   :  { %3807 = vpow2.f32 %v3346_v48 }
0x1004   :  { %v3806_v14 = vpop.eup %3805 }
0x1005   :  { %1108 = vrot.lane.b32.xlu1 %v3806_v14, %s4188_s20 }
0x1006   :  { %v3808_v61 = vpop.eup %3807 }
0x1007   :  { %v1102_v15 = vadd.f32 1.0, %v3808_v61 }
0x1009   :  { %3809 = vrcp.f32 %v1102_v15 }
0x1016   :  { %v3810_v63 = vpop.eup %3809 }
0x1017   :  { %v1106_v0 = vmul.f32 %v3810_v63, %v1009_v6 }
0x1077   :  { %v1109_v16 = vpop.permute.xlu1 %1108 }
0x1078   :  { %v1111_v17 = vmul.f32 %v3810_v63, %v1109_v16 }
0x107a   :  { %1113 = vrot.lane.b32.xlu0 %v1111_v17, %s4179_s30 }
0x10ec   :  { %v1114_v18 = vpop.permute.xlu0 %1113 }
0x10ed   :  { %v1116_v49 = vadd.f32 %v1114_v18, %v1106_v0 }
0x10ef   :  { %3811 = vtanh.f32 %v1116_v49 }
0x10fc   :  { %v3812_v19 = vpop.eup %3811 }
0x10fd   :  { %1119 = vrot.lane.b32.xlu1 %v3812_v19, %s4188_s20 }
0x116f   :  { %v1120_v22 = vpop.permute.xlu1 %1119 }
0x1170   :  { %v4546_v25 = vmul.f32 %v3810_v63, %v1120_v22  ;;  %v1373_v63 = vsel %vm160_vm0, %v4459_v7, 0.0 }
0x1172   :  { %v1130_v27 = vrot.slane %v4546_v25, %v4402_v28 }
0x1174   :  { %1131 = vrot.lane.b32.xlu0 %v1130_v27, %s4179_s30 }
0x11e6   :  { %v4551_v30 = vpop.permute.xlu0 %1131 }
0x11e7   :  { %3582 = vmatmul.mubr.msk.f32.vlgmr.msra.gmra.mxu1 %vm349_vm2, %v4551_v30  ;;  %v1385_v16 = vsel %vm160_vm0, %v4551_v30, 0.0 }
0x12a7   :  { %v1201_v33 = vpop.f32.mrf.mxu1 }
0x12a8   :  { %v1205_v34 = vadd.f32 %v1201_v33, %v462_v32 }
0x12a9   :  { %v3583_v35 = vpop.f32.mrf.mxu1 }
0x12aa   :  { %3813 = vtanh.f32 %v1205_v34  ;;  %v3348_v37 = vmul.f32 -1.442695, %v1205_v34 }
0x12ac   :  { %3815 = vpow2.f32 %v3348_v37 }
0x12b7   :  { %v3814_v36 = vpop.eup %3813 }
0x12b8   :  { %1215 = vrot.lane.b32.xlu1 %v3814_v36, %s4188_s20 }
0x12b9   :  { %v3816_v40 = vpop.eup %3815 }
0x12ba   :  { %v1209_v41 = vadd.f32 1.0, %v3816_v40 }
0x12bc   :  { %3817 = vrcp.f32 %v1209_v41 }
0x12c9   :  { %v3818_v42 = vpop.eup %3817 }
0x12ca   :  { %v1213_v24 = vmul.f32 %v3818_v42, %v1116_v49 }
0x132a   :  { %v1216_v43 = vpop.permute.xlu1 %1215 }
0x132b   :  { %v1218_v44 = vmul.f32 %v3818_v42, %v1216_v43 }
0x132d   :  { %1220 = vrot.lane.b32.xlu0 %v1218_v44, %s4179_s30 }
0x139f   :  { %v1221_v45 = vpop.permute.xlu0 %1220 }
0x13a0   :  { %v1223_v47 = vadd.f32 %v1221_v45, %v1213_v24 }
0x13a2   :  { %3819 = vtanh.f32 %v1223_v47 }
0x13af   :  { %v3820_v20 = vpop.eup %3819 }
0x13b0   :  { %1226 = vrot.lane.b32.xlu1 %v3820_v20, %s4188_s20 }
0x1422   :  { %v1227_v53 = vpop.permute.xlu1 %1226 }
0x1423   :  { %v4561_v54 = vmul.f32 %v3818_v42, %v1227_v53 }
0x1425   :  { %v1237_v55 = vrot.slane %v4561_v54, %v4402_v28 }
0x1427   :  { %1238 = vrot.lane.b32.xlu0 %v1237_v55, %s4179_s30 }
0x1499   :  { %v1239_v56 = vpop.permute.xlu0 %1238 }
0x149a   :  { %3593 = vmatmul.mubr.msk.f32.vlgmr.msra.gmra.mxu0 %vm349_vm2, %v1239_v56  ;;  %v1388_v14 = vsel %vm160_vm0, %v1239_v56, 0.0 }
0x149b   :  { %3614 = vmatprep.mubr.msk.f32.mxu0 %vm4186_vm1, %v4185_v60 }
0x155a   :  { %v1308_v58 = vpop.f32.mrf.mxu0 }
0x155b   :  { %v1312_v21 = vadd.f32 %v1308_v58, %v464_v57 }
0x155c   :  { %v3594_v62 = vpop.f32.mrf.mxu0 }
0x155d   :  { %3821 = vtanh.f32 %v1312_v21  ;;  %v3350_v2 = vmul.f32 -1.442695, %v1312_v21 }
0x155f   :  { %3823 = vpow2.f32 %v3350_v2 }
0x156a   :  { %v3822_v1 = vpop.eup %3821 }
0x156b   :  { %1322 = vrot.lane.b32.xlu1 %v3822_v1, %s4188_s20 }
0x156c   :  { %v3824_v3 = vpop.eup %3823 }
0x156d   :  { %v1316_v4 = vadd.f32 1.0, %v3824_v3 }
0x156f   :  { %3825 = vrcp.f32 %v1316_v4 }
0x157c   :  { %v3826_v5 = vpop.eup %3825 }
0x157d   :  { %v1320_v8 = vmul.f32 %v3826_v5, %v1223_v47 }
0x15dd   :  { %v1323_v6 = vpop.permute.xlu1 %1322 }
0x15de   :  { %v1325_v38 = vmul.f32 %v3826_v5, %v1323_v6 }
0x15e0   :  { %1327 = vrot.lane.b32.xlu0 %v1325_v38, %s4179_s30 }
0x1652   :  { %v1328_v10 = vpop.permute.xlu0 %1327 }
0x1653   :  { %v4571_v12 = vadd.f32 %v1328_v10, %v1320_v8 }
0x1655   :  { %3827 = vtanh.f32 %v4571_v12 }
0x1662   :  { %v3828_v13 = vpop.eup %3827 }
0x1663   :  { %1333 = vrot.lane.b32.xlu1 %v3828_v13, %s4188_s20 }
0x1687   :  { %1371 = vadd.xlane.f32.xlu1 %v1370_v59 }
0x168b   :  { %1383 = vadd.xlane.f32.xlu1 %v1382_v39 }
0x168f   :  { %1389 = vadd.xlane.f32.xlu1 %v1388_v14 }
0x16d5   :  { %v1334_v48 = vpop.permute.xlu1 %1333 }
0x16d6   :  { %v4580_v61 = vmul.f32 %v3826_v5, %v1334_v48 }
0x16d8   :  { %v1344_v15 = vrot.slane %v4580_v61, %v4402_v28 }
0x16da   :  { %1345 = vrot.lane.b32.xlu0 %v1344_v15, %s4179_s30 }
0x16f9   :  { %1374 = vadd.xlane.f32.xlu0 %v1373_v63 }
0x16fd   :  { %1377 = vadd.xlane.f32.xlu0 %v1376_v50 }
0x1701   :  { %1380 = vadd.xlane.f32.xlu0 %v1379_v11 }
0x1705   :  { %1386 = vadd.xlane.f32.xlu0 %v1385_v16 }
0x1710   :  { %v1372_v17 = vpop.xlane.xlu1 %1371 }
0x1711   :  { %v1394_v0 = vmul.f32 0.03125, %v1372_v17 }
0x1713   :  { %v4594_v18 = vsub.f32 %v4432_v46, %v1394_v0 }
0x1714   :  { %v1384_v27 = vpop.xlane.xlu1 %1383 }
0x1715   :  { %v1410_v7 = vmul.f32 %v4594_v18, %v4594_v18  ;;  %v1398_v34 = vmul.f32 0.03125, %v1384_v27 }
0x1717   :  { %v1432_v49 = vrot.slane %v1410_v7, %v4402_v28  ;;  %v4615_v43 = vsub.f32 %v4524_v9, %v1398_v34 }
0x1718   :  { %v1390_v37 = vpop.xlane.xlu1 %1389 }
0x1719   :  { %1482 = vrot.lane.b32.xlu1 %v1432_v49, %s4179_s30  ;;  %v1400_v44 = vmul.f32 0.03125, %v1390_v37  ;;  %v1414_v58 = vmul.f32 %v4615_v43, %v4615_v43  ;;  %v3351_v49 = vld [vmem:[#allocation5 + $0x1] ss:$0 sm:$0xff] }
0x171b   :  { %v4625_v55 = vsub.f32 %v4561_v54, %v1400_v44  ;;  %v1460_v62 = vrot.slane %v1414_v58, %v4402_v28 }
0x171d   :  { %v1416_v2 = vmul.f32 %v4625_v55, %v4625_v55 }
0x171f   :  { %v1474_v3 = vrot.slane %v1416_v2, %v4402_v28 }
0x174c   :  { %v1346_v26 = vpop.permute.xlu0 %1345 }
0x174d   :  { %1349 = vst.msk [vmem:[#allocation17 + $0x2] sm:$0x3] %vm160_vm0, %v1346_v26  ;;  %v1391_v52 = vsel %vm160_vm0, %v1346_v26, 0.0  ;;  %v1575_v26 = vrot.slane %v3351_v49, %v4402_v28 }
0x174e   :  { %1392 = vadd.xlane.f32.xlu0 %v1391_v52 }
0x1782   :  { %v1375_v19 = vpop.xlane.xlu0 %1374 }
0x1783   :  { %v1395_v22 = vmul.f32 0.03125, %v1375_v19 }
0x1785   :  { %v4603_v30 = vsub.f32 %v4454_v29, %v1395_v22  ;;  %v3352_v22 = vld [vmem:[#allocation7 + $0x1] ss:$0 sm:$0xff] }
0x1786   :  { %v1378_v31 = vpop.xlane.xlu0 %1377  ;;  %v1600_v27 = vrot.slane %v3352_v22, %v4402_v28 }
0x1787   :  { %v1396_v32 = vmul.f32 0.03125, %v1378_v31  ;;  %v1411_v33 = vmul.f32 %v4603_v30, %v4603_v30 }
0x1789   :  { %v4608_v35 = vsub.f32 %v4479_v23, %v1396_v32  ;;  %v1439_v36 = vrot.slane %v1411_v33, %v4402_v28 }
0x178a   :  { %v1381_v40 = vpop.xlane.xlu0 %1380 }
0x178b   :  { %v1397_v41 = vmul.f32 0.03125, %v1381_v40  ;;  %1484 = vrot.lane.b32.xlu0 %v1439_v36, %s4179_s30  ;;  %v1412_v42 = vmul.f32 %v4608_v35, %v4608_v35  ;;  %v1483_v4 = vpop.permute.xlu1 %1482 }
0x178c   :  { %v1506_v5 = vsel %vm160_vm0, %v1483_v4, 0.0 }
0x178d   :  { %v4618_v24 = vsub.f32 %v4501_v51, %v1397_v41  ;;  %v1446_v45 = vrot.slane %v1412_v42, %v4402_v28 }
0x178e   :  { %v1387_v47 = vpop.xlane.xlu0 %1386 }
0x178f   :  { %v1399_v20 = vmul.f32 0.03125, %v1387_v47  ;;  %1486 = vrot.lane.b32.xlu1 %v1446_v45, %s4179_s30  ;;  %v1413_v53 = vmul.f32 %v4618_v24, %v4618_v24 }
0x1791   :  { %v4628_v56 = vsub.f32 %v4546_v25, %v1399_v20  ;;  %v1453_v57 = vrot.slane %v1413_v53, %v4402_v28 }
0x1793   :  { %1488 = vrot.lane.b32.xlu1 %v1453_v57, %s4179_s30  ;;  %v1415_v21 = vmul.f32 %v4628_v56, %v4628_v56 }
0x1795   :  { %v1467_v1 = vrot.slane %v1415_v21, %v4402_v28 }
0x1797   :  { %1490 = vrot.lane.b32.xlu1 %v1460_v62, %s4179_s30  ;;  %1492 = vrot.lane.b32.xlu0 %v1467_v1, %s4179_s30 }
0x179b   :  { %1494 = vrot.lane.b32.xlu1 %v1474_v3, %s4179_s30 }
0x17bf   :  { %1507 = vadd.xlane.f32.xlu1 %v1506_v5 }
0x17d7   :  { %v1393_v6 = vpop.xlane.xlu0 %1392 }
0x17d8   :  { %v1401_v38 = vmul.f32 0.03125, %v1393_v6 }
0x17da   :  { %v4646_v8 = vsub.f32 %v4580_v61, %v1401_v38 }
0x17dc   :  { %v1417_v10 = vmul.f32 %v4646_v8, %v4646_v8 }
0x17de   :  { %v1481_v13 = vrot.slane %v1417_v10, %v4402_v28 }
0x17e0   :  { %1496 = vrot.lane.b32.xlu0 %v1481_v13, %s4179_s30 }
0x17fd   :  { %v1485_v59 = vpop.permute.xlu0 %1484 }
0x17fe   :  { %v1509_v39 = vsel %vm160_vm0, %v1485_v59, 0.0 }
0x17ff   :  { %1510 = vadd.xlane.f32.xlu0 %v1509_v39 }
0x1801   :  { %v1487_v14 = vpop.permute.xlu1 %1486 }
0x1802   :  { %v1512_v48 = vsel %vm160_vm0, %v1487_v14, 0.0 }
0x1803   :  { %1513 = vadd.xlane.f32.xlu0 %v1512_v48 }
0x1805   :  { %v1489_v15 = vpop.permute.xlu1 %1488 }
0x1806   :  { %v1515_v63 = vsel %vm160_vm0, %v1489_v15, 0.0 }
0x1807   :  { %1516 = vadd.xlane.f32.xlu0 %v1515_v63  ;;  %v1616_v63 = vld [vmem:[#allocation8 + $0x38] sm:$0xff] }
0x1808   :  { %3595 = vmatprep.subr.mxu1 %v1616_v63 }
0x1809   :  { %v1491_v50 = vpop.permute.xlu1 %1490  ;;  %v1493_v11 = vpop.permute.xlu0 %1492  ;;  %3596 = vmatpush3.msra.mxu1 %v1616_v63 }
0x180a   :  { %v1518_v16 = vsel %vm160_vm0, %v1491_v50, 0.0  ;;  %v1521_v17 = vsel %vm160_vm0, %v1493_v11, 0.0  ;;  %v1615_v50 = vld [vmem:[#allocation8 + $0x30] sm:$0xff]  ;;  %v4667_v11 = vld [vmem:[#allocation10 + $0x38] sm:$0xff] }
0x180b   :  { %1519 = vadd.xlane.f32.xlu1 %v1518_v16  ;;  %1522 = vadd.xlane.f32.xlu0 %v1521_v17  ;;  %v4669_v16 = vld [vmem:[#allocation10 + $0x30] sm:$0xff] }
0x180c   :  { %3607 = vmatpush3.msra.mxu0 %v4667_v11  ;;  %3597 = vmatprep.subr.mxu1 %v1615_v50 }
0x180d   :  { %v1495_v0 = vpop.permute.xlu1 %1494  ;;  %3608 = vmatprep.subr.mxu0 %v4185_v60  ;;  %3598 = vmatpush3.msra.mxu1 %v1615_v50 }
0x180e   :  { %v1524_v7 = vsel %vm160_vm0, %v1495_v0, 0.0  ;;  %3609 = vmatpush3.msra.mxu0 %v4669_v16 }
0x180f   :  { %1525 = vadd.xlane.f32.xlu1 %v1524_v7  ;;  %3610 = vmatprep.subr.mxu0 %v4185_v60 }
0x1820   :  { %1576 = vrot.lane.b32.xlu1 %v1575_v26, %s4189_s21 }
0x1848   :  { %v1508_v34 = vpop.xlane.xlu1 %1507 }
0x1849   :  { %v1530_v41 = vmul.f32 0.03125, %v1508_v34 }
0x184b   :  { %v1538_v47 = vadd.f32 1e-05, %v1530_v41 }
0x1852   :  { %v1497_v52 = vpop.permute.xlu0 %1496 }
0x1853   :  { %v1527_v19 = vsel %vm160_vm0, %v1497_v52, 0.0 }
0x1854   :  { %1528 = vadd.xlane.f32.xlu0 %v1527_v19  ;;  %v1613_v19 = vld [vmem:[#allocation8 + $0x20] sm:$0xff] }
0x186a   :  { %1601 = vrot.lane.b32.xlu0 %v1600_v27, %s4189_s21 }
0x1888   :  { %v1511_v31 = vpop.xlane.xlu0 %1510 }
0x1889   :  { %v1531_v36 = vmul.f32 0.03125, %v1511_v31 }
0x188b   :  { %v1539_v42 = vadd.f32 1e-05, %v1531_v36 }
0x188c   :  { %v1514_v32 = vpop.xlane.xlu0 %1513 }
0x188d   :  { %v1532_v37 = vmul.f32 0.03125, %v1514_v32  ;;  %3829 = vrsqrt.f32 %v1539_v42 }
0x188f   :  { %v1540_v44 = vadd.f32 1e-05, %v1532_v37 }
0x1890   :  { %v1517_v33 = vpop.xlane.xlu0 %1516 }
0x1891   :  { %v1533_v40 = vmul.f32 0.03125, %v1517_v33  ;;  %3831 = vrsqrt.f32 %v1540_v44 }
0x1893   :  { %v1541_v45 = vadd.f32 1e-05, %v1533_v40 }
0x1894   :  { %v1520_v20 = vpop.xlane.xlu1 %1519  ;;  %v1523_v53 = vpop.xlane.xlu0 %1522 }
0x1895   :  { %3833 = vrsqrt.f32 %v1541_v45  ;;  %v1534_v57 = vmul.f32 0.03125, %v1520_v20  ;;  %v1535_v58 = vmul.f32 0.03125, %v1523_v53  ;;  %v4682_v53 = vld [vmem:[#allocation10 + $0x28] sm:$0xff] }
0x1896   :  { %3835 = vrsqrt.f32 %v1538_v47  ;;  %3611 = vmatpush3.msra.mxu0 %v4682_v53 }
0x1897   :  { %v1542_v62 = vadd.f32 1e-05, %v1534_v57  ;;  %v1543_v1 = vadd.f32 1e-05, %v1535_v58  ;;  %v4684_v57 = vld [vmem:[#allocation10 + $0x20] sm:$0xff]  ;;  %3612 = vmatprep.subr.mxu0 %v4185_v60 }
0x1898   :  { %v1526_v21 = vpop.xlane.xlu1 %1525  ;;  %3613 = vmatpush3.msra.mxu0 %v4684_v57 }
0x1899   :  { %v1536_v2 = vmul.f32 0.03125, %v1526_v21  ;;  %3837 = vrsqrt.f32 %v1542_v62  ;;  %3628 = vmatprep.subr.mxu0 %v4185_v60 }
0x189a   :  { %v3830_v3 = vpop.eup %3829  ;;  %3839 = vrsqrt.f32 %v1543_v1 }
0x189b   :  { %v1544_v6 = vadd.f32 1e-05, %v1536_v2  ;;  %v1555_v10 = vmul.f32 %v3830_v3, %v4603_v30 }
0x189c   :  { %v1577_v59 = vpop.permute.xlu1 %1576 }
0x189d   :  { %3841 = vrsqrt.f32 %v1544_v6  ;;  %v1580_v30 = vmul.f32 %v1577_v59, %v1555_v10 }
0x189e   :  { %v3832_v4 = vpop.eup %3831 }
0x189f   :  { %v1556_v13 = vmul.f32 %v3832_v4, %v4608_v35  ;;  %v1614_v35 = vld [vmem:[#allocation8 + $0x28] sm:$0xff] }
0x18a0   :  { %3599 = vmatprep.subr.mxu1 %v1614_v35 }
0x18a1   :  { %v1581_v7 = vmul.f32 %v1577_v59, %v1556_v13  ;;  %3600 = vmatpush3.msra.mxu1 %v1614_v35 }
0x18a2   :  { %v3834_v5 = vpop.eup %3833  ;;  %3601 = vmatprep.subr.mxu1 %v1613_v19 }
0x18a3   :  { %v3836_v38 = vpop.eup %3835  ;;  %v1557_v14 = vmul.f32 %v3834_v5, %v4618_v24  ;;  %3602 = vmatpush3.msra.mxu1 %v1613_v19 }
0x18a4   :  { %v1554_v15 = vmul.f32 %v3836_v38, %v4594_v18  ;;  %3617 = vmatprep.subr.mxu1 %v4185_v60 }
0x18a5   :  { %v1582_v49 = vmul.f32 %v1577_v59, %v1557_v14  ;;  %v3353_v14 = vld [vmem:[#allocation11 + $0x1] ss:$0 sm:$0xff] }
0x18a6   :  { %v1579_v0 = vmul.f32 %v1577_v59, %v1554_v15  ;;  %v3838_v32 = vpop.eup %3837 }
0x18a7   :  { %v3840_v34 = vpop.eup %3839  ;;  %v1558_v40 = vmul.f32 %v3838_v32, %v4615_v43  ;;  %v3356_v43 = vld [vmem:[%s5009_s6 + $0x2] sm:$0x3] }
0x18a8   :  { %v1559_v41 = vmul.f32 %v3840_v34, %v4628_v56  ;;  %3615 = vmatmul.mubr.msk.f32.vlgmr.msra.gmra.mxu0 %vm349_vm2, %v3356_v43 }
0x18a9   :  { %v1583_v45 = vmul.f32 %v1577_v59, %v1558_v40  ;;  %3629 = vmatpush3.msra.mxu0 %v4667_v11  ;;  %3636 = vmatprep.mubr.msk.f32.mxu0 %vm4186_vm1, %v4185_v60 }
0x18aa   :  { %v3842_v42 = vpop.eup %3841  ;;  %v1584_v47 = vmul.f32 %v1577_v59, %v1559_v41  ;;  %3630 = vmatprep.subr.mxu0 %v4185_v60 }
0x18ab   :  { %v1560_v44 = vmul.f32 %v3842_v42, %v4625_v55  ;;  %v3360_v55 = vld.sshfl [vmem:[%s5010_s7 + $0x2] sm:$0x3 pattern:$0x76325410]  ;;  %3631 = vmatpush3.msra.mxu0 %v4669_v16 }
0x18ac   :  { %1892 = vrot.lane.b32.xlu0 %v3360_v55, %s4179_s30  ;;  %3632 = vmatprep.subr.mxu0 %v4185_v60 }
0x18ad   :  { %v1585_v56 = vmul.f32 %v1577_v59, %v1560_v44  ;;  %3633 = vmatpush3.msra.mxu0 %v4682_v53 }
0x18ae   :  { %3634 = vmatprep.subr.mxu0 %v4185_v60 }
0x18af   :  { %3635 = vmatpush3.msra.mxu0 %v4684_v57 }
0x18b0   :  { %3650 = vmatprep.subr.mxu0 %v4185_v60 }
0x18dd   :  { %v1529_v39 = vpop.xlane.xlu0 %1528 }
0x18de   :  { %v1537_v48 = vmul.f32 0.03125, %v1529_v39 }
0x18e0   :  { %v1545_v17 = vadd.f32 1e-05, %v1537_v48 }
0x18e1   :  { %v1602_v24 = vpop.permute.xlu0 %1601 }
0x18e2   :  { %3843 = vrsqrt.f32 %v1545_v17  ;;  %v1604_v18 = vadd.f32 %v1602_v24, %v1579_v0  ;;  %v1605_v26 = vadd.f32 %v1602_v24, %v1580_v30  ;;  %v1606_v52 = vadd.f32 %v1602_v24, %v1581_v7 }
0x18e3   :  { %v1607_v22 = vadd.f32 %v1602_v24, %v1582_v49  ;;  %v1608_v21 = vadd.f32 %v1602_v24, %v1583_v45  ;;  %v1609_v62 = vadd.f32 %v1602_v24, %v1584_v47 }
0x18e4   :  { %v1633_v27 = vcombine.low %v1604_v18, %v1605_v26 }
0x18e5   :  { %v1634_v31 = vcombine.low %v1606_v52, %v1607_v22  ;;  %v1650_v3 = vcombine.low %v1608_v21, %v1609_v62 }
0x18e6   :  { %v1641_v33 = vrot.slane %v1633_v27, %v4402_v28 }
0x18e7   :  { %v1648_v36 = vrot.slane %v1634_v31, %v4402_v28  ;;  %v1658_v5 = vrot.slane %v1650_v3, %v4402_v28 }
0x18e9   :  { %v1649_v37 = vcombine.low %v1641_v33, %v1648_v36 }
0x18eb   :  { %1667 = vrot.lane.b32.xlu1 %v1649_v37, %s4179_s30 }
0x18ef   :  { %v3844_v20 = vpop.eup %3843 }
0x18f0   :  { %v1561_v58 = vmul.f32 %v3844_v20, %v4646_v8  ;;  %v1610_v8 = vadd.f32 %v1602_v24, %v1585_v56 }
0x18f2   :  { %v1586_v1 = vmul.f32 %v1577_v59, %v1561_v58 }
0x18f4   :  { %v1611_v2 = vadd.f32 %v1602_v24, %v1586_v1 }
0x18f6   :  { %v1651_v4 = vcombine.low %v1610_v8, %v1611_v2 }
0x18f8   :  { %v1665_v6 = vrot.slane %v1651_v4, %v4402_v28 }
0x18fa   :  { %v1666_v38 = vcombine.low %v1658_v5, %v1665_v6 }
0x18fc   :  { %1669 = vrot.lane.b32.xlu1 %v1666_v38, %s4179_s30 }
0x191e   :  { %v1893_v52 = vpop.permute.xlu0 %1892 }
0x195d   :  { %v1668_v10 = vpop.permute.xlu1 %1667 }
0x195e   :  { %3603 = vmatprep.mubr.msk.f32.mxu1 %vm349_vm2, %v1668_v10 }
0x1968   :  { %v1872_v59 = vpop.f32.mrf.mxu0 }
0x196a   :  { %v3616_v39 = vpop.f32.mrf.mxu0 }
0x196e   :  { %v1670_v13 = vpop.permute.xlu1 %1669 }
0x196f   :  { %3604 = vmatmul.mubr.msk.f32.vlgmr.msra.gmra.mxu1 %vm349_vm2, %v1670_v13 }
0x1970   :  { %3618 = vmatpush3.msra.mxu1 %v4667_v11  ;;  %3625 = vmatprep.mubr.msk.f32.mxu1 %vm4186_vm1, %v4185_v60 }
0x1971   :  { %3619 = vmatprep.subr.mxu1 %v4185_v60 }
0x1972   :  { %3620 = vmatpush3.msra.mxu1 %v4669_v16 }
0x1973   :  { %3621 = vmatprep.subr.mxu1 %v4185_v60 }
0x1974   :  { %3622 = vmatpush3.msra.mxu1 %v4682_v53 }
0x1975   :  { %3623 = vmatprep.subr.mxu1 %v4185_v60 }
0x1976   :  { %3624 = vmatpush3.msra.mxu1 %v4684_v57 }
0x1977   :  { %3639 = vmatprep.subr.mxu1 %v4185_v60 }
0x1a2f   :  { %v3605_v48 = vpop.f32.mrf.mxu1 }
0x1a30   :  { %v4724_v15 = vadd.f32 %v3605_v48, %v3353_v14 }
0x1a31   :  { %v1741_v63 = vpop.f32.mrf.mxu1 }
0x1a32   :  { %v4726_v50 = vadd.f32 %v3353_v14, %v1741_v63 }
0x1a34   :  { %v1759_v17 = vrot.slane %v4726_v50, %v4402_v28  ;;  %v1752_v5 = vcombine.high %v4726_v50, %v4726_v50 }
0x1a36   :  { %v1876_v0 = vadd.f32 %v1872_v59, %v1759_v17  ;;  %v1767_v37 = vcombine.high %v1759_v17, %v1759_v17  ;;  %v1766_v6 = vrot.slane %v1752_v5, %v4402_v28 }
0x1a38   :  { %3845 = vtanh.f32 %v1876_v0  ;;  %v3359_v7 = vmul.f32 -1.442695, %v1876_v0 }
0x1a3a   :  { %3847 = vpow2.f32 %v3359_v7 }
0x1a45   :  { %v3846_v30 = vpop.eup %3845 }
0x1a46   :  { %1897 = vrot.lane.b32.xlu1 %v3846_v30, %s4188_s20 }
0x1a47   :  { %v3848_v35 = vpop.eup %3847 }
0x1a48   :  { %v1880_v24 = vadd.f32 1.0, %v3848_v35 }
0x1a4a   :  { %3849 = vrcp.f32 %v1880_v24 }
0x1a57   :  { %v3850_v49 = vpop.eup %3849 }
0x1a58   :  { %v1895_v19 = vmul.f32 %v3850_v49, %v1893_v52  ;;  %v1768_v52 = vcombine.high %v1766_v6, %v1766_v6 }
0x1ab8   :  { %v1898_v18 = vpop.permute.xlu1 %1897 }
0x1ab9   :  { %v1900_v26 = vmul.f32 %v3850_v49, %v1898_v18 }
0x1abb   :  { %1902 = vrot.lane.b32.xlu1 %v1900_v26, %s4179_s30 }
0x1b2d   :  { %v1903_v22 = vpop.permute.xlu1 %1902 }
0x1b2e   :  { %v1905_v27 = vadd.f32 %v1903_v22, %v1895_v19 }
0x1b30   :  { %3851 = vtanh.f32 %v1905_v27 }
0x1b3d   :  { %v3852_v31 = vpop.eup %3851 }
0x1b3e   :  { %1908 = vrot.lane.b32.xlu0 %v3852_v31, %s4188_s20 }
0x1bb0   :  { %v1909_v32 = vpop.permute.xlu0 %1908 }
0x1bb1   :  { %v4733_v33 = vmul.f32 %v3850_v49, %v1909_v32 }
0x1bb3   :  { %v1919_v34 = vrot.slane %v4733_v33, %v4402_v28 }
0x1bb5   :  { %1920 = vrot.lane.b32.xlu1 %v1919_v34, %s4179_s30 }
0x1c27   :  { %v1921_v36 = vpop.permute.xlu1 %1920 }
0x1c28   :  { %3626 = vmatmul.mubr.msk.f32.vlgmr.msra.gmra.mxu1 %vm349_vm2, %v1921_v36 }
0x1c29   :  { %3640 = vmatpush3.msra.mxu1 %v4667_v11  ;;  %3647 = vmatprep.mubr.msk.f32.mxu1 %vm4186_vm1, %v4185_v60 }
0x1c2a   :  { %3641 = vmatprep.subr.mxu1 %v4185_v60 }
0x1c2b   :  { %3642 = vmatpush3.msra.mxu1 %v4669_v16 }
0x1c2c   :  { %3643 = vmatprep.subr.mxu1 %v4185_v60 }
0x1c2d   :  { %3644 = vmatpush3.msra.mxu1 %v4682_v53 }
0x1c2e   :  { %3645 = vmatprep.subr.mxu1 %v4185_v60 }
0x1c2f   :  { %3646 = vmatpush3.msra.mxu1 %v4684_v57 }
0x1c30   :  { %3661 = vmatprep.subr.mxu1 %v4185_v60 }
0x1ce8   :  { %v1990_v40 = vpop.f32.mrf.mxu1 }
0x1ce9   :  { %v1994_v41 = vadd.f32 %v1990_v40, %v1767_v37 }
0x1cea   :  { %v3627_v42 = vpop.f32.mrf.mxu1 }
0x1ceb   :  { %3853 = vtanh.f32 %v1994_v41  ;;  %v3362_v45 = vmul.f32 -1.442695, %v1994_v41 }
0x1ced   :  { %3855 = vpow2.f32 %v3362_v45 }
0x1cf8   :  { %v3854_v44 = vpop.eup %3853 }
0x1cf9   :  { %2004 = vrot.lane.b32.xlu0 %v3854_v44, %s4188_s20 }
0x1cfa   :  { %v3856_v47 = vpop.eup %3855 }
0x1cfb   :  { %v1998_v20 = vadd.f32 1.0, %v3856_v47 }
0x1cfd   :  { %3857 = vrcp.f32 %v1998_v20 }
0x1d0a   :  { %v3858_v58 = vpop.eup %3857 }
0x1d0b   :  { %v2002_v43 = vmul.f32 %v3858_v58, %v1905_v27 }
0x1d6b   :  { %v2005_v21 = vpop.permute.xlu0 %2004 }
0x1d6c   :  { %v2007_v62 = vmul.f32 %v3858_v58, %v2005_v21 }
0x1d6e   :  { %2009 = vrot.lane.b32.xlu1 %v2007_v62, %s4179_s30 }
0x1de0   :  { %v2010_v55 = vpop.permute.xlu1 %2009 }
0x1de1   :  { %v2012_v56 = vadd.f32 %v2010_v55, %v2002_v43  ;;  %v1776_v43 = vrot.slane %v4724_v15, %v4402_v28 }
0x1de3   :  { %3859 = vtanh.f32 %v2012_v56 }
0x1df0   :  { %v3860_v1 = vpop.eup %3859 }
0x1df1   :  { %2015 = vrot.lane.b32.xlu0 %v3860_v1, %s4188_s20 }
0x1e63   :  { %v2016_v8 = vpop.permute.xlu0 %2015 }
0x1e64   :  { %v4752_v2 = vmul.f32 %v3858_v58, %v2016_v8 }
0x1e66   :  { %v2026_v3 = vrot.slane %v4752_v2, %v4402_v28 }
0x1e68   :  { %2027 = vrot.lane.b32.xlu1 %v2026_v3, %s4179_s30 }
0x1eda   :  { %v2028_v4 = vpop.permute.xlu1 %2027 }
0x1edb   :  { %3637 = vmatmul.mubr.msk.f32.vlgmr.msra.gmra.mxu0 %vm349_vm2, %v2028_v4 }
0x1edc   :  { %3651 = vmatpush3.msra.mxu0 %v4667_v11  ;;  %3658 = vmatprep.mubr.msk.f32.mxu0 %vm4186_vm1, %v4185_v60 }
0x1edd   :  { %3652 = vmatprep.subr.mxu0 %v4185_v60 }
0x1ede   :  { %3653 = vmatpush3.msra.mxu0 %v4669_v16 }
0x1edf   :  { %3654 = vmatprep.subr.mxu0 %v4185_v60 }
0x1ee0   :  { %3655 = vmatpush3.msra.mxu0 %v4682_v53 }
0x1ee1   :  { %3656 = vmatprep.subr.mxu0 %v4185_v60 }
0x1ee2   :  { %3657 = vmatpush3.msra.mxu0 %v4684_v57 }
0x1ee3   :  { %3672 = vmatprep.subr.mxu0 %v4185_v60 }
0x1f9b   :  { %v2097_v38 = vpop.f32.mrf.mxu0 }
0x1f9c   :  { %v2101_v10 = vadd.f32 %v2097_v38, %v1766_v6 }
0x1f9d   :  { %v3638_v13 = vpop.f32.mrf.mxu0 }
0x1f9e   :  { %3861 = vtanh.f32 %v2101_v10  ;;  %v3364_v39 = vmul.f32 -1.442695, %v2101_v10 }
0x1fa0   :  { %3863 = vpow2.f32 %v3364_v39 }
0x1fab   :  { %v3862_v59 = vpop.eup %3861 }
0x1fac   :  { %2111 = vrot.lane.b32.xlu0 %v3862_v59, %s4188_s20 }
0x1fad   :  { %v3864_v14 = vpop.eup %3863 }
0x1fae   :  { %v2105_v48 = vadd.f32 1.0, %v3864_v14 }
0x1fb0   :  { %3865 = vrcp.f32 %v2105_v48 }
0x1fbd   :  { %v3866_v63 = vpop.eup %3865 }
0x1fbe   :  { %v2109_v50 = vmul.f32 %v3866_v63, %v2012_v56 }
0x201e   :  { %v2112_v17 = vpop.permute.xlu0 %2111 }
0x201f   :  { %v2114_v0 = vmul.f32 %v3866_v63, %v2112_v17 }
0x2021   :  { %2116 = vrot.lane.b32.xlu1 %v2114_v0, %s4179_s30 }
0x2093   :  { %v2117_v30 = vpop.permute.xlu1 %2116 }
0x2094   :  { %v2119_v7 = vadd.f32 %v2117_v30, %v2109_v50  ;;  %v1784_v50 = vcombine.high %v1776_v43, %v1776_v43 }
0x2096   :  { %3867 = vtanh.f32 %v2119_v7 }
0x20a3   :  { %v3868_v35 = vpop.eup %3867 }
0x20a4   :  { %2122 = vrot.lane.b32.xlu0 %v3868_v35, %s4188_s20 }
0x2116   :  { %v2123_v24 = vpop.permute.xlu0 %2122 }
0x2117   :  { %v4774_v49 = vmul.f32 %v3866_v63, %v2123_v24 }
0x2119   :  { %v2133_v18 = vrot.slane %v4774_v49, %v4402_v28 }
0x211b   :  { %2134 = vrot.lane.b32.xlu1 %v2133_v18, %s4179_s30 }
0x218d   :  { %v2135_v26 = vpop.permute.xlu1 %2134 }
0x218e   :  { %3648 = vmatmul.mubr.msk.f32.vlgmr.msra.gmra.mxu1 %vm349_vm2, %v2135_v26 }
0x218f   :  { %3662 = vmatpush3.msra.mxu1 %v4667_v11  ;;  %3669 = vmatprep.mubr.msk.f32.mxu1 %vm4186_vm1, %v4185_v60 }
0x2190   :  { %3663 = vmatprep.subr.mxu1 %v4185_v60 }
0x2191   :  { %3664 = vmatpush3.msra.mxu1 %v4669_v16 }
0x2192   :  { %3665 = vmatprep.subr.mxu1 %v4185_v60 }
0x2193   :  { %3666 = vmatpush3.msra.mxu1 %v4682_v53 }
0x2194   :  { %3667 = vmatprep.subr.mxu1 %v4185_v60 }
0x2195   :  { %3668 = vmatpush3.msra.mxu1 %v4684_v57 }
0x2196   :  { %3683 = vmatprep.subr.mxu1 %v4185_v60 }
0x224e   :  { %v2204_v19 = vpop.f32.mrf.mxu1 }
0x224f   :  { %v2208_v22 = vadd.f32 %v2204_v19, %v1768_v52 }
0x2250   :  { %v3649_v27 = vpop.f32.mrf.mxu1 }
0x2251   :  { %3869 = vtanh.f32 %v2208_v22  ;;  %v3366_v32 = vmul.f32 -1.442695, %v2208_v22 }
0x2253   :  { %3871 = vpow2.f32 %v3366_v32 }
0x225e   :  { %v3870_v31 = vpop.eup %3869 }
0x225f   :  { %2218 = vrot.lane.b32.xlu0 %v3870_v31, %s4188_s20 }
0x2260   :  { %v3872_v34 = vpop.eup %3871 }
0x2261   :  { %v2212_v36 = vadd.f32 1.0, %v3872_v34 }
0x2263   :  { %3873 = vrcp.f32 %v2212_v36  ;;  %v1769_v36 = vcombine.high %v4724_v15, %v4724_v15 }
0x2270   :  { %v3874_v37 = vpop.eup %3873 }
0x2271   :  { %v2216_v42 = vmul.f32 %v3874_v37, %v2119_v7 }
0x22d1   :  { %v2219_v40 = vpop.permute.xlu0 %2218 }
0x22d2   :  { %v2221_v41 = vmul.f32 %v3874_v37, %v2219_v40 }
0x22d4   :  { %2223 = vrot.lane.b32.xlu1 %v2221_v41, %s4179_s30 }
0x2346   :  { %v2224_v44 = vpop.permute.xlu1 %2223 }
0x2347   :  { %v2226_v45 = vadd.f32 %v2224_v44, %v2216_v42 }
0x2349   :  { %3875 = vtanh.f32 %v2226_v45 }
0x2356   :  { %v3876_v47 = vpop.eup %3875 }
0x2357   :  { %2229 = vrot.lane.b32.xlu0 %v3876_v47, %s4188_s20 }
0x23c9   :  { %v2230_v20 = vpop.permute.xlu0 %2229 }
0x23ca   :  { %v4793_v58 = vmul.f32 %v3874_v37, %v2230_v20  ;;  %v4840_v37 = vrot.slane %v1769_v36, %v4402_v28 }
0x23cc   :  { %v2240_v21 = vrot.slane %v4793_v58, %v4402_v28 }
0x23ce   :  { %2241 = vrot.lane.b32.xlu1 %v2240_v21, %s4179_s30 }
0x2440   :  { %v2242_v62 = vpop.permute.xlu1 %2241 }
0x2441   :  { %3659 = vmatmul.mubr.msk.f32.vlgmr.msra.gmra.mxu0 %vm349_vm2, %v2242_v62 }
0x2442   :  { %3673 = vmatpush3.msra.mxu0 %v4667_v11  ;;  %3680 = vmatprep.mubr.msk.f32.mxu0 %vm4186_vm1, %v4185_v60 }
0x2443   :  { %3674 = vmatprep.subr.mxu0 %v4185_v60 }
0x2444   :  { %3675 = vmatpush3.msra.mxu0 %v4669_v16 }
0x2445   :  { %3676 = vmatprep.subr.mxu0 %v4185_v60 }
0x2446   :  { %3677 = vmatpush3.msra.mxu0 %v4682_v53 }
0x2447   :  { %3678 = vmatprep.subr.mxu0 %v4185_v60 }
0x2448   :  { %3679 = vmatpush3.msra.mxu0 %v4684_v57 }
0x2501   :  { %v2311_v55 = vpop.f32.mrf.mxu0 }
0x2502   :  { %v2315_v56 = vadd.f32 %v2311_v55, %v1776_v43 }
0x2503   :  { %v3660_v1 = vpop.f32.mrf.mxu0 }
0x2504   :  { %3877 = vtanh.f32 %v2315_v56  ;;  %v3368_v3 = vmul.f32 -1.442695, %v2315_v56  ;;  %v2701_v1 = vcombine.low %v4479_v23, %v4501_v51  ;;  %v2686_v23 = vld [vmem:[#allocation13 + $0x8] sm:$0xff]  ;;  %v2685_v51 = vld [vmem:[#allocation13] sm:$0xff] }
0x2506   :  { %3879 = vpow2.f32 %v3368_v3  ;;  %v2687_v3 = vld [vmem:[#allocation13 + $0x10] sm:$0xff] }
0x2511   :  { %v3878_v8 = vpop.eup %3877 }
0x2512   :  { %2325 = vrot.lane.b32.xlu0 %v3878_v8, %s4188_s20  ;;  %v2688_v8 = vld [vmem:[#allocation13 + $0x18] sm:$0xff] }
0x2513   :  { %v3880_v4 = vpop.eup %3879  ;;  %3694 = vmatprep.subr.mxu0 %v2688_v8 }
0x2514   :  { %v2319_v5 = vadd.f32 1.0, %v3880_v4  ;;  %v2700_v4 = vcombine.low %v4432_v46, %v4454_v29  ;;  %v2718_v46 = vcombine.low %v4561_v54, %v4580_v61 }
0x2516   :  { %3881 = vrcp.f32 %v2319_v5  ;;  %v2715_v5 = vrot.slane %v2701_v1, %v4402_v28 }
0x2523   :  { %v3882_v6 = vpop.eup %3881 }
0x2524   :  { %v2323_v13 = vmul.f32 %v3882_v6, %v2226_v45 }
0x2584   :  { %v2326_v38 = vpop.permute.xlu0 %2325 }
0x2585   :  { %v2328_v10 = vmul.f32 %v3882_v6, %v2326_v38  ;;  %v2708_v38 = vrot.slane %v2700_v4, %v4402_v28 }
0x2587   :  { %2330 = vrot.lane.b32.xlu1 %v2328_v10, %s4179_s30  ;;  %v2716_v10 = vcombine.low %v2708_v38, %v2715_v5  ;;  %v2692_v38 = vld [vmem:[#allocation14 + $0x18] sm:$0xff] }
0x25f9   :  { %v2331_v59 = vpop.permute.xlu1 %2330 }
0x25fa   :  { %v2333_v39 = vadd.f32 %v2331_v59, %v2323_v13  ;;  %v2717_v13 = vcombine.low %v4524_v9, %v4546_v25  ;;  %v1785_v25 = vcombine.high %v4840_v37, %v4840_v37 }
0x25fc   :  { %3883 = vtanh.f32 %v2333_v39 }
0x2609   :  { %v3884_v14 = vpop.eup %3883 }
0x260a   :  { %2336 = vrot.lane.b32.xlu0 %v3884_v14, %s4188_s20  ;;  %v2732_v14 = vrot.slane %v2718_v46, %v4402_v28 }
0x267c   :  { %v2337_v48 = vpop.permute.xlu0 %2336 }
0x267d   :  { %v4813_v63 = vmul.f32 %v3882_v6, %v2337_v48 }
0x267f   :  { %v2347_v17 = vrot.slane %v4813_v63, %v4402_v28 }
0x2681   :  { %2348 = vrot.lane.b32.xlu1 %v2347_v17, %s4179_s30  ;;  %v2725_v17 = vrot.slane %v2717_v13, %v4402_v28 }
0x26f3   :  { %v2349_v0 = vpop.permute.xlu1 %2348 }
0x26f4   :  { %3670 = vmatmul.mubr.msk.f32.vlgmr.msra.gmra.mxu1 %vm349_vm2, %v2349_v0  ;;  %v2733_v0 = vcombine.low %v2725_v17, %v2732_v14  ;;  %v2690_v14 = vld [vmem:[#allocation14 + $0x8] sm:$0xff] }
0x26f5   :  { %3684 = vmatpush3.msra.mxu1 %v4667_v11  ;;  %3691 = vmatprep.mubr.msk.f32.mxu1 %vm4186_vm1, %v4185_v60 }
0x26f6   :  { %3685 = vmatprep.subr.mxu1 %v4185_v60 }
0x26f7   :  { %3686 = vmatpush3.msra.mxu1 %v4669_v16 }
0x26f8   :  { %3687 = vmatprep.subr.mxu1 %v4185_v60 }
0x26f9   :  { %3688 = vmatpush3.msra.mxu1 %v4682_v53 }
0x26fa   :  { %3689 = vmatprep.subr.mxu1 %v4185_v60 }
0x26fb   :  { %3690 = vmatpush3.msra.mxu1 %v4684_v57 }
0x26fc   :  { %3705 = vmatprep.subr.mxu1 %v2688_v8 }
0x27b4   :  { %v2418_v30 = vpop.f32.mrf.mxu1 }
0x27b5   :  { %v2422_v7 = vadd.f32 %v2418_v30, %v1784_v50 }
0x27b6   :  { %v3671_v35 = vpop.f32.mrf.mxu1 }
0x27b7   :  { %3885 = vtanh.f32 %v2422_v7  ;;  %v3370_v24 = vmul.f32 -1.442695, %v2422_v7  ;;  %v4876_v7 = vld [vmem:[%s5013_s10] ss:$0 sm:$0xff]  ;;  %s4190_s10 = smov [#allocation17]  }
0x27b8   :  { %s3294_s0 = sshll.u32 %s4190_s10, 4  ;;  %s3295_s0 = int_to_ptr.vmem [resolvable:$true] %s3294_s0 }
0x27b9   :  { %3887 = vpow2.f32 %v3370_v24  ;;  %s4097_s26 = scalar_lea.vmem %s3295_s0, 64  ;;  %p4102_p13 = scmp.lt.s32.totalorder %s3295_s0, %s3295_s0 }
0x27ba   :  { %p4098_p12 = scmp.ne.s32.totalorder %s3295_s0, %s4097_s26  ;;  %p4103_p0 = scmp.lt.s32.totalorder %s4097_s26, %s4097_s26 }
0x27bc   :  { %p4104_p1 = por %p4103_p0, %p4102_p13 }
0x27be   :  { %p4105_p2 = pnand %p4104_p1, %p4098_p12 }
0x27c4   :  { %v3886_v11 = vpop.eup %3885 }
0x27c5   :  { %2432 = vrot.lane.b32.xlu0 %v3886_v11, %s4188_s20 }
0x27c6   :  { %v3888_v18 = vpop.eup %3887 }
0x27c7   :  { %v2426_v16 = vadd.f32 1.0, %v3888_v18 }
0x27c9   :  { %3889 = vrcp.f32 %v2426_v16 }
0x27d6   :  { %v3890_v26 = vpop.eup %3889 }
0x27d7   :  { %v2430_v60 = vmul.f32 %v3890_v26, %v2333_v39 }
0x2837   :  { %v2433_v52 = vpop.permute.xlu0 %2432 }
0x2838   :  { %v2435_v53 = vmul.f32 %v3890_v26, %v2433_v52 }
0x283a   :  { %2437 = vrot.lane.b32.xlu1 %v2435_v53, %s4179_s30 }
0x28ac   :  { %v2438_v57 = vpop.permute.xlu1 %2437 }
0x28ad   :  { %v2440_v19 = vadd.f32 %v2438_v57, %v2430_v60 }
0x28af   :  { %3891 = vtanh.f32 %v2440_v19 }
0x28bc   :  { %v3892_v22 = vpop.eup %3891 }
0x28bd   :  { %2443 = vrot.lane.b32.xlu0 %v3892_v22, %s4188_s20 }
0x292f   :  { %v2444_v27 = vpop.permute.xlu0 %2443 }
0x2930   :  { %v4831_v31 = vmul.f32 %v3890_v26, %v2444_v27 }
0x2932   :  { %v2454_v32 = vrot.slane %v4831_v31, %v4402_v28 }
0x2934   :  { %2455 = vrot.lane.b32.xlu1 %v2454_v32, %s4179_s30 }
0x29a6   :  { %v2456_v34 = vpop.permute.xlu1 %2455 }
0x29a7   :  { %3681 = vmatmul.mubr.msk.f32.vlgmr.msra.gmra.mxu0 %vm349_vm2, %v2456_v34 }
0x29a8   :  { %3695 = vmatpush3.msra.mxu0 %v2688_v8 }
0x29a9   :  { %3696 = vmatprep.subr.mxu0 %v2687_v3 }
0x29aa   :  { %3697 = vmatpush3.msra.mxu0 %v2687_v3 }
0x29ab   :  { %3698 = vmatprep.subr.mxu0 %v2686_v23 }
0x29ac   :  { %3699 = vmatpush3.msra.mxu0 %v2686_v23 }
0x29ad   :  { %3700 = vmatprep.subr.mxu0 %v2685_v51 }
0x29ae   :  { %3701 = vmatpush3.msra.mxu0 %v2685_v51 }
0x29af   :  { %3716 = vmatprep.subr.mxu0 %v2692_v38 }
0x2a67   :  { %v2525_v40 = vpop.f32.mrf.mxu0 }
0x2a68   :  { %v2529_v41 = vadd.f32 %v2525_v40, %v4840_v37 }
0x2a69   :  { %v3682_v42 = vpop.f32.mrf.mxu0 }
0x2a6a   :  { %3893 = vtanh.f32 %v2529_v41  ;;  %v3372_v45 = vmul.f32 -1.442695, %v2529_v41 }
0x2a6c   :  { %3895 = vpow2.f32 %v3372_v45 }
0x2a77   :  { %v3894_v44 = vpop.eup %3893 }
0x2a78   :  { %2539 = vrot.lane.b32.xlu0 %v3894_v44, %s4188_s20 }
0x2a79   :  { %v3896_v47 = vpop.eup %3895 }
0x2a7a   :  { %v2533_v20 = vadd.f32 1.0, %v3896_v47 }
0x2a7c   :  { %3897 = vrcp.f32 %v2533_v20 }
0x2a89   :  { %v3898_v21 = vpop.eup %3897 }
0x2a8a   :  { %v2537_v15 = vmul.f32 %v3898_v21, %v2440_v19 }
0x2aea   :  { %v2540_v62 = vpop.permute.xlu0 %2539 }
0x2aeb   :  { %v2542_v43 = vmul.f32 %v3898_v21, %v2540_v62 }
0x2aed   :  { %2544 = vrot.lane.b32.xlu1 %v2542_v43, %s4179_s30 }
0x2b5f   :  { %v2545_v55 = vpop.permute.xlu1 %2544 }
0x2b60   :  { %v4845_v56 = vadd.f32 %v2545_v55, %v2537_v15 }
0x2b62   :  { %3899 = vtanh.f32 %v4845_v56 }
0x2b6f   :  { %v3900_v6 = vpop.eup %3899 }
0x2b70   :  { %2550 = vrot.lane.b32.xlu0 %v3900_v6, %s4188_s20 }
0x2b74   :  { %2734 = vrot.lane.b32.xlu0 %v2716_v10, %s4179_s30  ;;  %v2866_v10 = vcombine.low %v4774_v49, %v4793_v58 }
0x2b76   :  { %v2880_v46 = vrot.slane %v2866_v10, %v4402_v28 }
0x2be2   :  { %v2551_v29 = vpop.permute.xlu0 %2550 }
0x2be3   :  { %v4860_v59 = vmul.f32 %v3898_v21, %v2551_v29 }
0x2be5   :  { %v2561_v39 = vrot.slane %v4860_v59, %v4402_v28 }
0x2be6   :  { %v2735_v48 = vpop.permute.xlu0 %2734 }
0x2be7   :  { %2562 = vrot.lane.b32.xlu1 %v2561_v39, %s4179_s30  ;;  %3702 = vmatprep.mubr.msk.f32.mxu0 %vm349_vm2, %v2735_v48  ;;  %v2689_v48 = vld [vmem:[#allocation14] sm:$0xff] }
0x2beb   :  { %2736 = vrot.lane.b32.xlu1 %v2733_v0, %s4179_s30  ;;  %v2882_v0 = vcombine.low %v4813_v63, %v4831_v31 }
0x2c59   :  { %v2563_v54 = vpop.permute.xlu1 %2562 }
0x2c5a   :  { %3692 = vmatmul.mubr.msk.f32.vlgmr.msra.gmra.mxu1 %vm349_vm2, %v2563_v54 }
0x2c5b   :  { %3706 = vmatpush3.msra.mxu1 %v2688_v8 }
0x2c5c   :  { %3707 = vmatprep.subr.mxu1 %v2687_v3 }
0x2c5d   :  { %v2737_v9 = vpop.permute.xlu1 %2736  ;;  %3708 = vmatpush3.msra.mxu1 %v2687_v3 }
0x2c5e   :  { %3703 = vmatmul.mubr.msk.f32.vlgmr.msra.gmra.mxu0 %vm349_vm2, %v2737_v9  ;;  %3709 = vmatprep.subr.mxu1 %v2686_v23 }
0x2c5f   :  { %3710 = vmatpush3.msra.mxu1 %v2686_v23  ;;  %3717 = vmatpush3.msra.mxu0 %v2692_v38 }
0x2c60   :  { %3711 = vmatprep.subr.mxu1 %v2685_v51 }
0x2c61   :  { %3712 = vmatpush3.msra.mxu1 %v2685_v51  ;;  %v2865_v51 = vcombine.low %v4733_v33, %v4752_v2 }
0x2c63   :  { %v2873_v13 = vrot.slane %v2865_v51, %v4402_v28 }
0x2c65   :  { %v2881_v39 = vcombine.low %v2873_v13, %v2880_v46 }
0x2d1a   :  { %v2632_v61 = vpop.f32.mrf.mxu1 }
0x2d1b   :  { %v2636_v50 = vadd.f32 %v2632_v61, %v1785_v25  ;;  %v2890_v25 = vrot.slane %v2882_v0, %v4402_v28 }
0x2d1c   :  { %v3693_v30 = vpop.f32.mrf.mxu1 }
0x2d1d   :  { %3901 = vtanh.f32 %v2636_v50  ;;  %v3374_v53 = vmul.f32 -1.442695, %v2636_v50 }
0x2d1e   :  { %v3704_v35 = vpop.f32.mrf.mxu0 }
0x2d1f   :  { %v2814_v11 = vadd.f32 %v3704_v35, %v4876_v7 }
0x2d20   :  { %v2808_v24 = vpop.f32.mrf.mxu0 }
0x2d21   :  { %3903 = vtanh.f32 %v2814_v11  ;;  %v2809_v18 = vadd.f32 %v4876_v7, %v2808_v24  ;;  %v3379_v60 = vmul.f32 -1.442695, %v2814_v11 }
0x2d23   :  { %3905 = vtanh.f32 %v2809_v18  ;;  %v3378_v57 = vmul.f32 -1.442695, %v2809_v18 }
0x2d24   :  { %3907 = vpow2.f32 %v3374_v53 }
0x2d25   :  { %3909 = vpow2.f32 %v3379_v60 }
0x2d26   :  { %3911 = vpow2.f32 %v3378_v57 }
0x2d2a   :  { %v3902_v16 = vpop.eup %3901 }
0x2d2b   :  { %2646 = vrot.lane.b32.xlu0 %v3902_v16, %s4188_s20 }
0x2d2e   :  { %v3904_v26 = vpop.eup %3903 }
0x2d2f   :  { %2837 = vrot.lane.b32.xlu0 %v3904_v26, %s4188_s20 }
0x2d30   :  { %v3906_v52 = vpop.eup %3905 }
0x2d31   :  { %2835 = vrot.lane.b32.xlu1 %v3906_v52, %s4188_s20  ;;  %v3908_v19 = vpop.eup %3907 }
0x2d32   :  { %v2640_v22 = vadd.f32 1.0, %v3908_v19  ;;  %v3910_v27 = vpop.eup %3909 }
0x2d33   :  { %v3912_v32 = vpop.eup %3911  ;;  %v2824_v34 = vadd.f32 1.0, %v3910_v27 }
0x2d34   :  { %3913 = vrcp.f32 %v2640_v22  ;;  %v2823_v36 = vadd.f32 1.0, %v3912_v32 }
0x2d35   :  { %3915 = vrcp.f32 %v2824_v34 }
0x2d36   :  { %3917 = vrcp.f32 %v2823_v36 }
0x2d41   :  { %v3914_v37 = vpop.eup %3913 }
0x2d42   :  { %v3916_v42 = vpop.eup %3915  ;;  %v2644_v62 = vmul.f32 %v3914_v37, %v4845_v56  ;;  %v2691_v56 = vld [vmem:[#allocation14 + $0x10] sm:$0xff] }
0x2d43   :  { %v3918_v47 = vpop.eup %3917  ;;  %v2832_v55 = vmul.f32 0.0, %v3916_v42  ;;  %3718 = vmatprep.subr.mxu0 %v2691_v56 }
0x2d44   :  { %v2831_v3 = vmul.f32 0.0, %v3918_v47  ;;  %3719 = vmatpush3.msra.mxu0 %v2691_v56 }
0x2d45   :  { %3720 = vmatprep.subr.mxu0 %v2690_v14 }
0x2d46   :  { %3721 = vmatpush3.msra.mxu0 %v2690_v14 }
0x2d47   :  { %3722 = vmatprep.subr.mxu0 %v2689_v48 }
0x2d48   :  { %3723 = vmatpush3.msra.mxu0 %v2689_v48 }
0x2d9d   :  { %v2647_v40 = vpop.permute.xlu0 %2646 }
0x2d9e   :  { %v2649_v41 = vmul.f32 %v3914_v37, %v2647_v40 }
0x2da0   :  { %2651 = vrot.lane.b32.xlu1 %v2649_v41, %s4179_s30 }
0x2da1   :  { %v2838_v44 = vpop.permute.xlu0 %2837 }
0x2da2   :  { %v2842_v45 = vmul.f32 %v3916_v42, %v2838_v44 }
0x2da3   :  { %v2836_v20 = vpop.permute.xlu1 %2835 }
0x2da4   :  { %2847 = vrot.lane.b32.xlu1 %v2842_v45, %s4179_s30  ;;  %v2841_v21 = vmul.f32 %v3918_v47, %v2836_v20 }
0x2da6   :  { %2845 = vrot.lane.b32.xlu0 %v2841_v21, %s4179_s30 }
0x2e12   :  { %v2652_v43 = vpop.permute.xlu1 %2651 }
0x2e13   :  { %v4887_v15 = vadd.f32 %v2652_v43, %v2644_v62 }
0x2e15   :  { %3919 = vtanh.f32 %v4887_v15 }
0x2e16   :  { %v2848_v1 = vpop.permute.xlu1 %2847 }
0x2e17   :  { %v4890_v8 = vadd.f32 %v2848_v1, %v2832_v55 }
0x2e18   :  { %v2846_v4 = vpop.permute.xlu0 %2845 }
0x2e19   :  { %3921 = vtanh.f32 %v4890_v8  ;;  %v4893_v5 = vadd.f32 %v2846_v4, %v2831_v3 }
0x2e1b   :  { %3923 = vtanh.f32 %v4893_v5 }
0x2e22   :  { %v3920_v6 = vpop.eup %3919 }
0x2e23   :  { %2657 = vrot.lane.b32.xlu0 %v3920_v6, %s4188_s20 }
0x2e26   :  { %v3922_v23 = vpop.eup %3921 }
0x2e27   :  { %2859 = vrot.lane.b32.xlu0 %v3922_v23, %s4188_s20 }
0x2e28   :  { %v3924_v29 = vpop.eup %3923 }
0x2e29   :  { %2857 = vrot.lane.b32.xlu1 %v3924_v29, %s4188_s20 }
0x2e2d   :  { %2899 = vrot.lane.b32.xlu1 %v2881_v39, %s4179_s30 }
0x2e95   :  { %v2658_v17 = vpop.permute.xlu0 %2657 }
0x2e96   :  { %v4908_v54 = vmul.f32 %v3914_v37, %v2658_v17 }
0x2e98   :  { %v2883_v9 = vcombine.low %v4860_v59, %v4908_v54  ;;  %v2668_v62 = vrot.slane %v4908_v54, %v4402_v28 }
0x2e99   :  { %v2860_v35 = vpop.permute.xlu0 %2859 }
0x2e9a   :  { %v2897_v61 = vrot.slane %v2883_v9, %v4402_v28  ;;  %v2864_v24 = vmul.f32 %v3916_v42, %v2860_v35 }
0x2e9b   :  { %v2858_v50 = vpop.permute.xlu1 %2857 }
0x2e9c   :  { %v2898_v30 = vcombine.low %v2890_v25, %v2897_v61  ;;  %v2863_v11 = vmul.f32 %v3918_v47, %v2858_v50 }
0x2e9e   :  { %2901 = vrot.lane.b32.xlu0 %v2898_v30, %s4179_s30  ;;  %2984 = vrot.lane.b32.xlu1 %v2863_v11, %s4179_s30 }
0x2e9f   :  { %v2900_v18 = vpop.permute.xlu1 %2899 }
0x2ea0   :  { %3713 = vmatprep.mubr.msk.f32.mxu1 %vm349_vm2, %v2900_v18 }
0x2ea2   :  { %2986 = vrot.lane.b32.xlu0 %v2864_v24, %s4179_s30 }
0x2f10   :  { %v2902_v16 = vpop.permute.xlu0 %2901  ;;  %v2985_v26 = vpop.permute.xlu1 %2984 }
0x2f11   :  { %3714 = vmatmul.mubr.msk.f32.vlgmr.msra.gmra.mxu1 %vm349_vm2, %v2902_v16  ;;  %3724 = vmatprep.mubr.msk.f32.mxu0 %vm349_vm2, %v2985_v26 }
0x2f14   :  { %v2987_v52 = vpop.permute.xlu0 %2986 }
0x2f15   :  { %3725 = vmatmul.mubr.msk.f32.vlgmr.msra.gmra.mxu0 %vm349_vm2, %v2987_v52 }
0x2fd1   :  { %v3715_v53 = vpop.f32.mrf.mxu1 }
0x2fd2   :  { %v2979_v57 = vadd.f32 %v3715_v53, %v4876_v7 }
0x2fd3   :  { %v2973_v60 = vpop.f32.mrf.mxu1 }
0x2fd4   :  { %v2974_v22 = vadd.f32 %v4876_v7, %v2973_v60 }
0x2fd5   :  { %v3726_v19 = vpop.f32.mrf.mxu0 }
0x2fd6   :  { %v3068_v27 = vadd.f32 %v3726_v19, %v2979_v57 }
0x2fd7   :  { %v3058_v32 = vpop.f32.mrf.mxu0 }
0x2fd8   :  { %3925 = vtanh.f32 %v3068_v27  ;;  %v3067_v34 = vadd.f32 %v3058_v32, %v2974_v22  ;;  %v3385_v7 = vmul.f32 -1.442695, %v3068_v27 }
0x2fda   :  { %3927 = vtanh.f32 %v3067_v34  ;;  %v3384_v40 = vmul.f32 -1.442695, %v3067_v34 }
0x2fdb   :  { %3929 = vpow2.f32 %v3385_v7 }
0x2fdc   :  { %3931 = vpow2.f32 %v3384_v40 }
0x2fe5   :  { %v3926_v36 = vpop.eup %3925 }
0x2fe6   :  { %3089 = vrot.lane.b32.xlu0 %v3926_v36, %s4188_s20 }
0x2fe7   :  { %v3928_v37 = vpop.eup %3927 }
0x2fe8   :  { %3087 = vrot.lane.b32.xlu1 %v3928_v37, %s4188_s20  ;;  %v3930_v41 = vpop.eup %3929 }
0x2fe9   :  { %v3932_v42 = vpop.eup %3931  ;;  %v3076_v44 = vadd.f32 1.0, %v3930_v41 }
0x2fea   :  { %3151 = vrot.lane.b32.xlu0 %v4752_v2, %s4188_s20  ;;  %v3075_v45 = vadd.f32 1.0, %v3932_v42 }
0x2feb   :  { %3933 = vrcp.f32 %v3076_v44 }
0x2fec   :  { %3149 = vrot.lane.b32.xlu1 %v4733_v33, %s4188_s20  ;;  %3935 = vrcp.f32 %v3075_v45 }
0x2fee   :  { %3155 = vrot.lane.b32.xlu0 %v4793_v58, %s4188_s20 }
0x2ff0   :  { %3153 = vrot.lane.b32.xlu1 %v4774_v49, %s4188_s20  ;;  %v1357_v49 = vrot.slane %v4571_v12, %v4402_v28 }
0x2ff8   :  { %v3934_v2 = vpop.eup %3933 }
0x2ff9   :  { %v3936_v33 = vpop.eup %3935  ;;  %v3084_v12 = vmul.f32 %v3934_v2, %v4890_v8 }
0x2ffa   :  { %v3083_v4 = vmul.f32 %v3936_v33, %v4893_v5 }
0x3058   :  { %v3090_v47 = vpop.permute.xlu0 %3089 }
0x3059   :  { %v3094_v20 = vmul.f32 %v3934_v2, %v3090_v47 }
0x305a   :  { %v3088_v21 = vpop.permute.xlu1 %3087 }
0x305b   :  { %3099 = vrot.lane.b32.xlu0 %v3094_v20, %s4179_s30  ;;  %v3093_v58 = vmul.f32 %v3936_v33, %v3088_v21 }
0x305d   :  { %3097 = vrot.lane.b32.xlu1 %v3093_v58, %s4179_s30 }
0x305e   :  { %v3150_v43 = vpop.permute.xlu1 %3149 }
0x305f   :  { %3159 = vrot.lane.b32.xlu0 %v4831_v31, %s4188_s20  ;;  %v2680_v31 = vrot.slane %v4887_v15, %v4402_v28 }
0x3061   :  { %3157 = vrot.lane.b32.xlu1 %v4813_v63, %s4188_s20  ;;  %v3152_v63 = vpop.permute.xlu0 %3151 }
0x3062   :  { %v3154_v1 = vpop.permute.xlu1 %3153 }
0x3063   :  { %3163 = vrot.lane.b32.xlu0 %v4908_v54, %s4188_s20 }
0x3065   :  { %3161 = vrot.lane.b32.xlu1 %v4860_v59, %s4188_s20  ;;  %v3156_v55 = vpop.permute.xlu0 %3155 }
0x3067   :  { %1358 = vrot.lane.b32.xlu0 %v1357_v49, %s4189_s21 }
0x3069   :  { %2669 = vrot.lane.b32.xlu1 %v2668_v62, %s4179_s30 }
0x306d   :  { %2681 = vrot.lane.b32.xlu1 %v2680_v31, %s4189_s21 }
0x30cd   :  { %v3100_v3 = vpop.permute.xlu0 %3099 }
0x30ce   :  { %v3104_v59 = vadd.f32 %v3100_v3, %v3084_v12 }
0x30cf   :  { %v3098_v38 = vpop.permute.xlu1 %3097 }
0x30d0   :  { %v3131_v6 = vrot.slane %v3104_v59, %v4402_v28  ;;  %v3103_v56 = vadd.f32 %v3098_v38, %v3083_v4  ;;  %v3124_v23 = vcombine.high %v3104_v59, %v3104_v59 }
0x30d1   :  { %v3160_v10 = vpop.permute.xlu0 %3159 }
0x30d2   :  { %v3139_v51 = vcombine.high %v3131_v6, %v3131_v6  ;;  %v3107_v15 = vcombine.high %v3103_v56, %v3103_v56  ;;  %v3114_v46 = vrot.slane %v3103_v56, %v4402_v28  ;;  %v3138_v5 = vrot.slane %v3124_v23, %v4402_v28 }
0x30d3   :  { %v3158_v13 = vpop.permute.xlu1 %3157 }
0x30d4   :  { %v3178_v29 = vadd.f32 %v3160_v10, %v3139_v51  ;;  %v3121_v39 = vrot.slane %v3107_v15, %v4402_v28  ;;  %v3122_v14 = vcombine.high %v3114_v46, %v3114_v46  ;;  %v3177_v8 = vadd.f32 %v3158_v13, %v3131_v6 }
0x30d5   :  { %v3164_v48 = vpop.permute.xlu0 %3163  ;;  %v3173_v9 = vadd.f32 %v3150_v43, %v3114_v46  ;;  %v3140_v35 = vcombine.high %v3138_v5, %v3138_v5 }
0x30d6   :  { %v3230_v17 = vrot.slane %v3178_v29, %v4402_v28  ;;  %v3123_v0 = vcombine.high %v3121_v39, %v3121_v39  ;;  %v3174_v54 = vadd.f32 %v3152_v63, %v3122_v14  ;;  %v3223_v25 = vrot.slane %v3177_v8, %v4402_v28 }
0x30d7   :  { %v3162_v61 = vpop.permute.xlu1 %3161  ;;  %v3175_v24 = vadd.f32 %v3154_v1, %v3121_v39  ;;  %v3195_v18 = vrot.slane %v3173_v9, %v4402_v28  ;;  %v3180_v26 = vadd.f32 %v3164_v48, %v3140_v35 }
0x30d8   :  { %3255 = vrot.lane.b32.xlu1 %v3230_v17, %s4189_s21  ;;  %v3176_v30 = vadd.f32 %v3156_v55, %v3123_v0  ;;  %3253 = vrot.lane.b32.xlu0 %v3223_v25, %s4189_s21  ;;  %v3202_v11 = vrot.slane %v3174_v54, %v4402_v28 }
0x30d9   :  { %v1359_v50 = vpop.permute.xlu0 %1358 }
0x30da   :  { %1362 = vst.msk [vmem:[#allocation19 + $0x2] sm:$0x3] %vm160_vm0, %v1359_v50  ;;  %v3216_v52 = vrot.slane %v3176_v30, %v4402_v28 }
0x30db   :  { %v2670_v16 = vpop.permute.xlu1 %2669 }
0x30dc   :  { %3247 = vrot.lane.b32.xlu1 %v3202_v11, %s4189_s21  ;;  %2672 = vst.msk [vmem:[#allocation17] sm:$0x3] %vm160_vm0, %v2670_v16  ;;  %3245 = vrot.lane.b32.xlu0 %v3195_v18, %s4189_s21 }
0x30dd   :  { %4108 = shalt.err (!%p4105_p2)
}
0x30de   :  { %3300 = dma.vmem_to_hbm [thread:$0]  %s3295_s0, 64, %s5015_s12, [#allocation18], %s4179_s30, %s4179_s30, %s4180_s14   ;;  %v3179_v53 = vadd.f32 %v3162_v61, %v3138_v5  ;;  %v3209_v57 = vrot.slane %v3175_v24, %v4402_v28  ;;  %v3244_v19 = vrot.slane %v3180_v26, %v4402_v28 }
0x30df   :  { %v2682_v60 = vpop.permute.xlu1 %2681  ;;  %s4117_s15 = scalar_lea.vmem %s3307_s25, 64  ;;  %p4122_p4 = scmp.lt.s32.totalorder %s3307_s25, %s3307_s25 }
0x30e0   :  { %3251 = vrot.lane.b32.xlu1 %v3216_v52, %s4189_s21  ;;  %2684 = vst.msk [vmem:[#allocation19] sm:$0x3] %vm160_vm0, %v2682_v60  ;;  %3249 = vrot.lane.b32.xlu0 %v3209_v57, %s4189_s21  ;;  %p4118_p3 = scmp.ne.s32.totalorder %s3307_s25, %s4117_s15  ;;  %p4123_p5 = scmp.lt.s32.totalorder %s4117_s15, %s4117_s15 }
0x30e2   :  { %p4124_p6 = por %p4123_p5, %p4122_p4 }
0x30e4   :  { %p4125_p7 = pnand %p4124_p6, %p4118_p3 }
0x30e6   :  { %4128 = shalt.err (!%p4125_p7)
}
0x30e7   :  { %3312 = dma.vmem_to_hbm [thread:$0]  %s3307_s25, 64, %s5016_s13, [#allocation18], %s4179_s30, %s4179_s30, %s4180_s14   ;;  %v3237_v22 = vrot.slane %v3179_v53, %v4402_v28 }
0x30e8   :  { %3259 = vrot.lane.b32.xlu1 %v3244_v19, %s4189_s21  ;;  %s4192_s13 = smov [#allocation16]  }
0x30e9   :  { %3257 = vrot.lane.b32.xlu0 %v3237_v22, %s4189_s21  ;;  %s3282_s28 = sshll.u32 %s4192_s13, 4  ;;  %s3283_s28 = int_to_ptr.vmem [resolvable:$true] %s3282_s28 }
0x30ea   :  { %s4137_s29 = scalar_lea.vmem %s3283_s28, 256  ;;  %p4142_p9 = scmp.lt.s32.totalorder %s3283_s28, %s3283_s28 }
0x30eb   :  { %p4138_p8 = scmp.ne.s32.totalorder %s3283_s28, %s4137_s29  ;;  %p4143_p10 = scmp.lt.s32.totalorder %s4137_s29, %s4137_s29 }
0x30ed   :  { %p4144_p11 = por %p4143_p10, %p4142_p9 }
0x30ef   :  { %p4145_p12 = pnand %p4144_p11, %p4138_p8 }
0x314a   :  { %v3256_v27 = vpop.permute.xlu1 %3255  ;;  %v3254_v32 = vpop.permute.xlu0 %3253 }
0x314b   :  { %3274 = vst.msk [vmem:[#allocation16 + $0xa] sm:$0x3] %vm160_vm0, %v3256_v27  ;;  %3273 = vst.msk [vmem:[#allocation16 + $0x8] sm:$0x3] %vm160_vm0, %v3254_v32 }
0x314e   :  { %v3248_v34 = vpop.permute.xlu1 %3247  ;;  %v3246_v36 = vpop.permute.xlu0 %3245 }
0x314f   :  { %3270 = vst.msk [vmem:[#allocation16 + $0x2] sm:$0x3] %vm160_vm0, %v3248_v34  ;;  %3269 = vst.msk [vmem:[#allocation16] sm:$0x3] %vm160_vm0, %v3246_v36 }
0x3152   :  { %v3252_v37 = vpop.permute.xlu1 %3251  ;;  %v3250_v28 = vpop.permute.xlu0 %3249 }
0x3153   :  { %3272 = vst.msk [vmem:[#allocation16 + $0x6] sm:$0x3] %vm160_vm0, %v3252_v37  ;;  %3271 = vst.msk [vmem:[#allocation16 + $0x4] sm:$0x3] %vm160_vm0, %v3250_v28 }
0x315a   :  { %v3260_v7 = vpop.permute.xlu1 %3259 }
0x315b   :  { %3276 = vst.msk [vmem:[#allocation16 + $0xe] sm:$0x3] %vm160_vm0, %v3260_v7  ;;  %v3258_v40 = vpop.permute.xlu0 %3257 }
0x315c   :  { %3275 = vst.msk [vmem:[#allocation16 + $0xc] sm:$0x3] %vm160_vm0, %v3258_v40 }
0x315d   :  { %4148 = shalt.err (!%p4145_p12)
}
0x315e   :  { %3288 = dma.vmem_to_hbm [thread:$0]  %s3283_s28, 256, %s5014_s11, [#allocation4], %s4179_s30, %s4179_s30, %s4180_s14  }
0x315f   :  { %4167 = dma.done.wait [#allocation4], 256  }
0x3160   :  { %4168 = vsyncadd [#allocation4], 4294967040 }
0x3161   :  { %4169 = dma.done.wait [#allocation18], 128  }
0x3162   :  { %4170 = vsyncadd [#allocation18], 4294967168 }
0x3163   :  { %3322 = vsyncpa [#allocation3], 1 }
0x3164   :  { %3323 = vsyncpa [#allocation6], 1 }
0x3165   :  { %3324 = vsyncpa [#allocation9], 1 }
0x3166   :  { %3325 = vsyncpa [#allocation12], 1 }
0x3167   :  { %3326 = vsyncpa [#allocation15], 1 }
0x3168   :  { %3327 = vsyncpa [#allocation4], 1 }
0x3169   :  { %3328 = vsyncpa [#allocation18], 1 }

</bundles_post_ra>
